<compile_context>
chip_gen: v7x
topology: tpu7x:2x2x1
jax: 0.10.0
libtpu: 0.0.40
codegen_flags: <defaults>
</compile_context>

<pallas_src>
import jax
import jax.numpy as jnp
from jax import lax
from jax.experimental import pallas as pl
from jax.experimental.pallas import tpu as pltpu

BN_EPS = 1e-5
DIST_EPS = 1e-8
PREC = jax.lax.Precision.HIGHEST          # used only by the pure-JAX reference
_NN_TEMP_BUDGET = 8 * 1024 * 1024         # VMEM budget for the [TN, S] 3-NN temporaries


# ---------------- trace-time helpers (outside kernels) -----------------------
def _bn_affine(p):
    s = p["gamma"] / jnp.sqrt(p["var"] + BN_EPS)
    t = p["beta"] - p["mean"] * s
    return s, t


def _bn_fold(p):
    """Fold BN into conv: (x@W.T + b)*s + t  ==  x@(W*s).T + (b*s + t)."""
    s, t = _bn_affine(p)
    return p["W"] * s[:, None], p["b"] * s + t


_VMEM_LIMIT_CACHE = []


def _vmem_limit_bytes():
    """Generation-aware scoped-VMEM request (v5e/v6e -> 96 MiB of 128; v7x -> 48 of 64)."""
    if not _VMEM_LIMIT_CACHE:
        cap = 64 * 1024 * 1024
        try:
            cap = int(getattr(pltpu.get_tpu_info(), "vmem_capacity_bytes", cap))
        except Exception:
            pass
        _VMEM_LIMIT_CACHE.append(int(min(cap * 3 // 4, 96 * 1024 * 1024)))
    return _VMEM_LIMIT_CACHE[0]


def _choose_tile(n, s, batch):
    """Point tile TN (multiple of 128) and padded point count N_pad (multiple of TN)."""
    tn = 512
    while tn > 128 and 6 * tn * max(s, 128) * 4 > _NN_TEMP_BUDGET:
        tn //= 2                          # cap TN*S so 3-NN temps stay resident in VMEM
    n128 = -(-n // 128) * 128
    tn = min(tn, n128)
    if batch == 1 and tn >= 256 and n128 // tn < 2:
        tn //= 2                          # keep both v7x TensorCores busy when B == 1
    n_pad = -(-n // tn) * tn
    return tn, n_pad


# ---------------- in-kernel 3-NN inverse-distance weights --------------------
def _three_nn_weights(xyz1, xyz2t):
    """xyz1 [N,3] f32, xyz2t [3,S] f32 -> [N,S] f32 row-normalized weights with exactly
    three nonzeros per row (the 3 nearest source points)."""
    n = xyz1.shape[0]
    s = xyz2t.shape[1]

    # Squared distances on the VPU; non-negative by construction (no cancellation).
    dx = xyz1[:, 0:1] - xyz2t[0:1, :]
    dy = xyz1[:, 1:2] - xyz2t[1:2, :]
    dz = xyz1[:, 2:3] - xyz2t[2:3, :]
    d = dx * dx + dy * dy + dz * dz                                    # [N, S]

    # Pack (distance, lane index) into ONE sortable int32 key: d >= 0 so its IEEE bit
    # pattern orders like the value; clear the low log2(S) mantissa bits and OR in the
    # lane index. Each of the 3 selections is a single cross-lane min.
    kbits = max(1, (s - 1).bit_length())
    mask_hi = jnp.int32(~((1 << kbits) - 1))
    iota = lax.broadcasted_iota(jnp.int32, (n, s), 1)
    key0 = jnp.bitwise_or(jnp.bitwise_and(pltpu.bitcast(d, jnp.int32), mask_hi), iota)
    int_max = jnp.int32(jnp.iinfo(jnp.int32).max)

    # Pass 1-3: collect the three per-row minima (keys are unique -> exact masking).
    key = key0
    kmins = []
    for _ in range(3):
        kmin = jnp.min(key, axis=-1, keepdims=True)                    # [N, 1]
        kmins.append(kmin)
        key = jnp.where(key == kmin, int_max, key)

    # Per-row scalars: inverse distances + normalization (EUP approx reciprocal).
    rs = [pl.reciprocal(pltpu.bitcast(jnp.bitwise_and(k, mask_hi), jnp.float32)
                        + DIST_EPS, approx=True) for k in kmins]
    rsum_inv = pl.reciprocal(rs[0] + rs[1] + rs[2], approx=True)       # [N, 1]

    # Single fused pass over [N, S]: scatter the three weights against the original key.
    w = jnp.where(key0 == kmins[0], rs[0], 0.0)
    w = jnp.where(key0 == kmins[1], rs[1], w)
    w = jnp.where(key0 == kmins[2], rs[2], w)
    return w * rsum_inv


# ---------------- feature-propagation kernel (optionally fused with the head) -
def _make_fp_kernel(has_p1, num_layers, fuse_head, c_store):
    def kernel(*refs):
        out_ref = refs[-1]
        xyz1 = refs[0][0]                  # [TN, 3]   f32
        xyz2t = refs[1][0]                 # [3, S]    f32
        p2 = refs[2][0]                    # [S, D2]   bf16
        i = 3
        p1t = None
        if has_p1:
            p1t = refs[i][0]               # [D1, TN]  bf16 (NCW tile)
            i += 1

        # 3-NN inverse-distance interpolation as a matmul (gather-free), f32 accuracy.
        wmat = _three_nn_weights(xyz1, xyz2t)                           # [TN, S] f32
        interp = jnp.dot(wmat, p2.astype(jnp.float32),
                         preferred_element_type=jnp.float32)            # [TN, D2]

        # Layer 0: concat([points1, interp]) @ W0' realized as split matmuls; the
        # points1 part contracts the leading dim of the NCW tile (transposed LHS).
        if has_p1:
            w0a = refs[i][...]
            i += 1
        w0b = refs[i][...]
        b0 = refs[i + 1][...]
        i += 2
        acc = jnp.dot(interp.astype(jnp.bfloat16), w0b,
                      preferred_element_type=jnp.float32)
        if has_p1:
            acc = acc + lax.dot_general(p1t, w0a, (((0,), (0,)), ((), ())),
                                        preferred_element_type=jnp.float32)
        h = jnp.maximum(acc + b0, 0.0).astype(jnp.bfloat16)

        # Remaining BN-folded conv1d(k=1) + ReLU layers.
        for _ in range(num_layers - 1):
            wl = refs[i][...]
            bl = refs[i + 1][...]
            i += 2
            acc = jnp.dot(h, wl, preferred_element_type=jnp.float32)
            h = jnp.maximum(acc + bl, 0.0).astype(jnp.bfloat16)

        if not fuse_head:
            out_ref[0] = h.astype(out_ref.dtype)
        else:
            # Fused head: conv1+bn1 (folded) + relu, dropout (eval) = identity, conv_out.
            w1 = refs[i][...]
            b1 = refs[i + 1][...]
            wo = refs[i + 2][...]
            bo = refs[i + 3][...]
            g = jnp.dot(h, w1, preferred_element_type=jnp.float32)
            g = jnp.maximum(g + b1, 0.0).astype(jnp.bfloat16)
            y = jnp.dot(g, wo, preferred_element_type=jnp.float32) + bo  # [TN, 128]
            yt = jnp.transpose(y)                                        # [128, TN] (XLU)
            out_ref[0] = yt[:c_store].astype(out_ref.dtype)              # channel-major

    return kernel


def fp_layer(xyz1, xyz2t, points1_ncw, points2, layers, head=None):
    """PointNetFeaturePropagation (+ optional fused segmentation head).
    xyz1 [B,N,3] f32, xyz2t [B,3,S] f32, points1_ncw [B,D1,N]|None, points2 [B,S+,D2]."""
    B, N, _ = xyz1.shape
    S = xyz2t.shape[2]
    D2 = points2.shape[2]
    has_p1 = points1_ncw is not None
    D1 = points1_ncw.shape[1] if has_p1 else 0
    c_last = layers[-1]["W"].shape[0]

    TN, N_pad = _choose_tile(N, S, B)
    n_tiles = N_pad // TN
    if N_pad != N:                                   # pad N to a multiple of TN
        xyz1 = jnp.pad(xyz1, ((0, 0), (0, N_pad - N), (0, 0)))
        if has_p1:
            points1_ncw = jnp.pad(points1_ncw, ((0, 0), (0, 0), (0, N_pad - N)))

    args = [xyz1, xyz2t, points2.astype(jnp.bfloat16)]
    specs = [
        pl.BlockSpec((1, TN, 3), lambda b, n: (b, n, 0)),
        pl.BlockSpec((1, 3, S), lambda b, n: (b, 0, 0)),
        pl.BlockSpec((1, S, D2), lambda b, n: (b, 0, 0)),   # first S rows are the valid ones
    ]
    if has_p1:
        args.append(points1_ncw.astype(jnp.bfloat16))
        specs.append(pl.BlockSpec((1, D1, TN), lambda b, n: (b, 0, n)))

    def add_const(x):
        args.append(x)
        specs.append(pl.BlockSpec(x.shape, lambda b, n, nd=x.ndim: (0,) * nd))

    for li, p in enumerate(layers):
        Wf, bf = _bn_fold(p)                              # [Cout,Cin], [Cout]
        cout = Wf.shape[0]
        wt = jnp.transpose(Wf).astype(jnp.bfloat16)       # [Cin, Cout]
        if li == 0:
            if has_p1:
                add_const(wt[:D1])                        # points1 part
            add_const(wt[D1:])                            # interp part
        else:
            add_const(wt)
        add_const(bf.reshape(1, cout).astype(jnp.float32))

    if head is None:
        c_store = 0
        out_shape = jax.ShapeDtypeStruct((B, N_pad, c_last), jnp.bfloat16)
        out_spec = pl.BlockSpec((1, TN, c_last), lambda b, n: (b, n, 0))
    else:
        conv1_p, convout_p = head
        num_class = convout_p["W"].shape[0]
        c_store = -(-num_class // 8) * 8                  # classes on sublanes
        w1, b1 = _bn_fold(conv1_p)
        wo = jnp.zeros((128, convout_p["W"].shape[1]),
                       jnp.float32).at[:num_class].set(convout_p["W"])
        bo = jnp.zeros((128,), jnp.float32).at[:num_class].set(convout_p["b"])
        add_const(jnp.transpose(w1).astype(jnp.bfloat16))     # [128, 128]
        add_const(b1.reshape(1, -1).astype(jnp.float32))
        add_const(jnp.transpose(wo).astype(jnp.bfloat16))     # [128, 128]
        add_const(bo.reshape(1, -1))
        out_shape = jax.ShapeDtypeStruct((B, c_store, N_pad), jnp.float32)
        out_spec = pl.BlockSpec((1, c_store, TN), lambda b, n: (b, 0, n))

    return pl.pallas_call(
        _make_fp_kernel(has_p1, len(layers), head is not None, c_store),
        out_shape=out_shape,
        grid=(B, n_tiles),
        in_specs=specs,
        out_specs=out_spec,
        compiler_params=pltpu.CompilerParams(
            dimension_semantics=("parallel", "parallel"),
            vmem_limit_bytes=_vmem_limit_bytes()),
    )(*args)


# ---------------- full decoder forward ---------------------------------------
def pointnet2_decoder_forward(params, l0_xyz, l0_points, l1_xyz, l1_points,
                              l2_xyz, l2_points, l3_xyz, l3_points,
                              l4_xyz, l4_points):
    """All inputs in PyTorch NCW layout [B, C, N]; returns logits [B, num_class, N0]."""
    del l0_points  # ignored by the reference forward (fp1 receives None)
    nlc = lambda x: jnp.transpose(x, (0, 2, 1))
    N0 = l0_xyz.shape[2]
    num_class = params["conv_out"]["W"].shape[0]

    l3p = fp_layer(nlc(l3_xyz), l4_xyz, l3_points, nlc(l4_points), params["fp4"])
    l2p = fp_layer(nlc(l2_xyz), l3_xyz, l2_points, l3p, params["fp3"])
    l1p = fp_layer(nlc(l1_xyz), l2_xyz, l1_points, l2p, params["fp2"])
    logits = fp_layer(nlc(l0_xyz), l1_xyz, None, l1p, params["fp1"],
                      head=(params["conv1"], params["conv_out"]))
    return logits[:, :num_class, :N0]


# ---------------- deterministic parameter init --------------------------------
def _conv_bn_params(key, cin, cout, with_bn=True):
    ks = jax.random.split(key, 6)
    p = {
        "W": jax.random.normal(ks[0], (cout, cin), jnp.float32) / jnp.sqrt(cin),
        "b": 0.02 * jax.random.normal(ks[1], (cout,), jnp.float32),
    }
    if with_bn:
        p["gamma"] = 1.0 + 0.1 * jax.random.normal(ks[2], (cout,), jnp.float32)
        p["beta"] = 0.05 * jax.random.normal(ks[3], (cout,), jnp.float32)
        p["mean"] = 0.1 * jax.random.normal(ks[4], (cout,), jnp.float32)
        p["var"] = 0.5 + jnp.abs(jax.random.normal(ks[5], (cout,), jnp.float32))
    return p


def init_params(key, num_class):
    def fp_params(k, cin, mlps):
        layers = []
        for cout in mlps:
            k, sub = jax.random.split(k)
            layers.append(_conv_bn_params(sub, cin, cout))
            cin = cout
        return layers

    keys = jax.random.split(key, 6)
    return {
        "fp4": fp_params(keys[0], 768, [256, 256]),
        "fp3": fp_params(keys[1], 384, [256, 256]),
        "fp2": fp_params(keys[2], 320, [256, 128]),
        "fp1": fp_params(keys[3], 128, [128, 128, 128]),
        "conv1": _conv_bn_params(keys[4], 128, 128),
        "conv_out": _conv_bn_params(keys[5], 128, num_class, with_bn=False),
    }


# ---------------- pure-JAX reference (f32, for verification) -----------------
def _fp_ref(xyz1, xyz2t, p1, p2, layers):
    xyz2 = jnp.transpose(xyz2t, (0, 2, 1))
    d = jnp.sum((xyz1[:, :, None, :] - xyz2[:, None, :, :]) ** 2, axis=-1)
    neg, idx = jax.lax.top_k(-d, 3)
    recip = 1.0 / (-neg + DIST_EPS)
    w = recip / jnp.sum(recip, axis=-1, keepdims=True)
    gathered = jax.vmap(lambda pts, ind: pts[ind])(p2, idx)        # [B, N, 3, D2]
    interp = jnp.sum(gathered * w[..., None], axis=2)
    h = interp if p1 is None else jnp.concatenate([p1, interp], axis=-1)
    for p in layers:
        s, t = _bn_affine(p)
        h = jnp.maximum(
            (jnp.matmul(h, p["W"].T, precision=PREC) + p["b"]) * s + t, 0.0)
    return h


def _decoder_ref(params, l0_xyz, l0_points, l1_xyz, l1_points, l2_xyz, l2_points,
                 l3_xyz, l3_points, l4_xyz, l4_points):
    del l0_points
    nlc = lambda x: jnp.transpose(x, (0, 2, 1))
    l3p = _fp_ref(nlc(l3_xyz), l4_xyz, nlc(l3_points), nlc(l4_points), params["fp4"])
    l2p = _fp_ref(nlc(l2_xyz), l3_xyz, nlc(l2_points), l3p, params["fp3"])
    l1p = _fp_ref(nlc(l1_xyz), l2_xyz, nlc(l1_points), l2p, params["fp2"])
    l0p = _fp_ref(nlc(l0_xyz), l1_xyz, None, l1p, params["fp1"])
    s1, t1 = _bn_affine(params["conv1"])
    h = jnp.maximum(
        (jnp.matmul(l0p, params["conv1"]["W"].T, precision=PREC)
         + params["conv1"]["b"]) * s1 + t1, 0.0)
    y = (jnp.matmul(h, params["conv_out"]["W"].T, precision=PREC)
         + params["conv_out"]["b"])
    return jnp.transpose(y, (0, 2, 1))


if __name__ == "__main__":
    B, num_class = 2, 13
    N0, N1, N2, N3, N4 = 64, 32, 16, 8, 4
    key = jax.random.PRNGKey(0)
    kp, kd = jax.random.split(key)
    params = init_params(kp, num_class)
    ks = jax.random.split(kd, 10)
    l0_xyz = jax.random.uniform(ks[0], (B, 3, N0), jnp.float32)
    l0_points = None  # ignored by the forward pass (fp1 gets None)
    l1_xyz = jax.random.uniform(ks[1], (B, 3, N1), jnp.float32)
    l1_points = jax.random.normal(ks[2], (B, 64, N1), jnp.float32)
    l2_xyz = jax.random.uniform(ks[3], (B, 3, N2), jnp.float32)
    l2_points = jax.random.normal(ks[4], (B, 128, N2), jnp.float32)
    l3_xyz = jax.random.uniform(ks[5], (B, 3, N3), jnp.float32)
    l3_points = jax.random.normal(ks[6], (B, 256, N3), jnp.float32)
    l4_xyz = jax.random.uniform(ks[7], (B, 3, N4), jnp.float32)
    l4_points = jax.random.normal(ks[8], (B, 512, N4), jnp.float32)

    inputs = (l0_xyz, l0_points, l1_xyz, l1_points, l2_xyz, l2_points,
              l3_xyz, l3_points, l4_xyz, l4_points)

    out = jax.block_until_ready(pointnet2_decoder_forward(params, *inputs))
    assert out.shape == (B, num_class, N0), out.shape

    ref = jax.block_until_ready(_decoder_ref(params, *inputs))
    # bf16 MXU MLP path + approx-reciprocal 3-NN weights vs f32-HIGHEST reference.
    rel = float(jnp.linalg.norm(out - ref) / (jnp.linalg.norm(ref) + 1e-12))
    assert rel < 5e-2, f"relative L2 error {rel}"
    print("KERNEL_OK")
</pallas_src>

<mosaic_0001>
module attributes {stable_mosaic.version = 11 : i64} {
  func.func @kernel(%arg0: i32, %arg1: i32, %arg2: memref<1x128x3xf32, #tpu.memory_space<vmem>>, %arg3: memref<1x3x4xf32, #tpu.memory_space<vmem>>, %arg4: memref<1x4x512xbf16, #tpu.memory_space<vmem>>, %arg5: memref<1x256x128xbf16, #tpu.memory_space<vmem>>, %arg6: memref<256x256xbf16, #tpu.memory_space<vmem>>, %arg7: memref<512x256xbf16, #tpu.memory_space<vmem>>, %arg8: memref<1x256xf32, #tpu.memory_space<vmem>>, %arg9: memref<256x256xbf16, #tpu.memory_space<vmem>>, %arg10: memref<1x256xf32, #tpu.memory_space<vmem>>, %arg11: memref<1x128x256xbf16, #tpu.memory_space<vmem>>) attributes {dimension_semantics = [#tpu.dimension_semantics<parallel>, #tpu.dimension_semantics<parallel>], iteration_bounds = array<i64: 2, 1>, scalar_prefetch = 0 : i64, scratch_operands = 0 : i64, tpu.core_type = #tpu.core_type<tc>, window_params = [{transform_indices = @transform_0, window_bounds = array<i64: 1, 128, 3>}, {transform_indices = @transform_1, window_bounds = array<i64: 1, 3, 4>}, {transform_indices = @transform_2, window_bounds = array<i64: 1, 4, 512>}, {transform_indices = @transform_3, window_bounds = array<i64: 1, 256, 128>}, {pipeline_mode = #tpu.pipeline_mode<synchronous>, transform_indices = @transform_4, window_bounds = array<i64: 256, 256>}, {pipeline_mode = #tpu.pipeline_mode<synchronous>, transform_indices = @transform_5, window_bounds = array<i64: 512, 256>}, {pipeline_mode = #tpu.pipeline_mode<synchronous>, transform_indices = @transform_6, window_bounds = array<i64: 1, 256>}, {pipeline_mode = #tpu.pipeline_mode<synchronous>, transform_indices = @transform_7, window_bounds = array<i64: 256, 256>}, {pipeline_mode = #tpu.pipeline_mode<synchronous>, transform_indices = @transform_8, window_bounds = array<i64: 1, 256>}, {transform_indices = @transform_9, window_bounds = array<i64: 1, 128, 256>}]} {
    %c0 = arith.constant 0 : index
    %c0_0 = arith.constant 0 : index
    %c0_1 = arith.constant 0 : index
    %0 = vector.load %arg2[%c0, %c0_0, %c0_1] : memref<1x128x3xf32, #tpu.memory_space<vmem>>, vector<1x128x3xf32>
    %1 = vector.shape_cast %0 : vector<1x128x3xf32> to vector<128x3xf32>
    %c0_2 = arith.constant 0 : index
    %c0_3 = arith.constant 0 : index
    %c0_4 = arith.constant 0 : index
    %2 = vector.load %arg3[%c0_2, %c0_3, %c0_4] : memref<1x3x4xf32, #tpu.memory_space<vmem>>, vector<1x3x4xf32>
    %3 = vector.shape_cast %2 : vector<1x3x4xf32> to vector<3x4xf32>
    %c0_5 = arith.constant 0 : index
    %c0_6 = arith.constant 0 : index
    %c0_7 = arith.constant 0 : index
    %4 = vector.load %arg4[%c0_5, %c0_6, %c0_7] : memref<1x4x512xbf16, #tpu.memory_space<vmem>>, vector<1x4x512xbf16>
    %5 = vector.shape_cast %4 : vector<1x4x512xbf16> to vector<4x512xbf16>
    %c0_8 = arith.constant 0 : index
    %c0_9 = arith.constant 0 : index
    %c0_10 = arith.constant 0 : index
    %6 = vector.load %arg5[%c0_8, %c0_9, %c0_10] : memref<1x256x128xbf16, #tpu.memory_space<vmem>>, vector<1x256x128xbf16>
    %7 = vector.shape_cast %6 : vector<1x256x128xbf16> to vector<256x128xbf16>
    %8 = vector.extract_strided_slice %1 {offsets = [0, 0], sizes = [128, 1], strides = [1, 1]} : vector<128x3xf32> to vector<128x1xf32>
    %9 = vector.extract_strided_slice %3 {offsets = [0, 0], sizes = [1, 4], strides = [1, 1]} : vector<3x4xf32> to vector<1x4xf32>
    %10 = vector.broadcast %8 : vector<128x1xf32> to vector<128x4xf32>
    %11 = vector.broadcast %9 : vector<1x4xf32> to vector<128x4xf32>
    %12 = arith.subf %10, %11 : vector<128x4xf32>
    %13 = vector.extract_strided_slice %1 {offsets = [0, 1], sizes = [128, 1], strides = [1, 1]} : vector<128x3xf32> to vector<128x1xf32>
    %14 = vector.extract_strided_slice %3 {offsets = [1, 0], sizes = [1, 4], strides = [1, 1]} : vector<3x4xf32> to vector<1x4xf32>
    %15 = vector.broadcast %13 : vector<128x1xf32> to vector<128x4xf32>
    %16 = vector.broadcast %14 : vector<1x4xf32> to vector<128x4xf32>
    %17 = arith.subf %15, %16 : vector<128x4xf32>
    %18 = vector.extract_strided_slice %1 {offsets = [0, 2], sizes = [128, 1], strides = [1, 1]} : vector<128x3xf32> to vector<128x1xf32>
    %19 = vector.extract_strided_slice %3 {offsets = [2, 0], sizes = [1, 4], strides = [1, 1]} : vector<3x4xf32> to vector<1x4xf32>
    %20 = vector.broadcast %18 : vector<128x1xf32> to vector<128x4xf32>
    %21 = vector.broadcast %19 : vector<1x4xf32> to vector<128x4xf32>
    %22 = arith.subf %20, %21 : vector<128x4xf32>
    %23 = arith.mulf %12, %12 : vector<128x4xf32>
    %24 = arith.mulf %17, %17 : vector<128x4xf32>
    %25 = arith.addf %23, %24 : vector<128x4xf32>
    %26 = arith.mulf %22, %22 : vector<128x4xf32>
    %27 = arith.addf %25, %26 : vector<128x4xf32>
    %28 = tpu.iota {dimensions = array<i32: 1>} : vector<128x4xi32>
    %29 = tpu.bitcast %27 : vector<128x4xf32> -> vector<128x4xi32>
    %c-4_i32 = arith.constant -4 : i32
    %30 = vector.broadcast %c-4_i32 : i32 to vector<128x4xi32>
    %31 = arith.andi %29, %30 : vector<128x4xi32>
    %32 = arith.ori %31, %28 : vector<128x4xi32>
    %cst = arith.constant dense<2147483647> : vector<128xi32>
    %33 = vector.multi_reduction <minsi>, %32, %cst [1] : vector<128x4xi32> to vector<128xi32>
    %34 = vector.shape_cast %33 : vector<128xi32> to vector<128x1xi32>
    %35 = vector.broadcast %34 : vector<128x1xi32> to vector<128x4xi32>
    %36 = arith.cmpi eq, %32, %35 : vector<128x4xi32>
    %c2147483647_i32 = arith.constant 2147483647 : i32
    %37 = vector.broadcast %c2147483647_i32 : i32 to vector<128x4xi32>
    %38 = arith.select %36, %37, %32 : vector<128x4xi1>, vector<128x4xi32>
    %cst_11 = arith.constant dense<2147483647> : vector<128xi32>
    %39 = vector.multi_reduction <minsi>, %38, %cst_11 [1] : vector<128x4xi32> to vector<128xi32>
    %40 = vector.shape_cast %39 : vector<128xi32> to vector<128x1xi32>
    %41 = vector.broadcast %40 : vector<128x1xi32> to vector<128x4xi32>
    %42 = arith.cmpi eq, %38, %41 : vector<128x4xi32>
    %c2147483647_i32_12 = arith.constant 2147483647 : i32
    %43 = vector.broadcast %c2147483647_i32_12 : i32 to vector<128x4xi32>
    %44 = arith.select %42, %43, %38 : vector<128x4xi1>, vector<128x4xi32>
    %cst_13 = arith.constant dense<2147483647> : vector<128xi32>
    %45 = vector.multi_reduction <minsi>, %44, %cst_13 [1] : vector<128x4xi32> to vector<128xi32>
    %46 = vector.shape_cast %45 : vector<128xi32> to vector<128x1xi32>
    %c-4_i32_14 = arith.constant -4 : i32
    %47 = vector.broadcast %c-4_i32_14 : i32 to vector<128x1xi32>
    %48 = arith.andi %34, %47 : vector<128x1xi32>
    %49 = tpu.bitcast %48 : vector<128x1xi32> -> vector<128x1xf32>
    %cst_15 = arith.constant 9.99999993E-9 : f32
    %50 = vector.broadcast %cst_15 : f32 to vector<128x1xf32>
    %51 = arith.addf %49, %50 : vector<128x1xf32>
    %52 = tpu.reciprocal %51 {approx = true} : vector<128x1xf32> -> vector<128x1xf32>
    %c-4_i32_16 = arith.constant -4 : i32
    %53 = vector.broadcast %c-4_i32_16 : i32 to vector<128x1xi32>
    %54 = arith.andi %40, %53 : vector<128x1xi32>
    %55 = tpu.bitcast %54 : vector<128x1xi32> -> vector<128x1xf32>
    %cst_17 = arith.constant 9.99999993E-9 : f32
    %56 = vector.broadcast %cst_17 : f32 to vector<128x1xf32>
    %57 = arith.addf %55, %56 : vector<128x1xf32>
    %58 = tpu.reciprocal %57 {approx = true} : vector<128x1xf32> -> vector<128x1xf32>
    %c-4_i32_18 = arith.constant -4 : i32
    %59 = vector.broadcast %c-4_i32_18 : i32 to vector<128x1xi32>
    %60 = arith.andi %46, %59 : vector<128x1xi32>
    %61 = tpu.bitcast %60 : vector<128x1xi32> -> vector<128x1xf32>
    %cst_19 = arith.constant 9.99999993E-9 : f32
    %62 = vector.broadcast %cst_19 : f32 to vector<128x1xf32>
    %63 = arith.addf %61, %62 : vector<128x1xf32>
    %64 = tpu.reciprocal %63 {approx = true} : vector<128x1xf32> -> vector<128x1xf32>
    %65 = arith.addf %52, %58 : vector<128x1xf32>
    %66 = arith.addf %65, %64 : vector<128x1xf32>
    %67 = tpu.reciprocal %66 {approx = true} : vector<128x1xf32> -> vector<128x1xf32>
    %68 = vector.broadcast %34 : vector<128x1xi32> to vector<128x4xi32>
    %69 = arith.cmpi eq, %32, %68 : vector<128x4xi32>
    %cst_20 = arith.constant 0.000000e+00 : f32
    %70 = vector.shape_cast %52 : vector<128x1xf32> to vector<128x1xf32>
    %71 = vector.broadcast %70 : vector<128x1xf32> to vector<128x4xf32>
    %72 = vector.broadcast %cst_20 : f32 to vector<128x4xf32>
    %73 = arith.select %69, %71, %72 : vector<128x4xi1>, vector<128x4xf32>
    %74 = vector.broadcast %40 : vector<128x1xi32> to vector<128x4xi32>
    %75 = arith.cmpi eq, %32, %74 : vector<128x4xi32>
    %76 = vector.shape_cast %58 : vector<128x1xf32> to vector<128x1xf32>
    %77 = vector.broadcast %76 : vector<128x1xf32> to vector<128x4xf32>
    %78 = arith.select %75, %77, %73 : vector<128x4xi1>, vector<128x4xf32>
    %79 = vector.broadcast %46 : vector<128x1xi32> to vector<128x4xi32>
    %80 = arith.cmpi eq, %32, %79 : vector<128x4xi32>
    %81 = vector.shape_cast %64 : vector<128x1xf32> to vector<128x1xf32>
    %82 = vector.broadcast %81 : vector<128x1xf32> to vector<128x4xf32>
    %83 = arith.select %80, %82, %78 : vector<128x4xi1>, vector<128x4xf32>
    %84 = vector.broadcast %67 : vector<128x1xf32> to vector<128x4xf32>
    %85 = arith.mulf %83, %84 : vector<128x4xf32>
    %86 = arith.extf %5 : vector<4x512xbf16> to vector<4x512xf32>
    %cst_21 = arith.constant dense<0.000000e+00> : vector<128x512xf32>
    %87 = tpu.matmul %85, %86, %cst_21 {dimension_numbers = #tpu.dot_dimension_numbers<[1], [0], [0], [1], [0, 0, 1, 1], [], []>} : vector<128x4xf32>, vector<4x512xf32>, vector<128x512xf32> -> vector<128x512xf32>
    %c0_22 = arith.constant 0 : index
    %c0_23 = arith.constant 0 : index
    %88 = vector.load %arg6[%c0_22, %c0_23] : memref<256x256xbf16, #tpu.memory_space<vmem>>, vector<256x256xbf16>
    %c0_24 = arith.constant 0 : index
    %c0_25 = arith.constant 0 : index
    %89 = vector.load %arg7[%c0_24, %c0_25] : memref<512x256xbf16, #tpu.memory_space<vmem>>, vector<512x256xbf16>
    %c0_26 = arith.constant 0 : index
    %c0_27 = arith.constant 0 : index
    %90 = vector.load %arg8[%c0_26, %c0_27] : memref<1x256xf32, #tpu.memory_space<vmem>>, vector<1x256xf32>
    %91 = arith.truncf %87 : vector<128x512xf32> to vector<128x512xbf16>
    %cst_28 = arith.constant dense<0.000000e+00> : vector<128x256xf32>
    %92 = tpu.matmul %91, %89, %cst_28 {dimension_numbers = #tpu.dot_dimension_numbers<[1], [0], [0], [1], [0, 0, 1, 1], [], []>} : vector<128x512xbf16>, vector<512x256xbf16>, vector<128x256xf32> -> vector<128x256xf32>
    %cst_29 = arith.constant dense<0.000000e+00> : vector<128x256xf32>
    %93 = tpu.matmul %7, %88, %cst_29 {dimension_numbers = #tpu.dot_dimension_numbers<[0], [0], [1], [1], [0, 1, 1, 1], [], []>} : vector<256x128xbf16>, vector<256x256xbf16>, vector<128x256xf32> -> vector<128x256xf32>
    %94 = arith.addf %92, %93 : vector<128x256xf32>
    %95 = vector.broadcast %90 : vector<1x256xf32> to vector<128x256xf32>
    %96 = arith.addf %94, %95 : vector<128x256xf32>
    %cst_30 = arith.constant 0.000000e+00 : f32
    %97 = vector.broadcast %cst_30 : f32 to vector<128x256xf32>
    %98 = arith.maximumf %96, %97 : vector<128x256xf32>
    %99 = arith.truncf %98 : vector<128x256xf32> to vector<128x256xbf16>
    %c0_31 = arith.constant 0 : index
    %c0_32 = arith.constant 0 : index
    %100 = vector.load %arg9[%c0_31, %c0_32] : memref<256x256xbf16, #tpu.memory_space<vmem>>, vector<256x256xbf16>
    %c0_33 = arith.constant 0 : index
    %c0_34 = arith.constant 0 : index
    %101 = vector.load %arg10[%c0_33, %c0_34] : memref<1x256xf32, #tpu.memory_space<vmem>>, vector<1x256xf32>
    %cst_35 = arith.constant dense<0.000000e+00> : vector<128x256xf32>
    %102 = tpu.matmul %99, %100, %cst_35 {dimension_numbers = #tpu.dot_dimension_numbers<[1], [0], [0], [1], [0, 0, 1, 1], [], []>} : vector<128x256xbf16>, vector<256x256xbf16>, vector<128x256xf32> -> vector<128x256xf32>
    %103 = vector.broadcast %101 : vector<1x256xf32> to vector<128x256xf32>
    %104 = arith.addf %102, %103 : vector<128x256xf32>
    %cst_36 = arith.constant 0.000000e+00 : f32
    %105 = vector.broadcast %cst_36 : f32 to vector<128x256xf32>
    %106 = arith.maximumf %104, %105 : vector<128x256xf32>
    %107 = arith.truncf %106 : vector<128x256xf32> to vector<128x256xbf16>
    %c0_37 = arith.constant 0 : index
    %c0_38 = arith.constant 0 : index
    %c0_39 = arith.constant 0 : index
    %108 = vector.load %arg11[%c0_37, %c0_38, %c0_39] : memref<1x128x256xbf16, #tpu.memory_space<vmem>>, vector<1x128x256xbf16>
    %109 = vector.shape_cast %108 : vector<1x128x256xbf16> to vector<128x256xbf16>
    %110 = vector.shape_cast %107 : vector<128x256xbf16> to vector<1x128x256xbf16>
    tpu.vector_store %arg11[%c0_37, %c0_38, %c0_39], %110 {strides = array<i32>} : memref<1x128x256xbf16, #tpu.memory_space<vmem>>, vector<1x128x256xbf16>,
    return
  }
  func.func @transform_0(%arg0: i32, %arg1: i32) -> (i32, i32, i32) {
    %c0_i32 = arith.constant 0 : i32
    %c0_i32_0 = arith.constant 0 : i32
    return %arg0, %arg1, %c0_i32 : i32, i32, i32
  }
  func.func @transform_1(%arg0: i32, %arg1: i32) -> (i32, i32, i32) {
    %c0_i32 = arith.constant 0 : i32
    %c0_i32_0 = arith.constant 0 : i32
    %c0_i32_1 = arith.constant 0 : i32
    return %arg0, %c0_i32, %c0_i32_0 : i32, i32, i32
  }
  func.func @transform_2(%arg0: i32, %arg1: i32) -> (i32, i32, i32) {
    %c0_i32 = arith.constant 0 : i32
    %c0_i32_0 = arith.constant 0 : i32
    %c0_i32_1 = arith.constant 0 : i32
    return %arg0, %c0_i32, %c0_i32_0 : i32, i32, i32
  }
  func.func @transform_3(%arg0: i32, %arg1: i32) -> (i32, i32, i32) {
    %c0_i32 = arith.constant 0 : i32
    %c0_i32_0 = arith.constant 0 : i32
    return %arg0, %c0_i32, %arg1 : i32, i32, i32
  }
  func.func @transform_4(%arg0: i32, %arg1: i32) -> (i32, i32) {
    %c0_i32 = arith.constant 0 : i32
    %c0_i32_0 = arith.constant 0 : i32
    %c0_i32_1 = arith.constant 0 : i32
    return %c0_i32, %c0_i32_0 : i32, i32
  }
  func.func @transform_5(%arg0: i32, %arg1: i32) -> (i32, i32) {
    %c0_i32 = arith.constant 0 : i32
    %c0_i32_0 = arith.constant 0 : i32
    %c0_i32_1 = arith.constant 0 : i32
    return %c0_i32, %c0_i32_0 : i32, i32
  }
  func.func @transform_6(%arg0: i32, %arg1: i32) -> (i32, i32) {
    %c0_i32 = arith.constant 0 : i32
    %c0_i32_0 = arith.constant 0 : i32
    %c0_i32_1 = arith.constant 0 : i32
    return %c0_i32, %c0_i32_0 : i32, i32
  }
  func.func @transform_7(%arg0: i32, %arg1: i32) -> (i32, i32) {
    %c0_i32 = arith.constant 0 : i32
    %c0_i32_0 = arith.constant 0 : i32
    %c0_i32_1 = arith.constant 0 : i32
    return %c0_i32, %c0_i32_0 : i32, i32
  }
  func.func @transform_8(%arg0: i32, %arg1: i32) -> (i32, i32) {
    %c0_i32 = arith.constant 0 : i32
    %c0_i32_0 = arith.constant 0 : i32
    %c0_i32_1 = arith.constant 0 : i32
    return %c0_i32, %c0_i32_0 : i32, i32
  }
  func.func @transform_9(%arg0: i32, %arg1: i32) -> (i32, i32, i32) {
    %c0_i32 = arith.constant 0 : i32
    %c0_i32_0 = arith.constant 0 : i32
    return %arg0, %arg1, %c0_i32 : i32, i32, i32
  }
}

</mosaic_0001>

<bundles_post_ra>
// kernel: tpu_custom_call.1
= control target key start
LH: loop header
LB: loop body
LE: loop exit
PB: predicated region body
PF: predicated region fallthrough
CT: control target
= control target key end

     0   :  { %s7116_s0 = inlined_call_operand.vmem [shape: f32[2,128,3], index: 0, kind: input, shape index: {}]   ;;  %s7117_s1 = inlined_call_operand.vmem [shape: f32[2,3,4], index: 1, kind: input, shape index: {}]   ;;  %s7118_s2 = inlined_call_operand.vmem [shape: bf16[2,4,512], index: 2, kind: input, shape index: {}]   ;;  %s7119_s3 = inlined_call_operand.vmem [shape: bf16[2,256,128], index: 3, kind: input, shape index: {}]   ;;  %s7120_s4 = inlined_call_operand.hbm [shape: bf16[256,256], index: 4, kind: input, shape index: {}]   ;;  %s7121_s5 = inlined_call_operand.hbm [shape: bf16[512,256], index: 5, kind: input, shape index: {}]   ;;  %s7122_s6 = inlined_call_operand.vmem [shape: f32[1,256], index: 6, kind: input, shape index: {}]   ;;  %s7123_s7 = inlined_call_operand.hbm [shape: bf16[256,256], index: 7, kind: input, shape index: {}]   ;;  %s7124_s8 = inlined_call_operand.vmem [shape: f32[1,256], index: 8, kind: input, shape index: {}]   ;;  %s7125_s9 = inlined_call_operand.hbm [shape: bf16[2,128,256], index: 9, kind: output, shape index: {}]  }
   0x1   :  { %7187 = sst [smem:[#allocation63_spill]] %s7121_s5 }
   0x2   :  { %14 = vsyncpa [#allocation3], 0 }
   0x3   :  { %15 = vsyncpa [#allocation6], 0 }
   0x4   :  { %16 = vsyncpa [#allocation4], 0 }
   0x5   :  { %18 = vsyncpa [#allocation4 + $0x1], 0  ;;  %s5227_s30 = smov 0   ;;  %s5229_s10 = smov 0  }
   0x6   :  { %s5231_s11 = smov 0   ;;  %s5233_s12 = smov 0  }
   0x7   :  { %s5235_s13 = smov 0   ;;  %s5237_s14 = smov 0  }
   0x8 LB: > { %7188 = sst [smem:[#allocation12_spill]] %s5143_s30  ;;  %s4225_s15 = sadd.s32 4294967295, %s5163_s14   ;;  %s5163_s14 = sphi %s5237_s14, %s24_s14   ;;  %s5159_s13 = sphi %s5235_s13, %s7343_s13   ;;  %s5155_s12 = sphi %s5233_s12, %s7346_s12   ;;  %s5151_s11 = sphi %s5231_s11, %s7341_s11   ;;  %s5147_s10 = sphi %s5229_s10, %s7345_s10   ;;  %s5143_s30 = sphi %s5227_s30, %s7344_s30  }
   0x9   : > { %7189 = sst [smem:[#allocation13_spill]] %s5151_s11  ;;  %s4226_s16 = sadd.s32 4294967294, %s5163_s14  }
   0xa   : > { %7190 = sst [smem:[#allocation14_spill]] %s5159_s13  ;;  %s36_s17 = sadd.s32 1, %s5159_s13 }
   0xb   : > { %s258_s18 = sadd.s32 1, %s5151_s11  ;;  %p38_p0 = scmp.ge.s32.totalorder %s36_s17, 2 }
   0xc   : > { %p268_p1 = scmp.ne.s32.totalorder %s5151_s11, %s5147_s10  ;;  %p269_p2 = scmp.eq.s32.totalorder %s4225_s15, 1 }
   0xd   : > { %p274_p3 = scmp.ne.s32.totalorder %s5147_s10, %s5143_s30  ;;  %s7348_s17 = smov (%p38_p0, %s36_s17), 0 }
   0xe   : > { %7191 = sst [smem:[#allocation15_spill]] %s7348_s17  ;;  %p5267_p4 = por %p269_p2, %p268_p1 }
   0xf   : > { %p275_p5 = scmp.eq.s32.totalorder %s4226_s16, 1  ;;  %s253_s20 = ssub.s32 %s5159_s13, %s7348_s17 }
  0x10   : > { %s7192_s19 = scalar_select %p5267_p4, 1, 0 }
  0x11   : > { %p4227_p6 = scmp.ge.s32.totalorder %s5163_s14, 1  ;;  %p256_p7 = scmp.eq.s32.totalorder %s253_s20, 0 }
  0x12   : > { %p5274_p8 = por %p275_p5, %p274_p3  ;;  %p282_p9 = scmp.lt.s32.totalorder %s5163_s14, 3 }
  0x13   : > { %s5280_s22 = scalar_select %p256_p7, %s5151_s11, %s258_s18  }
  0x14   : > { %s7193_s21 = scalar_select %p5274_p8, 1, 0 }
  0x15   : > { %7195 = sst [smem:[#allocation17_spill]] %s5280_s22  ;;  %p5282_p10 = pnand %p4227_p6, %p282_p9 }
  0x16   : > { %7194 = sst [smem:[#allocation16_spill]] %s7193_s21  ;;  %p5286_p11 = scmp.eq.s32.totalorder %s4225_s15, 0 }
  0x17   : > { %s7196_s23 = scalar_select %p5282_p10, 1, 0 }
  0x18   : > { %s7197_s24 = scalar_select %p5286_p11, 1, 0 }
  0x19   : > { %p4543_p12 = pneg %p5282_p10  ;;  %s5165_s25 = smov [#allocation5]  }
  0x1a   : > { %s307_s26 = sshll.u32 %s5165_s25, 4  ;;  %s5166_s28 = smov [#allocation2]   ;;  %s308_s26 = int_to_ptr.vmem [resolvable:$true] %s307_s26 }
  0x1b   : > { %p5294_p13 = pnand %p5286_p11, %p4543_p12  ;;  %s294_s29 = sshll.u32 %s5166_s28, 4  ;;  %s295_s29 = int_to_ptr.vmem [resolvable:$true] %s294_s29 }
  0x1c   : > { %s7199_s5 = sld [smem:[#allocation63_spill]] }
  0x1d   : > { %p5306_p1 = pneg %p5294_p13 }
  0x22   : > { %s4993_s15 = scalar_lea.hbm %s7199_s5, 8192 }
  0x23   : > { %p4994_p0 = scmp.ne.s32.totalorder %s7199_s5, %s4993_s15  ;;  %p5000_p5 = scmp.lt.u32.totalorder %s4993_s15, %s7199_s5 }
  0x25   : > { %p4996_p2 = pnand %p5306_p1, %p4994_p0 }
  0x27   : > { %p4997_p3 = pneg %p4996_p2 }
  0x29   : > { %p5002_p6 = pnand %p5000_p5, %p4997_p3 }
  0x2b   : > { %5005 = shalt.err (!%p5002_p6)
}
  0x2c   : > { %s5006_s28 = scalar_lea.vmem %s308_s26, 8192  ;;  %p5014_p8 = scmp.lt.s32.totalorder %s308_s26, %s308_s26 }
  0x2d   : > { %p5007_p7 = scmp.ne.s32.totalorder %s308_s26, %s5006_s28  ;;  %p5015_p4 = scmp.lt.s32.totalorder %s5006_s28, %s5006_s28 }
  0x2f   : > { %p5009_p9 = pnand %p5007_p7, %p5306_p1  ;;  %p5016_p11 = por %p5015_p4, %p5014_p8 }
  0x31   : > { %p5010_p12 = pneg %p5009_p9 }
  0x33   : > { %p5017_p10 = pnand %p5016_p11, %p5010_p12 }
  0x35   : > { %5020 = shalt.err (!%p5017_p10)
}
  0x36   : > { %s5167_s17 = smov 128   ;;  %s5168_s16 = smov 8  }
  0x37   : > { %4549 = dma.hbm_to_vmem [thread:$0]  (!%p5294_p13), %s7199_s5, 8192, %s308_s26, [#allocation6], %s5167_s17, %s5167_s17, %s5168_s16  }
  0x38   : > { %s5021_s20 = scalar_lea.hbm %s7120_s4, 4096 }
  0x39   : > { %p5022_p4 = scmp.ne.s32.totalorder %s7120_s4, %s5021_s20  ;;  %p5028_p11 = scmp.lt.u32.totalorder %s5021_s20, %s7120_s4 }
  0x3b   : > { %p5024_p8 = pnand %p5022_p4, %p5306_p1 }
  0x3d   : > { %p5025_p10 = pneg %p5024_p8 }
  0x3f   : > { %p5030_p0 = pnand %p5028_p11, %p5025_p10 }
  0x41   : > { %5033 = shalt.err (!%p5030_p0)
}
  0x42   : > { %s5034_s13 = scalar_lea.vmem %s295_s29, 4096  ;;  %p5042_p6 = scmp.lt.s32.totalorder %s295_s29, %s295_s29 }
  0x43   : > { %p5035_p2 = scmp.ne.s32.totalorder %s295_s29, %s5034_s13  ;;  %p5043_p7 = scmp.lt.s32.totalorder %s5034_s13, %s5034_s13 }
  0x45   : > { %p5037_p3 = pnand %p5035_p2, %p5306_p1  ;;  %p5044_p9 = por %p5043_p7, %p5042_p6 }
  0x47   : > { %p5038_p5 = pneg %p5037_p3 }
  0x49   : > { %p5045_p12 = pnand %p5044_p9, %p5038_p5 }
  0x4b   : > { %5048 = shalt.err (!%p5045_p12)
}
  0x4c   : > { %4546 = dma.hbm_to_vmem [thread:$0]  (!%p5294_p13), %s7120_s4, 4096, %s295_s29, [#allocation3], %s5167_s17, %s5167_s17, %s5168_s16  }
  0x4d   : > { %s5169_s21 = smov [#allocation7]   ;;  %s5049_s15 = scalar_lea.hbm %s7123_s7, 4096 }
  0x4e   : > { %s323_s26 = sshll.u32 %s5169_s21, 4  ;;  %p5050_p4 = scmp.ne.s32.totalorder %s7123_s7, %s5049_s15  ;;  %s324_s26 = int_to_ptr.vmem [resolvable:$true] %s323_s26 }
  0x4f   : > { %p5056_p11 = scmp.lt.u32.totalorder %s5049_s15, %s7123_s7 }
  0x50   : > { %p5052_p8 = pnand %p5050_p4, %p5306_p1 }
  0x52   : > { %p5053_p10 = pneg %p5052_p8 }
  0x54   : > { %p5058_p0 = pnand %p5056_p11, %p5053_p10 }
  0x56   : > { %5061 = shalt.err (!%p5058_p0)
}
  0x57   : > { %s5062_s29 = scalar_lea.vmem %s324_s26, 4096  ;;  %p5070_p6 = scmp.lt.s32.totalorder %s324_s26, %s324_s26 }
  0x58   : > { %p5063_p2 = scmp.ne.s32.totalorder %s324_s26, %s5062_s29  ;;  %p5071_p7 = scmp.lt.s32.totalorder %s5062_s29, %s5062_s29 }
  0x5a   : > { %p5065_p3 = pnand %p5063_p2, %p5306_p1  ;;  %p5072_p9 = por %p5071_p7, %p5070_p6 }
  0x5c   : > { %p5066_p5 = pneg %p5065_p3 }
  0x5e   : > { %p5073_p12 = pnand %p5072_p9, %p5066_p5 }
  0x60   : > { %5076 = shalt.err (!%p5073_p12)
}
  0x61   : > { %4552 = dma.hbm_to_vmem [thread:$0]  (!%p5294_p13), %s7123_s7, 4096, %s324_s26, [#allocation6], %s5167_s17, %s5167_s17, %s5168_s16  }
  0x62   : > { %p7201_p4 = scmp.ne.s32.totalorder %s7196_s23, 0 }
  0x64   : > { %381 = sbr.rel (%p7201_p4) target bundleno = 2056 (0x808), region = 56 }
  0x6b   : > { %p7202_p1 = scmp.ne.s32.totalorder %s7197_s24, 0 }
  0x6d   : > { %5130 = dma.done.wait (%p7202_p1), [#allocation3], 4096  }
  0x6e   : > { %5132 = vsyncadd (%p7202_p1), [#allocation3], 4294963200 }
  0x6f   : > { %5134 = dma.done.wait (%p7202_p1), [#allocation6], 12288  }
  0x70   : > { %5136 = vsyncadd (%p7202_p1), [#allocation6], 4294955008  ;;  %p447_p8 = scmp.lt.s32.totalorder %s5155_s12, 1  ;;  %v7135_v0 = vmov 2   ;;  %v5171_v1 = vmov 0   ;;  %v5172_v6 = vmov 1   ;;  %v604_v21 = vlaneseq }
  0x71   : > { %4624 = vset.pattern.permute.xlu1 %v7135_v0  ;;  %4623 = vset.pattern.permute.xlu0 %v5171_v1  ;;  %vm922_vm0 = vcmask 31744   ;;  %s443_s25 = sand.u32 1, %s5147_s10   ;;  %s4464_s24 = sshll.u32 %s5155_s12, 11 }
  0x72   : > { %s5381_s23 = scalar_select %p447_p8, %s5155_s12, 1  ;;  %v605_v23 = vshrl.u32 %v604_v21, 7  ;;  %v5473_v55 = vand.u32 127, %v604_v21 }
  0x73   : > { %s4236_s17 = sshll.u32 %s443_s25, 7  ;;  %s7062_s22 = scalar_lea.hbm %s7125_s9, %s4464_s24 }
  0x74   : > { %s4445_s27 = sshll.u32 %s5381_s23, 7  ;;  %s4239_s26 = sshll.u32 %s5381_s23, 2  ;;  %v5445_v25 = vsub.s32 1, %v605_v23  ;;  %v5450_v27 = vsub.s32 0, %v605_v23  ;;  %v774_v32 = vsub.s32 2, %v605_v23 }
  0x75   : > { %s5387_s16 = scalar_lea.vmem %s7116_s0, %s4445_s27  ;;  %s5400_s21 = scalar_lea.vmem %s7119_s3, %s4445_s27 }
  0x76   : > { %v474_v2 = vld [vmem:[%s5387_s16] sm:$0xff]  ;;  %v479_v3 = vld [vmem:[%s5387_s16 + $0x28] sm:$0xff]  ;;  %v480_v5 = vld [vmem:[%s5387_s16 + $0x30] sm:$0xff]  ;;  %s459_s15 = scalar_lea.vmem %s7117_s1, %s4239_s26  ;;  %7203 = vst [vmem:[#allocation18_spill] sm:$0xff] %v5445_v25  ;;  %s4446_s20 = sshll.u32 %s5381_s23, 3 }
  0x77   : > { %709 = vperm.xlu1 %4624, %v474_v2   ;;  %526 = vperm.xlu0 %4623, %v474_v2   ;;  %v475_v4 = vld [vmem:[%s5387_s16 + $0x8] sm:$0xff]  ;;  %v476_v7 = vld [vmem:[%s5387_s16 + $0x10] sm:$0xff]  ;;  %v477_v8 = vld [vmem:[%s5387_s16 + $0x18] sm:$0xff]  ;;  %7204 = vst [vmem:[#allocation19_spill] sm:$0xff] %v5450_v27  ;;  %s464_s29 = scalar_lea.vmem %s7118_s2, %s4446_s20  ;;  %s7070_s18 = scalar_lea.sflag [#allocation4], %s443_s25 }
  0x78   : > { %v481_v9 = vld [vmem:[%s5387_s16 + $0x38] sm:$0xff]  ;;  %v486_v11 = vld [vmem:[%s5387_s16 + $0x60] sm:$0xff]  ;;  %v483_v14 = vld [vmem:[%s5387_s16 + $0x48] sm:$0xff]  ;;  %p7336_p10 = scmp.ne.s32.totalorder %s7192_s19, 0 }
  0x79   : > { %v485_v10 = vld [vmem:[%s5387_s16 + $0x58] sm:$0xff]  ;;  %v478_v12 = vld [vmem:[%s5387_s16 + $0x20] sm:$0xff]  ;;  %v487_v15 = vld [vmem:[%s5387_s16 + $0x68] sm:$0xff] }
  0x7a   : > { %v482_v13 = vld [vmem:[%s5387_s16 + $0x40] sm:$0xff]  ;;  %v488_v16 = vld [vmem:[%s5387_s16 + $0x70] sm:$0xff]  ;;  %v489_v18 = vld [vmem:[%s5387_s16 + $0x78] sm:$0xff] }
  0x7b   : > { %4625 = vset.pattern.permute.xlu1 %v5171_v1  ;;  %551 = vperm.xlu0 %4623, %v479_v3   ;;  %v484_v17 = vld [vmem:[%s5387_s16 + $0x50] sm:$0xff]  ;;  %v490_v28 = vld [vmem:[%s459_s15] sm:$0x7]  ;;  %s7013_s16 = scalar_lea.vmem [#allocation8], %s4236_s17  ;;  %s5174_s15 = smov [#allocation8]  }
  0x7c   : > { %531 = vperm.xlu1 %4625, %v475_v4   ;;  %v5453_v30 = vrot.slane %v490_v28, %v5445_v25  ;;  %v5457_v31 = vrot.slane %v490_v28, %v5450_v27  ;;  %v5460_v36 = vrot.slane %v490_v28, %v774_v32  ;;  %s4073_s11 = sshll.u32 %s7013_s16, 4  ;;  %s5081_s20 = sshll.u32 %s5174_s15, 4  ;;  %s7064_s11 = int_to_ptr.vmem [resolvable:$true] %s4073_s11  ;;  %s5082_s20 = int_to_ptr.vmem [resolvable:$false] %s5081_s20 }
  0x7d   : > { %s5077_s12 = scalar_lea.vmem %s7064_s11, 2048  ;;  %s5083_s28 = scalar_lea.vmem %s5082_s20, 4096 }
  0x7e   : > { %p5078_p13 = scmp.ne.s32.totalorder %s7064_s11, %s5077_s12  ;;  %p5084_p2 = scmp.lt.s32.totalorder %s7064_s11, %s5082_s20 }
  0x7f   : > { %556 = vperm.xlu0 %4623, %v480_v5   ;;  %p5085_p3 = scmp.lt.s32.totalorder %s5083_s28, %s5077_s12 }
  0x80   : > { %4626 = vset.pattern.permute.xlu1 %v5172_v6  ;;  %p5079_p11 = pnand %p5078_p13, %p7336_p10 }
  0x81   : > { %629 = vperm.xlu1 %4626, %v475_v4   ;;  %p5086_p5 = por %p5085_p3, %p5084_p2 }
  0x82   : > { %p5080_p0 = pneg %p5079_p11 }
  0x83   : > { %4635 = vset.pattern.permute.xlu0 %v7135_v0 }
  0x84   : > { %713 = vperm.xlu0 %4635, %v475_v4   ;;  %p5087_p6 = pnand %p5086_p5, %p5080_p0 }
  0x85   : > { %4627 = vset.pattern.permute.xlu1 %v5171_v1 }
  0x86   : > { %536 = vperm.xlu1 %4627, %v476_v7  }
  0x88   : > { %717 = vperm.xlu0 %4635, %v476_v7  }
  0x8a   : > { %4628 = vset.pattern.permute.xlu1 %v5172_v6 }
  0x8b   : > { %633 = vperm.xlu1 %4628, %v476_v7  }
  0x8c   : > { %733 = vperm.xlu0 %4635, %v480_v5  }
  0x8f   : > { %4629 = vset.pattern.permute.xlu1 %v5171_v1 }
  0x90   : > { %541 = vperm.xlu1 %4629, %v477_v8   ;;  %737 = vperm.xlu0 %4635, %v481_v9  }
  0x94   : > { %4630 = vset.pattern.permute.xlu1 %v7135_v0  ;;  %753 = vperm.xlu0 %4635, %v485_v10  }
  0x95   : > { %721 = vperm.xlu1 %4630, %v477_v8  }
  0x98   : > { %757 = vperm.xlu0 %4635, %v486_v11  }
  0x99   : > { %4631 = vset.pattern.permute.xlu1 %v5171_v1 }
  0x9a   : > { %546 = vperm.xlu1 %4631, %v478_v12  }
  0x9c   : > { %4648 = vset.pattern.permute.xlu0 %v5172_v6 }
  0x9d   : > { %625 = vperm.xlu0 %4648, %v474_v2  }
  0x9e   : > { %4632 = vset.pattern.permute.xlu1 %v7135_v0 }
  0x9f   : > { %725 = vperm.xlu1 %4632, %v478_v12  }
  0xa1   : > { %637 = vperm.xlu0 %4648, %v477_v8  }
  0xa3   : > { %4633 = vset.pattern.permute.xlu1 %v5172_v6 }
  0xa4   : > { %645 = vperm.xlu1 %4633, %v479_v3  }
  0xa5   : > { %641 = vperm.xlu0 %4648, %v478_v12  }
  0xa8   : > { %4634 = vset.pattern.permute.xlu1 %v7135_v0 }
  0xa9   : > { %729 = vperm.xlu1 %4634, %v479_v3   ;;  %657 = vperm.xlu0 %4648, %v482_v13  }
  0xad   : > { %4636 = vset.pattern.permute.xlu1 %v5172_v6  ;;  %661 = vperm.xlu0 %4648, %v483_v14  }
  0xae   : > { %649 = vperm.xlu1 %4636, %v480_v5  }
  0xb1   : > { %677 = vperm.xlu0 %4648, %v487_v15  }
  0xb2   : > { %4637 = vset.pattern.permute.xlu1 %v5171_v1 }
  0xb3   : > { %561 = vperm.xlu1 %4637, %v481_v9  }
  0xb5   : > { %681 = vperm.xlu0 %4648, %v488_v16  }
  0xb7   : > { %4638 = vset.pattern.permute.xlu1 %v5172_v6 }
  0xb8   : > { %653 = vperm.xlu1 %4638, %v481_v9  }
  0xb9   : > { %4652 = vset.pattern.permute.xlu0 %v5171_v1 }
  0xba   : > { %576 = vperm.xlu0 %4652, %v484_v17  }
  0xbc   : > { %4639 = vset.pattern.permute.xlu1 %v5171_v1 }
  0xbd   : > { %566 = vperm.xlu1 %4639, %v482_v13  }
  0xbe   : > { %581 = vperm.xlu0 %4652, %v485_v10  }
  0xc1   : > { %4640 = vset.pattern.permute.xlu1 %v7135_v0 }
  0xc2   : > { %741 = vperm.xlu1 %4640, %v482_v13   ;;  %601 = vperm.xlu0 %4652, %v489_v18  }
  0xc6   : > { %4641 = vset.pattern.permute.xlu1 %v5171_v1 }
  0xc7   : > { %571 = vperm.xlu1 %4641, %v483_v14  }
  0xcb   : > { %4642 = vset.pattern.permute.xlu1 %v7135_v0 }
  0xcc   : > { %745 = vperm.xlu1 %4642, %v483_v14  }
  0xd0   : > { %4643 = vset.pattern.permute.xlu1 %v5172_v6 }
  0xd1   : > { %665 = vperm.xlu1 %4643, %v484_v17  }
  0xd5   : > { %4644 = vset.pattern.permute.xlu1 %v7135_v0 }
  0xd6   : > { %749 = vperm.xlu1 %4644, %v484_v17  }
  0xda   : > { %4645 = vset.pattern.permute.xlu1 %v5172_v6 }
  0xdb   : > { %669 = vperm.xlu1 %4645, %v485_v10  }
  0xdf   : > { %4646 = vset.pattern.permute.xlu1 %v5171_v1 }
  0xe0   : > { %586 = vperm.xlu1 %4646, %v486_v11  }
  0xe4   : > { %4647 = vset.pattern.permute.xlu1 %v5172_v6 }
  0xe5   : > { %673 = vperm.xlu1 %4647, %v486_v11  }
  0xe9   : > { %4649 = vset.pattern.permute.xlu1 %v5171_v1 }
  0xea   : > { %591 = vperm.xlu1 %4649, %v487_v15  }
  0xee   : > { %4650 = vset.pattern.permute.xlu1 %v7135_v0 }
  0xef   : > { %761 = vperm.xlu1 %4650, %v487_v15  }
  0xf3   : > { %4651 = vset.pattern.permute.xlu1 %v5171_v1 }
  0xf4   : > { %596 = vperm.xlu1 %4651, %v488_v16  }
  0xf6   : > { %v710_v19 = vpop.permute.xlu1 %709  ;;  %v527_v20 = vpop.permute.xlu0 %526 }
  0xf7   : > { %v608_v61 = vsub.f32 %v527_v20, %v5457_v31  ;;  %v776_v3 = vsub.f32 %v710_v19, %v5460_v36 }
  0xf8   : > { %4653 = vset.pattern.permute.xlu1 %v7135_v0 }
  0xf9   : > { %765 = vperm.xlu1 %4653, %v488_v16   ;;  %v792_v4 = vmul.f32 %v608_v61, %v608_v61  ;;  %v840_v13 = vmul.f32 %v776_v3, %v776_v3 }
  0xfa   : > { %v5440_v22 = vpop.permute.xlu0 %551 }
  0xfb   : > { %v532_v24 = vpop.permute.xlu1 %531 }
  0xfc   : > { %v609_v37 = vsub.f32 %v532_v24, %v5457_v31 }
  0xfd   : > { %4654 = vset.pattern.permute.xlu1 %v5172_v6 }
  0xfe   : > { %685 = vperm.xlu1 %4654, %v489_v18   ;;  %v5448_v26 = vpop.permute.xlu0 %556  ;;  %v793_v42 = vmul.f32 %v609_v37, %v609_v37 }
  0xff   : > { %v614_v61 = vsub.f32 %v5448_v26, %v5457_v31 }
 0x100   : > { %v630_v29 = vpop.permute.xlu1 %629 }
 0x101   : > { %v693_v34 = vsub.f32 %v630_v29, %v5453_v30 }
 0x102   : > { %4655 = vset.pattern.permute.xlu1 %v7135_v0 }
 0x103   : > { %769 = vperm.xlu1 %4655, %v489_v18   ;;  %v714_v33 = vpop.permute.xlu0 %713  ;;  %v809_v39 = vmul.f32 %v693_v34, %v693_v34  ;;  %v613_v18 = vsub.f32 %v5440_v22, %v5457_v31 }
 0x104   : > { %v777_v40 = vsub.f32 %v714_v33, %v5460_v36 }
 0x105   : > { %v537_v35 = vpop.permute.xlu1 %536  ;;  %v825_v44 = vadd.f32 %v809_v39, %v793_v42 }
 0x106   : > { %v841_v45 = vmul.f32 %v777_v40, %v777_v40  ;;  %v610_v50 = vsub.f32 %v537_v35, %v5457_v31 }
 0x107   : > { %v718_v38 = vpop.permute.xlu0 %717 }
 0x108   : > { %v857_v49 = vadd.f32 %v841_v45, %v825_v44  ;;  %v778_v52 = vsub.f32 %v718_v38, %v5460_v36  ;;  %v794_v57 = vmul.f32 %v610_v50, %v610_v50  ;;  %v797_v44 = vmul.f32 %v613_v18, %v613_v18 }
 0x10a   : > { %v634_v41 = vpop.permute.xlu1 %633  ;;  %v891_v56 = vand.u32 4294967292, %v857_v49  ;;  %v842_v59 = vmul.f32 %v778_v52, %v778_v52 }
 0x10b   : > { %v5464_v43 = vpop.permute.xlu0 %733  ;;  %v694_v48 = vsub.f32 %v634_v41, %v5453_v30 }
 0x10c   : > { %v5479_v62 = vor.u32 %v891_v56, %v5473_v55 }
 0x10d   : > { %v810_v53 = vmul.f32 %v694_v48, %v694_v48 }
 0x10e   : > { %v5485_v6 = vsel %vm922_vm0, %v5479_v62, 2147483647 }
 0x10f   : > { %v542_v46 = vpop.permute.xlu1 %541  ;;  %v5466_v47 = vpop.permute.xlu0 %737  ;;  %v826_v60 = vadd.f32 %v810_v53, %v794_v57  ;;  %v940_v12 = vshra.s32 %v5485_v6, 16 }
 0x110   : > { %v611_v8 = vsub.f32 %v542_v46, %v5457_v31 }
 0x111   : > { %v858_v1 = vadd.f32 %v842_v59, %v826_v60  ;;  %v5499_v33 = vcvt.s32.f32 %v940_v12 }
 0x112   : > { %v795_v19 = vmul.f32 %v611_v8, %v611_v8 }
 0x113   : > { %v5470_v51 = vpop.permute.xlu0 %753  ;;  %v892_v10 = vand.u32 4294967292, %v858_v1 }
 0x114   : > { %v722_v54 = vpop.permute.xlu1 %721 }
 0x115   : > { %v779_v14 = vsub.f32 %v722_v54, %v5460_v36  ;;  %v5495_v24 = vor.u32 %v892_v10, %v5473_v55  ;;  %v798_v10 = vmul.f32 %v614_v61, %v614_v61 }
 0x117   : > { %v5475_v58 = vpop.permute.xlu0 %757  ;;  %v843_v34 = vmul.f32 %v779_v14, %v779_v14  ;;  %v5508_v48 = vsel %vm922_vm0, %v5495_v24, 2147483647 }
 0x118   : > { %v955_v1 = vshra.s32 %v5508_v48, 16 }
 0x119   : > { %v547_v63 = vpop.permute.xlu1 %546 }
 0x11a   : > { %v612_v17 = vsub.f32 %v547_v63, %v5457_v31  ;;  %v5535_v12 = vcvt.s32.f32 %v955_v1 }
 0x11c   : > { %v626_v2 = vpop.permute.xlu0 %625  ;;  %v796_v22 = vmul.f32 %v612_v17, %v612_v17 }
 0x11d   : > { %v692_v5 = vsub.f32 %v626_v2, %v5453_v30 }
 0x11e   : > { %v726_v7 = vpop.permute.xlu1 %725 }
 0x11f   : > { %v808_v9 = vmul.f32 %v692_v5, %v692_v5  ;;  %v780_v28 = vsub.f32 %v726_v7, %v5460_v36  ;;  %v782_v7 = vsub.f32 %v5464_v43, %v5460_v36 }
 0x120   : > { %v638_v11 = vpop.permute.xlu0 %637 }
 0x121   : > { %v824_v15 = vadd.f32 %v808_v9, %v792_v4  ;;  %v695_v16 = vsub.f32 %v638_v11, %v5453_v30  ;;  %v844_v45 = vmul.f32 %v780_v28, %v780_v28 }
 0x123   : > { %v856_v20 = vadd.f32 %v840_v13, %v824_v15  ;;  %v811_v21 = vmul.f32 %v695_v16, %v695_v16  ;;  %v646_v23 = vpop.permute.xlu1 %645  ;;  %v846_v15 = vmul.f32 %v782_v7, %v782_v7 }
 0x124   : > { %v697_v29 = vsub.f32 %v646_v23, %v5453_v30  ;;  %v642_v32 = vpop.permute.xlu0 %641 }
 0x125   : > { %v890_v35 = vand.u32 4294967292, %v856_v20  ;;  %v827_v37 = vadd.f32 %v811_v21, %v795_v19  ;;  %v696_v38 = vsub.f32 %v642_v32, %v5453_v30 }
 0x126   : > { %v813_v41 = vmul.f32 %v697_v29, %v697_v29 }
 0x127   : > { %v5503_v39 = vor.u32 %v890_v35, %v5473_v55  ;;  %v859_v40 = vadd.f32 %v843_v34, %v827_v37  ;;  %v812_v42 = vmul.f32 %v696_v38, %v696_v38  ;;  %943 = vmin.xlane.f32.xlu1 %v5499_v33  ;;  %v783_v37 = vsub.f32 %v5466_v47, %v5460_v36 }
 0x128   : > { %v730_v46 = vpop.permute.xlu1 %729  ;;  %v829_v57 = vadd.f32 %v813_v41, %v797_v44  ;;  %v658_v35 = vpop.permute.xlu0 %657 }
 0x129   : > { %v893_v49 = vand.u32 4294967292, %v859_v40  ;;  %v828_v50 = vadd.f32 %v812_v42, %v796_v22  ;;  %v781_v52 = vsub.f32 %v730_v46, %v5460_v36  ;;  %v5513_v53 = vsel %vm922_vm0, %v5503_v39, 2147483647 }
 0x12a   : > { %v925_v54 = vshra.s32 %v5513_v53, 16  ;;  %v847_v46 = vmul.f32 %v783_v37, %v783_v37  ;;  %v700_v47 = vsub.f32 %v658_v35, %v5453_v30 }
 0x12b   : > { %v5517_v56 = vor.u32 %v893_v49, %v5473_v55  ;;  %v860_v59 = vadd.f32 %v844_v45, %v828_v50  ;;  %v845_v60 = vmul.f32 %v781_v52, %v781_v52 }
 0x12c   : > { %v5521_v63 = vcvt.s32.f32 %v925_v54  ;;  %v662_v54 = vpop.permute.xlu0 %661  ;;  %v816_v61 = vmul.f32 %v700_v47, %v700_v47 }
 0x12d   : > { %v894_v2 = vand.u32 4294967292, %v860_v59  ;;  %v861_v3 = vadd.f32 %v845_v60, %v829_v57  ;;  %v650_v4 = vpop.permute.xlu1 %649  ;;  %v5526_v5 = vsel %vm922_vm0, %v5517_v56, 2147483647 }
 0x12e   : > { %v698_v8 = vsub.f32 %v650_v4, %v5453_v30  ;;  %928 = vmin.xlane.f32.xlu0 %v5521_v63  ;;  %v970_v13 = vshra.s32 %v5526_v5, 16 }
 0x12f   : > { %v5533_v26 = vor.u32 %v894_v2, %v5473_v55  ;;  %v895_v9 = vand.u32 4294967292, %v861_v3 }
 0x130   : > { %v814_v11 = vmul.f32 %v698_v8, %v698_v8  ;;  %v5551_v21 = vcvt.s32.f32 %v970_v13  ;;  %v5582_v7 = vpop.permute.xlu0 %677 }
 0x131   : > { %v5539_v14 = vor.u32 %v895_v9, %v5473_v55  ;;  %v5543_v43 = vsel %vm922_vm0, %v5533_v26, 2147483647 }
 0x132   : > { %v830_v16 = vadd.f32 %v814_v11, %v798_v10  ;;  %v562_v17 = vpop.permute.xlu1 %561  ;;  %958 = vmin.xlane.f32.xlu0 %v5535_v12  ;;  %v985_v18 = vshra.s32 %v5543_v43, 16 }
 0x133   : > { %7205 = vst [vmem:[#allocation20_spill] sm:$0xff] %v5539_v14  ;;  %v5549_v19 = vsel %vm922_vm0, %v5539_v14, 2147483647  ;;  %v615_v32 = vsub.f32 %v562_v17, %v5457_v31 }
 0x134   : > { %v862_v20 = vadd.f32 %v846_v15, %v830_v16  ;;  %v5553_v23 = vcvt.s32.f32 %v985_v18  ;;  %v1000_v28 = vshra.s32 %v5549_v19, 16  ;;  %v701_v18 = vsub.f32 %v662_v54, %v5453_v30 }
 0x135   : > { %v799_v41 = vmul.f32 %v615_v32, %v615_v32 }
 0x136   : > { %v896_v29 = vand.u32 4294967292, %v862_v20  ;;  %973 = vmin.xlane.f32.xlu0 %v5551_v21  ;;  %988 = vmin.xlane.f32.xlu1 %v5553_v23  ;;  %v5565_v40 = vcvt.s32.f32 %v1000_v28  ;;  %v5593_v28 = vpop.permute.xlu0 %681  ;;  %v817_v35 = vmul.f32 %v701_v18, %v701_v18 }
 0x137   : > { %v654_v34 = vpop.permute.xlu1 %653 }
 0x138   : > { %v5562_v38 = vor.u32 %v896_v29, %v5473_v55  ;;  %v699_v22 = vsub.f32 %v654_v34, %v5453_v30 }
 0x13a   : > { %7206 = vst [vmem:[#allocation21_spill] sm:$0xff] %v5562_v38  ;;  %v815_v42 = vmul.f32 %v699_v22, %v699_v22  ;;  %1003 = vmin.xlane.f32.xlu0 %v5565_v40  ;;  %v5570_v44 = vsel %vm922_vm0, %v5562_v38, 2147483647 }
 0x13b   : > { %v1015_v45 = vshra.s32 %v5570_v44, 16 }
 0x13c   : > { %v831_v49 = vadd.f32 %v815_v42, %v799_v41  ;;  %v567_v50 = vpop.permute.xlu1 %566  ;;  %v577_v41 = vpop.permute.xlu0 %576 }
 0x13d   : > { %v616_v52 = vsub.f32 %v567_v50, %v5457_v31  ;;  %v5575_v57 = vcvt.s32.f32 %v1015_v45 }
 0x13e   : > { %v863_v59 = vadd.f32 %v847_v46, %v831_v49 }
 0x13f   : > { %1018 = vmin.xlane.f32.xlu1 %v5575_v57  ;;  %v800_v1 = vmul.f32 %v616_v52, %v616_v52  ;;  %v618_v52 = vsub.f32 %v577_v41, %v5457_v31 }
 0x140   : > { %v897_v60 = vand.u32 4294967292, %v863_v59 }
 0x141   : > { %v742_v2 = vpop.permute.xlu1 %741  ;;  %v832_v8 = vadd.f32 %v816_v61, %v800_v1  ;;  %v802_v1 = vmul.f32 %v618_v52, %v618_v52 }
 0x142   : > { %v5579_v3 = vor.u32 %v897_v60, %v5473_v55  ;;  %v784_v4 = vsub.f32 %v742_v2, %v5460_v36  ;;  %v582_v2 = vpop.permute.xlu0 %581 }
 0x144   : > { %7207 = vst [vmem:[#allocation22_spill] sm:$0xff] %v5579_v3  ;;  %v848_v9 = vmul.f32 %v784_v4, %v784_v4  ;;  %v5586_v10 = vsel %vm922_vm0, %v5579_v3, 2147483647 }
 0x145   : > { %v1030_v11 = vshra.s32 %v5586_v10, 16 }
 0x146   : > { %v864_v13 = vadd.f32 %v848_v9, %v832_v8  ;;  %v572_v15 = vpop.permute.xlu1 %571 }
 0x147   : > { %v617_v16 = vsub.f32 %v572_v15, %v5457_v31  ;;  %v5590_v17 = vcvt.s32.f32 %v1030_v11  ;;  %v619_v11 = vsub.f32 %v582_v2, %v5457_v31 }
 0x148   : > { %v898_v20 = vand.u32 4294967292, %v864_v13 }
 0x149   : > { %1033 = vmin.xlane.f32.xlu0 %v5590_v17  ;;  %v801_v32 = vmul.f32 %v617_v16, %v617_v16 }
 0x14a   : > { %v5597_v29 = vor.u32 %v898_v20, %v5473_v55 }
 0x14b   : > { %v746_v34 = vpop.permute.xlu1 %745  ;;  %v833_v45 = vadd.f32 %v817_v35, %v801_v32 }
 0x14c   : > { %7208 = vst [vmem:[#allocation23_spill] sm:$0xff] %v5597_v29  ;;  %v785_v37 = vsub.f32 %v746_v34, %v5460_v36  ;;  %v5602_v22 = vsel %vm922_vm0, %v5597_v29, 2147483647  ;;  %v787_v34 = vsub.f32 %v5470_v51, %v5460_v36 }
 0x14d   : > { %v1045_v42 = vshra.s32 %v5602_v22, 16 }
 0x14e   : > { %v849_v46 = vmul.f32 %v785_v37, %v785_v37  ;;  %v803_v37 = vmul.f32 %v619_v11, %v619_v11 }
 0x14f   : > { %v5605_v49 = vcvt.s32.f32 %v1045_v42 }
 0x150   : > { %v865_v47 = vadd.f32 %v849_v46, %v833_v45  ;;  %v666_v50 = vpop.permute.xlu1 %665  ;;  %v851_v46 = vmul.f32 %v787_v34, %v787_v34 }
 0x151   : > { %v702_v54 = vsub.f32 %v666_v50, %v5453_v30  ;;  %1048 = vmin.xlane.f32.xlu1 %v5605_v49 }
 0x152   : > { %v899_v59 = vand.u32 4294967292, %v865_v47 }
 0x153   : > { %v818_v61 = vmul.f32 %v702_v54, %v702_v54 }
 0x154   : > { %v5611_v60 = vor.u32 %v899_v59, %v5473_v55 }
 0x155   : > { %v750_v4 = vpop.permute.xlu1 %749  ;;  %v834_v15 = vadd.f32 %v818_v61, %v802_v1 }
 0x156   : > { %7209 = vst [vmem:[#allocation24_spill] sm:$0xff] %v5611_v60  ;;  %v786_v8 = vsub.f32 %v750_v4, %v5460_v36  ;;  %v5616_v9 = vsel %vm922_vm0, %v5611_v60, 2147483647  ;;  %v788_v4 = vsub.f32 %v5475_v58, %v5460_v36 }
 0x157   : > { %v1060_v13 = vshra.s32 %v5616_v9, 16 }
 0x158   : > { %v850_v16 = vmul.f32 %v786_v8, %v786_v8 }
 0x159   : > { %v5620_v18 = vcvt.s32.f32 %v1060_v13 }
 0x15a   : > { %v866_v20 = vadd.f32 %v850_v16, %v834_v15  ;;  %v670_v32 = vpop.permute.xlu1 %669 }
 0x15b   : > { %v703_v35 = vsub.f32 %v670_v32, %v5453_v30  ;;  %1063 = vmin.xlane.f32.xlu0 %v5620_v18  ;;  %v852_v32 = vmul.f32 %v788_v4, %v788_v4 }
 0x15c   : > { %v900_v41 = vand.u32 4294967292, %v866_v20 }
 0x15d   : > { %v819_v42 = vmul.f32 %v703_v35, %v703_v35 }
 0x15e   : > { %v5627_v45 = vor.u32 %v900_v41, %v5473_v55  ;;  %v705_v41 = vsub.f32 %v5582_v7, %v5453_v30 }
 0x15f   : > { %v835_v47 = vadd.f32 %v819_v42, %v803_v37  ;;  %v587_v50 = vpop.permute.xlu1 %586 }
 0x160   : > { %7210 = vst [vmem:[#allocation25_spill] sm:$0xff] %v5627_v45  ;;  %v5631_v52 = vsel %vm922_vm0, %v5627_v45, 2147483647  ;;  %v620_v61 = vsub.f32 %v587_v50, %v5457_v31 }
 0x161   : > { %v867_v54 = vadd.f32 %v851_v46, %v835_v47  ;;  %v1075_v51 = vshra.s32 %v5631_v52, 16 }
 0x162   : > { %v804_v13 = vmul.f32 %v620_v61, %v620_v61 }
 0x163   : > { %v901_v59 = vand.u32 4294967292, %v867_v54  ;;  %v5635_v1 = vcvt.s32.f32 %v1075_v51  ;;  %v821_v54 = vmul.f32 %v705_v41, %v705_v41 }
 0x164   : > { %v674_v2 = vpop.permute.xlu1 %673 }
 0x165   : > { %v5640_v8 = vor.u32 %v901_v59, %v5473_v55  ;;  %v704_v11 = vsub.f32 %v674_v2, %v5453_v30  ;;  %1078 = vmin.xlane.f32.xlu1 %v5635_v1 }
 0x167   : > { %7211 = vst [vmem:[#allocation26_spill] sm:$0xff] %v5640_v8  ;;  %v820_v15 = vmul.f32 %v704_v11, %v704_v11  ;;  %v5646_v16 = vsel %vm922_vm0, %v5640_v8, 2147483647 }
 0x168   : > { %v1090_v20 = vshra.s32 %v5646_v16, 16 }
 0x169   : > { %v836_v34 = vadd.f32 %v820_v15, %v804_v13  ;;  %v592_v35 = vpop.permute.xlu1 %591 }
 0x16a   : > { %v621_v58 = vsub.f32 %v592_v35, %v5457_v31  ;;  %v5650_v37 = vcvt.s32.f32 %v1090_v20 }
 0x16b   : > { %v868_v42 = vadd.f32 %v852_v32, %v836_v34  ;;  %v706_v32 = vsub.f32 %v5593_v28, %v5453_v30  ;;  %v602_v28 = vpop.permute.xlu0 %601 }
 0x16c   : > { %1093 = vmin.xlane.f32.xlu0 %v5650_v37  ;;  %v805_v47 = vmul.f32 %v621_v58, %v621_v58 }
 0x16d   : > { %v902_v46 = vand.u32 4294967292, %v868_v42  ;;  %v822_v42 = vmul.f32 %v706_v32, %v706_v32 }
 0x16e   : > { %v762_v50 = vpop.permute.xlu1 %761  ;;  %v837_v61 = vadd.f32 %v821_v54, %v805_v47 }
 0x16f   : > { %v5656_v51 = vor.u32 %v902_v46, %v5473_v55  ;;  %v789_v59 = vsub.f32 %v762_v50, %v5460_v36 }
 0x171   : > { %7212 = vst [vmem:[#allocation27_spill] sm:$0xff] %v5656_v51  ;;  %v853_v2 = vmul.f32 %v789_v59, %v789_v59  ;;  %v5661_v4 = vsel %vm922_vm0, %v5656_v51, 2147483647 }
 0x172   : > { %v1105_v7 = vshra.s32 %v5661_v4, 16 }
 0x173   : > { %v869_v11 = vadd.f32 %v853_v2, %v837_v61  ;;  %v597_v13 = vpop.permute.xlu1 %596 }
 0x174   : > { %v622_v15 = vsub.f32 %v597_v13, %v5457_v31  ;;  %v5665_v20 = vcvt.s32.f32 %v1105_v7  ;;  %v623_v13 = vsub.f32 %v602_v28, %v5457_v31 }
 0x175   : > { %v903_v34 = vand.u32 4294967292, %v869_v11 }
 0x176   : > { %1108 = vmin.xlane.f32.xlu1 %v5665_v20  ;;  %v806_v58 = vmul.f32 %v622_v15, %v622_v15  ;;  %v807_v0 = vmul.f32 %v623_v13, %v623_v13 }
 0x177   : > { %v5671_v35 = vor.u32 %v903_v34, %v5473_v55 }
 0x178   : > { %v766_v41 = vpop.permute.xlu1 %765  ;;  %v838_v54 = vadd.f32 %v822_v42, %v806_v58 }
 0x179   : > { %7213 = vst [vmem:[#allocation28_spill] sm:$0xff] %v5671_v35  ;;  %v790_v46 = vsub.f32 %v766_v41, %v5460_v36  ;;  %v5676_v47 = vsel %vm922_vm0, %v5671_v35, 2147483647 }
 0x17a   : > { %v1120_v50 = vshra.s32 %v5676_v47, 16 }
 0x17b   : > { %v854_v59 = vmul.f32 %v790_v46, %v790_v46 }
 0x17c   : > { %v5679_v61 = vcvt.s32.f32 %v1120_v50 }
 0x17d   : > { %v870_v2 = vadd.f32 %v854_v59, %v838_v54  ;;  %v686_v7 = vpop.permute.xlu1 %685 }
 0x17e   : > { %v707_v11 = vsub.f32 %v686_v7, %v5453_v30  ;;  %1123 = vmin.xlane.f32.xlu0 %v5679_v61 }
 0x17f   : > { %v904_v15 = vand.u32 4294967292, %v870_v2 }
 0x180   : > { %v823_v34 = vmul.f32 %v707_v11, %v707_v11 }
 0x181   : > { %v5685_v32 = vor.u32 %v904_v15, %v5473_v55  ;;  %v924_v15 = vand.u32 65535, %v5513_v53 }
 0x182   : > { %v770_v41 = vpop.permute.xlu1 %769  ;;  %v839_v30 = vadd.f32 %v823_v34, %v807_v0  ;;  %v939_v0 = vand.u32 65535, %v5485_v6 }
 0x183   : > { %v791_v58 = vsub.f32 %v770_v41, %v5460_v36  ;;  %v5690_v42 = vsel %vm922_vm0, %v5685_v32, 2147483647  ;;  %v926_v41 = vcvt.s32.f32 %v924_v15  ;;  %v1029_v15 = vand.u32 65535, %v5586_v10 }
 0x184   : > { %v1135_v46 = vshra.s32 %v5690_v42, 16  ;;  %v941_v13 = vcvt.s32.f32 %v939_v0  ;;  %v1059_v10 = vand.u32 65535, %v5616_v9  ;;  %v1089_v9 = vand.u32 65535, %v5646_v16 }
 0x185   : > { %v855_v50 = vmul.f32 %v791_v58, %v791_v58  ;;  %v954_v58 = vand.u32 65535, %v5508_v48  ;;  %v1119_v16 = vand.u32 65535, %v5676_v47 }
 0x186   : > { %v5693_v54 = vcvt.s32.f32 %v1135_v46 }
 0x187   : > { %v871_v31 = vadd.f32 %v855_v50, %v839_v30  ;;  %v956_v30 = vcvt.s32.f32 %v954_v58  ;;  %v984_v50 = vand.u32 65535, %v5543_v43  ;;  %v1031_v58 = vcvt.s32.f32 %v1029_v15 }
 0x188   : > { %1138 = vmin.xlane.f32.xlu1 %v5693_v54 }
 0x189   : > { %v905_v59 = vand.u32 4294967292, %v871_v31 }
 0x18b   : > { %v5697_v28 = vor.u32 %v905_v59, %v5473_v55  ;;  %v986_v59 = vcvt.s32.f32 %v984_v50 }
 0x18d   : > { %7214 = vst [vmem:[#allocation29_spill] sm:$0xff] %v5697_v28  ;;  %v5701_v36 = vsel %vm922_vm0, %v5697_v28, 2147483647 }
 0x18e   : > { %v1150_v2 = vshra.s32 %v5701_v36, 16  ;;  %v1149_v47 = vand.u32 65535, %v5701_v36 }
 0x190   : > { %v5704_v7 = vcvt.s32.f32 %v1150_v2  ;;  %v999_v2 = vand.u32 65535, %v5549_v19  ;;  %v1151_v15 = vcvt.s32.f32 %v1149_v47 }
 0x192   : > { %1153 = vmin.xlane.f32.xlu0 %v5704_v7  ;;  %v1001_v0 = vcvt.s32.f32 %v999_v2  ;;  %v1091_v2 = vcvt.s32.f32 %v1089_v9 }
 0x1b4   : > { %v5708_v11 = vpop.xlane.xlu1 %943 }
 0x1b5   : > { %vm945_vm1 = vcmp.eq.f32.partialorder %v5499_v33, %v5708_v11  ;;  %v969_v33 = vand.u32 65535, %v5526_v5 }
 0x1b6   : > { %v946_v55 = vsel %vm945_vm1, %v941_v13, inf  ;;  %v1014_v13 = vand.u32 65535, %v5570_v44  ;;  %v1044_v44 = vand.u32 65535, %v5602_v22  ;;  %v1074_v22 = vand.u32 65535, %v5631_v52 }
 0x1b7   : > { %947 = vmin.xlane.f32.xlu0 %v946_v55  ;;  %v1104_v52 = vand.u32 65535, %v5661_v4  ;;  %v1134_v4 = vand.u32 65535, %v5690_v42  ;;  %v950_v42 = vcvt.f32.s32 %v5708_v11 }
 0x1bb   : > { %v5713_v34 = vpop.xlane.xlu0 %928 }
 0x1bc   : > { %vm930_vm2 = vcmp.eq.f32.partialorder %v5521_v63, %v5713_v34  ;;  %v971_v63 = vcvt.s32.f32 %v969_v33  ;;  %v1061_v33 = vcvt.s32.f32 %v1059_v10 }
 0x1bd   : > { %v931_v46 = vsel %vm930_vm2, %v926_v41, inf }
 0x1be   : > { %932 = vmin.xlane.f32.xlu1 %v931_v46 }
 0x1bf   : > { %v5718_v6 = vpop.xlane.xlu0 %958 }
 0x1c0   : > { %vm960_vm3 = vcmp.eq.f32.partialorder %v5535_v12, %v5718_v6 }
 0x1c1   : > { %v961_v53 = vsel %vm960_vm3, %v956_v30, inf  ;;  %v1046_v30 = vcvt.s32.f32 %v1044_v44 }
 0x1c2   : > { %962 = vmin.xlane.f32.xlu1 %v961_v53 }
 0x1c3   : > { %v5724_v31 = vpop.xlane.xlu1 %988  ;;  %v5726_v48 = vpop.xlane.xlu0 %973 }
 0x1c4   : > { %vm990_vm4 = vcmp.eq.f32.partialorder %v5553_v23, %v5724_v31  ;;  %vm975_vm5 = vcmp.eq.f32.partialorder %v5551_v21, %v5726_v48  ;;  %v1016_v23 = vcvt.s32.f32 %v1014_v13  ;;  %v1121_v13 = vcvt.s32.f32 %v1119_v16 }
 0x1c5   : > { %v991_v5 = vsel %vm990_vm4, %v986_v59, inf  ;;  %v976_v43 = vsel %vm975_vm5, %v971_v63, inf  ;;  %v1076_v59 = vcvt.s32.f32 %v1074_v22  ;;  %v995_v9 = vcvt.f32.s32 %v5724_v31 }
 0x1c6   : > { %992 = vmin.xlane.f32.xlu1 %v991_v5  ;;  %977 = vmin.xlane.f32.xlu0 %v976_v43  ;;  %v1106_v43 = vcvt.s32.f32 %v1104_v52 }
 0x1c7   : > { %v5733_v12 = vpop.xlane.xlu0 %1003 }
 0x1c8   : > { %vm1005_vm6 = vcmp.eq.f32.partialorder %v5565_v40, %v5733_v12 }
 0x1c9   : > { %v1006_v55 = vsel %vm1005_vm6, %v1001_v0, inf }
 0x1ca   : > { %1007 = vmin.xlane.f32.xlu0 %v1006_v55 }
 0x1cc   : > { %v5738_v19 = vpop.xlane.xlu1 %1018 }
 0x1cd   : > { %vm1020_vm7 = vcmp.eq.f32.partialorder %v5575_v57, %v5738_v19 }
 0x1ce   : > { %v1021_v21 = vsel %vm1020_vm7, %v1016_v23, inf  ;;  %v1136_v23 = vcvt.s32.f32 %v1134_v4  ;;  %v1010_v4 = vcvt.f32.s32 %v5733_v12 }
 0x1cf   : > { %1022 = vmin.xlane.f32.xlu1 %v1021_v21 }
 0x1d6   : > { %v5743_v41 = vpop.xlane.xlu0 %1033 }
 0x1d7   : > { %vm1035_vm8 = vcmp.eq.f32.partialorder %v5590_v17, %v5743_v41 }
 0x1d8   : > { %v1036_v40 = vsel %vm1035_vm8, %v1031_v58, inf }
 0x1d9   : > { %1037 = vmin.xlane.f32.xlu0 %v1036_v40  ;;  %v951_v40 = vshll.u32 %v950_v42, 16 }
 0x1de   : > { %v5748_v46 = vpop.xlane.xlu1 %1048 }
 0x1df   : > { %vm1050_vm9 = vcmp.eq.f32.partialorder %v5605_v49, %v5748_v46 }
 0x1e0   : > { %v1051_v57 = vsel %vm1050_vm9, %v1046_v30, inf }
 0x1e1   : > { %1052 = vmin.xlane.f32.xlu1 %v1051_v57 }
 0x1e8   : > { %v5753_v50 = vpop.xlane.xlu0 %1063 }
 0x1e9   : > { %vm1065_vm10 = vcmp.eq.f32.partialorder %v5620_v18, %v5753_v50 }
 0x1ea   : > { %v1066_v17 = vsel %vm1065_vm10, %v1061_v33, inf }
 0x1eb   : > { %1067 = vmin.xlane.f32.xlu0 %v1066_v17  ;;  %v965_v17 = vcvt.f32.s32 %v5718_v6  ;;  %v980_v6 = vcvt.f32.s32 %v5726_v48 }
 0x1f2   : > { %v5758_v53 = vpop.xlane.xlu1 %1078 }
 0x1f3   : > { %vm1080_vm11 = vcmp.eq.f32.partialorder %v5635_v1, %v5758_v53 }
 0x1f4   : > { %v1081_v49 = vsel %vm1080_vm11, %v1076_v59, inf }
 0x1f5   : > { %1082 = vmin.xlane.f32.xlu1 %v1081_v49 }
 0x1f9   : > { %v5763_v63 = vpop.xlane.xlu0 %1093 }
 0x1fa   : > { %vm1095_vm12 = vcmp.eq.f32.partialorder %v5650_v37, %v5763_v63 }
 0x1fb   : > { %v1096_v18 = vsel %vm1095_vm12, %v1091_v2, inf }
 0x1fc   : > { %1097 = vmin.xlane.f32.xlu0 %v1096_v18  ;;  %v966_v18 = vshll.u32 %v965_v17, 16 }
 0x203   : > { %v5768_v5 = vpop.xlane.xlu1 %1108 }
 0x204   : > { %vm1110_vm13 = vcmp.eq.f32.partialorder %v5665_v20, %v5768_v5 }
 0x205   : > { %v1111_v1 = vsel %vm1110_vm13, %v1106_v43, inf }
 0x206   : > { %1112 = vmin.xlane.f32.xlu1 %v1111_v1 }
 0x20b   : > { %v5773_v0 = vpop.xlane.xlu0 %1123 }
 0x20c   : > { %vm1125_vm14 = vcmp.eq.f32.partialorder %v5679_v61, %v5773_v0 }
 0x20d   : > { %v1126_v37 = vsel %vm1125_vm14, %v1121_v13, inf }
 0x20e   : > { %1127 = vmin.xlane.f32.xlu0 %v1126_v37  ;;  %v996_v37 = vshll.u32 %v995_v9, 16 }
 0x215   : > { %v5778_v55 = vpop.xlane.xlu1 %1138 }
 0x216   : > { %vm1140_vm15 = vcmp.eq.f32.partialorder %v5693_v54, %v5778_v55  ;;  %v935_v54 = vcvt.f32.s32 %v5713_v34 }
 0x217   : > { %v1141_v20 = vsel %vm1140_vm15, %v1136_v23, inf }
 0x218   : > { %1142 = vmin.xlane.f32.xlu1 %v1141_v20  ;;  %v936_v11 = vshll.u32 %v935_v54, 16 }
 0x21f   : > { %v5783_v21 = vpop.xlane.xlu0 %1153 }
 0x220   : > { %vm1155_vm1 = vcmp.eq.f32.partialorder %v5704_v7, %v5783_v21 }
 0x221   : > { %v1156_v61 = vsel %vm1155_vm1, %v1151_v15, inf }
 0x222   : > { %1157 = vmin.xlane.f32.xlu0 %v1156_v61  ;;  %v981_v61 = vshll.u32 %v980_v6, 16 }
 0x244   : > { %v948_v58 = vpop.xlane.xlu0 %947 }
 0x245   : > { %v949_v44 = vcvt.f32.s32 %v948_v58 }
 0x247   : > { %v952_v30 = vadd.s32 %v951_v40, %v949_v44 }
 0x249   : > { %vm1164_vm2 = vcmp.eq.s32.totalorder %v5479_v62, %v952_v30  ;;  %v1708_v57 = vand.u32 4294967292, %v952_v30 }
 0x24a   : > { %v5793_v36 = vsel %vm1164_vm2, 2147483647, %v5479_v62 }
 0x24b   : > { %v1740_v10 = vadd.f32 1e-08, %v1708_v57  ;;  %v933_v7 = vpop.xlane.xlu1 %932  ;;  %v5797_v33 = vsel %vm922_vm0, %v5793_v36, 2147483647 }
 0x24c   : > { %v934_v22 = vcvt.f32.s32 %v933_v7  ;;  %v1212_v34 = vshra.s32 %v5797_v33, 16  ;;  %v1025_v7 = vcvt.f32.s32 %v5738_v19 }
 0x24d   : > { %4865 = vrcp.f32 %v1740_v10  ;;  %v1011_v10 = vshll.u32 %v1010_v4, 16 }
 0x24e   : > { %v5801_v59 = vadd.s32 %v936_v11, %v934_v22  ;;  %v5803_v49 = vcvt.s32.f32 %v1212_v34 }
 0x24f   : > { %v963_v2 = vpop.xlane.xlu1 %962 }
 0x250   : > { %vm1163_vm3 = vcmp.eq.s32.totalorder %v5503_v39, %v5801_v59  ;;  %v1707_v52 = vand.u32 4294967292, %v5801_v59  ;;  %v964_v43 = vcvt.f32.s32 %v963_v2  ;;  %1215 = vmin.xlane.f32.xlu0 %v5803_v49 }
 0x251   : > { %v5815_v1 = vsel %vm1163_vm3, 2147483647, %v5503_v39 }
 0x252   : > { %v1739_v16 = vadd.f32 1e-08, %v1707_v52  ;;  %v5817_v31 = vadd.s32 %v966_v18, %v964_v43  ;;  %v5821_v13 = vsel %vm922_vm0, %v5815_v1, 2147483647 }
 0x253   : > { %v993_v23 = vpop.xlane.xlu1 %992  ;;  %v978_v20 = vpop.xlane.xlu0 %977  ;;  %v1197_v48 = vshra.s32 %v5821_v13, 16 }
 0x254   : > { %4867 = vrcp.f32 %v1739_v16  ;;  %vm1165_vm4 = vcmp.eq.s32.totalorder %v5495_v24, %v5817_v31  ;;  %v1709_v47 = vand.u32 4294967292, %v5817_v31  ;;  %v994_v15 = vcvt.f32.s32 %v993_v23 }
 0x255   : > { %v979_v42 = vcvt.f32.s32 %v978_v20  ;;  %v5828_v58 = vcvt.s32.f32 %v1197_v48  ;;  %v5834_v12 = vsel %vm1165_vm4, 2147483647, %v5495_v24  ;;  %v1026_v23 = vshll.u32 %v1025_v7, 16 }
 0x256   : > { %v1741_v40 = vadd.f32 1e-08, %v1709_v47  ;;  %v5836_v44 = vadd.s32 %v996_v37, %v994_v15  ;;  %v5840_v54 = vsel %vm922_vm0, %v5834_v12, 2147483647 }
 0x257   : > { %v5842_v57 = vpop.eup %4865  ;;  %v982_v11 = vadd.s32 %v981_v61, %v979_v42  ;;  %1200 = vmin.xlane.f32.xlu1 %v5828_v58  ;;  %v1008_v17 = vpop.xlane.xlu0 %1007  ;;  %v1227_v22 = vshra.s32 %v5840_v54, 16 }
 0x258   : > { %v5850_v34 = vsel %vm1164_vm2, %v5842_v57, 0.0  ;;  %4869 = vrcp.f32 %v1741_v40  ;;  %vm1167_vm5 = vcmp.eq.s32.totalorder %v5533_v26, %v5836_v44  ;;  %v1711_v9 = vand.u32 4294967292, %v5836_v44 }
 0x259   : > { %vm1166_vm6 = vcmp.eq.s32.totalorder %v5517_v56, %v982_v11  ;;  %v1710_v19 = vand.u32 4294967292, %v982_v11  ;;  %v1009_v2 = vcvt.f32.s32 %v1008_v17  ;;  %v5856_v18 = vcvt.s32.f32 %v1227_v22 }
 0x25a   : > { %v1743_v52 = vadd.f32 1e-08, %v1711_v9  ;;  %v5862_v30 = vsel %vm1167_vm5, 2147483647, %v5533_v26  ;;  %v5867_v43 = vsel %vm1166_vm6, 2147483647, %v5517_v56 }
 0x25b   : > { %v1742_v6 = vadd.f32 1e-08, %v1710_v19  ;;  %v1012_v16 = vadd.s32 %v1011_v10, %v1009_v2  ;;  %1230 = vmin.xlane.f32.xlu1 %v5856_v18  ;;  %v5872_v37 = vsel %vm922_vm0, %v5862_v30, 2147483647  ;;  %v5876_v4 = vsel %vm922_vm0, %v5867_v43, 2147483647 }
 0x25c   : > { %4871 = vrcp.f32 %v1743_v52  ;;  %v1023_v20 = vpop.xlane.xlu1 %1022  ;;  %v1257_v48 = vshra.s32 %v5872_v37, 16  ;;  %v1242_v47 = vshra.s32 %v5876_v4, 16 }
 0x25d   : > { %4873 = vrcp.f32 %v1742_v6  ;;  %vm1168_vm7 = vcmp.eq.s32.totalorder %v5539_v14, %v1012_v16  ;;  %v1712_v15 = vand.u32 4294967292, %v1012_v16  ;;  %v1024_v61 = vcvt.f32.s32 %v1023_v20 }
 0x25e   : > { %v5881_v42 = vpop.eup %4867  ;;  %v5883_v40 = vcvt.s32.f32 %v1257_v48  ;;  %v5885_v10 = vcvt.s32.f32 %v1242_v47  ;;  %v5890_v7 = vsel %vm1168_vm7, 2147483647, %v5539_v14  ;;  %v1040_v20 = vcvt.f32.s32 %v5743_v41 }
 0x25f   : > { %v5896_v17 = vsel %vm1163_vm3, %v5881_v42, 0.0  ;;  %v1744_v22 = vadd.f32 1e-08, %v1712_v15  ;;  %v1027_v9 = vadd.s32 %v1026_v23, %v1024_v61  ;;  %v5900_v19 = vsel %vm922_vm0, %v5890_v7, 2147483647 }
 0x260   : > { %1260 = vmin.xlane.f32.xlu1 %v5883_v40  ;;  %1245 = vmin.xlane.f32.xlu0 %v5885_v10  ;;  %v1272_v2 = vshra.s32 %v5900_v19, 16  ;;  %v1041_v31 = vshll.u32 %v1040_v20, 16 }
 0x261   : > { %4875 = vrcp.f32 %v1744_v22  ;;  %vm1169_vm8 = vcmp.eq.s32.totalorder %v5562_v38, %v1027_v9  ;;  %v1713_v52 = vand.u32 4294967292, %v1027_v9 }
 0x262   : > { %v5906_v6 = vpop.eup %4869  ;;  %v5908_v59 = vcvt.s32.f32 %v1272_v2  ;;  %v5913_v23 = vsel %vm1169_vm8, 2147483647, %v5562_v38 }
 0x263   : > { %7215 = vst [vmem:[#allocation30_spill] sm:$0xff] %v5906_v6  ;;  %v5920_v48 = vsel %vm1165_vm4, %v5906_v6, 0.0  ;;  %v1745_v47 = vadd.f32 1e-08, %v1713_v52  ;;  %v5924_v15 = vsel %vm922_vm0, %v5913_v23, 2147483647  ;;  %v1055_v6 = vcvt.f32.s32 %v5748_v46 }
 0x264   : > { %7216 = vst [vmem:[#allocation31_spill] sm:$0xff] %v5920_v48  ;;  %1275 = vmin.xlane.f32.xlu0 %v5908_v59  ;;  %v1287_v61 = vshra.s32 %v5924_v15, 16 }
 0x265   : > { %4877 = vrcp.f32 %v1745_v47 }
 0x266   : > { %v5928_v22 = vpop.eup %4871  ;;  %v1038_v2 = vpop.xlane.xlu0 %1037  ;;  %v5930_v41 = vcvt.s32.f32 %v1287_v61 }
 0x267   : > { %v5932_v25 = vpop.eup %4873  ;;  %v5938_v52 = vsel %vm1167_vm5, %v5928_v22, 0.0  ;;  %v1039_v27 = vcvt.f32.s32 %v1038_v2 }
 0x268   : > { %7217 = vst [vmem:[#allocation32_spill] sm:$0xff] %v5932_v25  ;;  %v5943_v48 = vsel %vm1166_vm6, %v5932_v25, 0.0  ;;  %1290 = vmin.xlane.f32.xlu1 %v5930_v41  ;;  %v1056_v25 = vshll.u32 %v1055_v6, 16  ;;  %v1070_v6 = vcvt.f32.s32 %v5753_v50 }
 0x269   : > { %7218 = vst [vmem:[#allocation33_spill] sm:$0xff] %v5943_v48  ;;  %v1042_v47 = vadd.s32 %v1041_v31, %v1039_v27 }
 0x26b   : > { %v5946_v61 = vpop.eup %4875  ;;  %vm1170_vm9 = vcmp.eq.s32.totalorder %v5579_v3, %v1042_v47  ;;  %v1714_v20 = vand.u32 4294967292, %v1042_v47 }
 0x26c   : > { %7219 = vst [vmem:[#allocation34_spill] sm:$0xff] %v5946_v61  ;;  %v5953_v44 = vsel %vm1168_vm7, %v5946_v61, 0.0  ;;  %v5958_v11 = vsel %vm1170_vm9, 2147483647, %v5579_v3 }
 0x26d   : > { %7220 = vst [vmem:[#allocation35_spill] sm:$0xff] %v5953_v44  ;;  %7221 = vst [vmem:[#allocation36_spill] sm:$0xff] %v5958_v11  ;;  %v1746_v2 = vadd.f32 1e-08, %v1714_v20  ;;  %v5962_v27 = vsel %vm922_vm0, %v5958_v11, 2147483647 }
 0x26e   : > { %v1053_v31 = vpop.xlane.xlu1 %1052  ;;  %v1302_v46 = vshra.s32 %v5962_v27, 16 }
 0x26f   : > { %v5965_v48 = vpop.eup %4877  ;;  %4879 = vrcp.f32 %v1746_v2  ;;  %v1054_v16 = vcvt.f32.s32 %v1053_v31 }
 0x270   : > { %7222 = vst [vmem:[#allocation37_spill] sm:$0xff] %v5965_v48  ;;  %v5970_v44 = vsel %vm1169_vm8, %v5965_v48, 0.0  ;;  %v5972_v61 = vcvt.s32.f32 %v1302_v46 }
 0x271   : > { %7223 = vst [vmem:[#allocation38_spill] sm:$0xff] %v5970_v44  ;;  %v1057_v20 = vadd.s32 %v1056_v25, %v1054_v16  ;;  %v1071_v44 = vshll.u32 %v1070_v6, 16 }
 0x272   : > { %1305 = vmin.xlane.f32.xlu0 %v5972_v61 }
 0x273   : > { %vm1171_vm10 = vcmp.eq.s32.totalorder %v5597_v29, %v1057_v20  ;;  %v1715_v14 = vand.u32 4294967292, %v1057_v20 }
 0x274   : > { %v5979_v11 = vsel %vm1171_vm10, 2147483647, %v5597_v29 }
 0x275   : > { %7224 = vst [vmem:[#allocation39_spill] sm:$0xff] %v5979_v11  ;;  %v1747_v2 = vadd.f32 1e-08, %v1715_v14  ;;  %v5984_v9 = vsel %vm922_vm0, %v5979_v11, 2147483647 }
 0x276   : > { %v1317_v31 = vshra.s32 %v5984_v9, 16 }
 0x277   : > { %4881 = vrcp.f32 %v1747_v2 }
 0x278   : > { %v1068_v25 = vpop.xlane.xlu0 %1067  ;;  %v5987_v46 = vcvt.s32.f32 %v1317_v31  ;;  %v1085_v31 = vcvt.f32.s32 %v5758_v53 }
 0x279   : > { %v5989_v16 = vpop.eup %4879  ;;  %v1069_v48 = vcvt.f32.s32 %v1068_v25 }
 0x27a   : > { %7225 = vst [vmem:[#allocation40_spill] sm:$0xff] %v5989_v16  ;;  %v5994_v38 = vsel %vm1170_vm9, %v5989_v16, 0.0  ;;  %1320 = vmin.xlane.f32.xlu1 %v5987_v46  ;;  %v1086_v3 = vshll.u32 %v1085_v31, 16 }
 0x27b   : > { %7226 = vst [vmem:[#allocation41_spill] sm:$0xff] %v5994_v38  ;;  %v1072_v14 = vadd.s32 %v1071_v44, %v1069_v48 }
 0x27d   : > { %vm1172_vm11 = vcmp.eq.s32.totalorder %v5611_v60, %v1072_v14  ;;  %v1716_v50 = vand.u32 4294967292, %v1072_v14 }
 0x27e   : > { %v6001_v2 = vsel %vm1172_vm11, 2147483647, %v5611_v60 }
 0x27f   : > { %7227 = vst [vmem:[#allocation42_spill] sm:$0xff] %v6001_v2  ;;  %v1748_v6 = vadd.f32 1e-08, %v1716_v50  ;;  %v6006_v25 = vsel %vm922_vm0, %v6001_v2, 2147483647  ;;  %v1100_v2 = vcvt.f32.s32 %v5763_v63 }
 0x280   : > { %v1332_v47 = vshra.s32 %v6006_v25, 16 }
 0x281   : > { %v6009_v38 = vpop.eup %4881  ;;  %4883 = vrcp.f32 %v1748_v6  ;;  %v1101_v31 = vshll.u32 %v1100_v2, 16 }
 0x282   : > { %7228 = vst [vmem:[#allocation43_spill] sm:$0xff] %v6009_v38  ;;  %v6014_v48 = vsel %vm1171_vm10, %v6009_v38, 0.0  ;;  %v1083_v44 = vpop.xlane.xlu1 %1082  ;;  %v6016_v16 = vcvt.s32.f32 %v1332_v47 }
 0x283   : > { %7229 = vst [vmem:[#allocation44_spill] sm:$0xff] %v6014_v48  ;;  %v1084_v53 = vcvt.f32.s32 %v1083_v44 }
 0x284   : > { %1335 = vmin.xlane.f32.xlu0 %v6016_v16 }
 0x285   : > { %v1087_v50 = vadd.s32 %v1086_v3, %v1084_v53 }
 0x287   : > { %vm1173_vm12 = vcmp.eq.s32.totalorder %v5627_v45, %v1087_v50  ;;  %v1717_v11 = vand.u32 4294967292, %v1087_v50 }
 0x288   : > { %v6024_v6 = vsel %vm1173_vm12, 2147483647, %v5627_v45 }
 0x289   : > { %7230 = vst [vmem:[#allocation45_spill] sm:$0xff] %v6024_v6  ;;  %v1749_v20 = vadd.f32 1e-08, %v1717_v11  ;;  %v1098_v48 = vpop.xlane.xlu0 %1097  ;;  %v6028_v47 = vsel %vm922_vm0, %v6024_v6, 2147483647 }
 0x28a   : > { %v1099_v44 = vcvt.f32.s32 %v1098_v48  ;;  %v1347_v3 = vshra.s32 %v6028_v47, 16  ;;  %v1115_v48 = vcvt.f32.s32 %v5768_v5 }
 0x28b   : > { %v6031_v53 = vpop.eup %4883  ;;  %4885 = vrcp.f32 %v1749_v20 }
 0x28c   : > { %7231 = vst [vmem:[#allocation46_spill] sm:$0xff] %v6031_v53  ;;  %v6036_v63 = vsel %vm1172_vm11, %v6031_v53, 0.0  ;;  %v1102_v38 = vadd.s32 %v1101_v31, %v1099_v44  ;;  %v6038_v29 = vcvt.s32.f32 %v1347_v3 }
 0x28d   : > { %7232 = vst [vmem:[#allocation47_spill] sm:$0xff] %v6036_v63  ;;  %v1116_v63 = vshll.u32 %v1115_v48, 16 }
 0x28e   : > { %vm1174_vm13 = vcmp.eq.s32.totalorder %v5640_v8, %v1102_v38  ;;  %v1718_v11 = vand.u32 4294967292, %v1102_v38  ;;  %1350 = vmin.xlane.f32.xlu1 %v6038_v29 }
 0x28f   : > { %v6045_v2 = vsel %vm1174_vm13, 2147483647, %v5640_v8 }
 0x290   : > { %7233 = vst [vmem:[#allocation48_spill] sm:$0xff] %v6045_v2  ;;  %v1750_v20 = vadd.f32 1e-08, %v1718_v11  ;;  %v6050_v14 = vsel %vm922_vm0, %v6045_v2, 2147483647  ;;  %v1130_v2 = vcvt.f32.s32 %v5773_v0 }
 0x291   : > { %v1362_v31 = vshra.s32 %v6050_v14, 16 }
 0x292   : > { %4887 = vrcp.f32 %v1750_v20 }
 0x293   : > { %v1113_v44 = vpop.xlane.xlu1 %1112  ;;  %v6053_v3 = vcvt.s32.f32 %v1362_v31 }
 0x294   : > { %v1114_v53 = vcvt.f32.s32 %v1113_v44 }
 0x295   : > { %v6055_v60 = vpop.eup %4885  ;;  %1365 = vmin.xlane.f32.xlu0 %v6053_v3 }
 0x296   : > { %7234 = vst [vmem:[#allocation49_spill] sm:$0xff] %v6055_v60  ;;  %v6061_v5 = vsel %vm1173_vm12, %v6055_v60, 0.0  ;;  %v1117_v11 = vadd.s32 %v1116_v63, %v1114_v53  ;;  %v1131_v53 = vshll.u32 %v1130_v2, 16 }
 0x297   : > { %7235 = vst [vmem:[#allocation50_spill] sm:$0xff] %v6061_v5 }
 0x298   : > { %vm1175_vm14 = vcmp.eq.s32.totalorder %v5656_v51, %v1117_v11  ;;  %v1719_v20 = vand.u32 4294967292, %v1117_v11 }
 0x299   : > { %v6068_v48 = vsel %vm1175_vm14, 2147483647, %v5656_v51 }
 0x29a   : > { %7236 = vst [vmem:[#allocation51_spill] sm:$0xff] %v6068_v48  ;;  %v1751_v31 = vadd.f32 1e-08, %v1719_v20  ;;  %v6072_v44 = vsel %vm922_vm0, %v6068_v48, 2147483647 }
 0x29b   : > { %v1128_v6 = vpop.xlane.xlu0 %1127  ;;  %v1377_v50 = vshra.s32 %v6072_v44, 16 }
 0x29c   : > { %v6075_v5 = vpop.eup %4887  ;;  %4889 = vrcp.f32 %v1751_v31  ;;  %v1129_v0 = vcvt.f32.s32 %v1128_v6  ;;  %v1145_v6 = vcvt.f32.s32 %v5778_v55 }
 0x29d   : > { %7237 = vst [vmem:[#allocation52_spill] sm:$0xff] %v6075_v5  ;;  %v6080_v63 = vsel %vm1174_vm13, %v6075_v5, 0.0  ;;  %v6082_v60 = vcvt.s32.f32 %v1377_v50 }
 0x29e   : > { %7238 = vst [vmem:[#allocation53_spill] sm:$0xff] %v6080_v63  ;;  %v1132_v20 = vadd.s32 %v1131_v53, %v1129_v0  ;;  %v1146_v63 = vshll.u32 %v1145_v6, 16 }
 0x29f   : > { %1380 = vmin.xlane.f32.xlu1 %v6082_v60 }
 0x2a0   : > { %vm1176_vm15 = vcmp.eq.s32.totalorder %v5671_v35, %v1132_v20  ;;  %v1720_v48 = vand.u32 4294967292, %v1132_v20 }
 0x2a1   : > { %v6089_v45 = vsel %vm1176_vm15, 2147483647, %v5671_v35 }
 0x2a2   : > { %7239 = vst [vmem:[#allocation54_spill] sm:$0xff] %v6089_v45  ;;  %v1752_v2 = vadd.f32 1e-08, %v1720_v48  ;;  %v6094_v38 = vsel %vm922_vm0, %v6089_v45, 2147483647 }
 0x2a3   : > { %v1392_v31 = vshra.s32 %v6094_v38, 16 }
 0x2a4   : > { %4891 = vrcp.f32 %v1752_v2 }
 0x2a5   : > { %v1143_v50 = vpop.xlane.xlu1 %1142  ;;  %v6097_v53 = vcvt.s32.f32 %v1392_v31  ;;  %v1160_v31 = vcvt.f32.s32 %v5783_v21 }
 0x2a6   : > { %v6099_v0 = vpop.eup %4889  ;;  %v1144_v5 = vcvt.f32.s32 %v1143_v50 }
 0x2a7   : > { %7240 = vst [vmem:[#allocation55_spill] sm:$0xff] %v6099_v0  ;;  %v6104_v8 = vsel %vm1175_vm14, %v6099_v0, 0.0  ;;  %1395 = vmin.xlane.f32.xlu0 %v6097_v53  ;;  %v1161_v51 = vshll.u32 %v1160_v31, 16 }
 0x2a8   : > { %7241 = vst [vmem:[#allocation56_spill] sm:$0xff] %v6104_v8  ;;  %v1147_v55 = vadd.s32 %v1146_v63, %v1144_v5 }
 0x2aa   : > { %vm1177_vm1 = vcmp.eq.s32.totalorder %v5685_v32, %v1147_v55  ;;  %v1721_v48 = vand.u32 4294967292, %v1147_v55 }
 0x2ab   : > { %v6111_v2 = vsel %vm1177_vm1, 2147483647, %v5685_v32 }
 0x2ac   : > { %7242 = vst [vmem:[#allocation57_spill] sm:$0xff] %v6111_v2  ;;  %v1753_v6 = vadd.f32 1e-08, %v1721_v48  ;;  %v6116_v50 = vsel %vm922_vm0, %v6111_v2, 2147483647 }
 0x2ad   : > { %v1407_v11 = vshra.s32 %v6116_v50, 16 }
 0x2ae   : > { %v6119_v8 = vpop.eup %4891  ;;  %4893 = vrcp.f32 %v1753_v6 }
 0x2af   : > { %v6124_v5 = vsel %vm1176_vm15, %v6119_v8, 0.0  ;;  %v1158_v63 = vpop.xlane.xlu0 %1157  ;;  %v6126_v0 = vcvt.s32.f32 %v1407_v11 }
 0x2b0   : > { %7243 = vst [vmem:[#allocation58_spill] sm:$0xff] %v6124_v5  ;;  %v1159_v21 = vcvt.f32.s32 %v1158_v63 }
 0x2b1   : > { %1410 = vmin.xlane.f32.xlu1 %v6126_v0 }
 0x2b2   : > { %v1162_v48 = vadd.s32 %v1161_v51, %v1159_v21  ;;  %v1211_v21 = vand.u32 65535, %v5797_v33 }
 0x2b4   : > { %vm1178_vm2 = vcmp.eq.s32.totalorder %v5697_v28, %v1162_v48  ;;  %v1722_v2 = vand.u32 4294967292, %v1162_v48 }
 0x2b5   : > { %v6131_v45 = vsel %vm1178_vm2, 2147483647, %v5697_v28  ;;  %v1213_v28 = vcvt.s32.f32 %v1211_v21 }
 0x2b6   : > { %v1754_v6 = vadd.f32 1e-08, %v1722_v2  ;;  %v6135_v20 = vsel %vm922_vm0, %v6131_v45, 2147483647 }
 0x2b7   : > { %v1422_v5 = vshra.s32 %v6135_v20, 16 }
 0x2b8   : > { %v6138_v11 = vpop.eup %4893  ;;  %4895 = vrcp.f32 %v1754_v6  ;;  %v1196_v6 = vand.u32 65535, %v5821_v13 }
 0x2b9   : > { %7244 = vst [vmem:[#allocation59_spill] sm:$0xff] %v6138_v11  ;;  %v6143_v51 = vsel %vm1177_vm1, %v6138_v11, 0.0  ;;  %v6145_v31 = vcvt.s32.f32 %v1422_v5  ;;  %v1226_v5 = vand.u32 65535, %v5840_v54 }
 0x2ba   : > { %7245 = vst [vmem:[#allocation60_spill] sm:$0xff] %v6143_v51  ;;  %v1198_v11 = vcvt.s32.f32 %v1196_v6 }
 0x2bb   : > { %1425 = vmin.xlane.f32.xlu0 %v6145_v31  ;;  %v1228_v21 = vcvt.s32.f32 %v1226_v5  ;;  %v1301_v5 = vand.u32 65535, %v5962_v27  ;;  %v1331_v27 = vand.u32 65535, %v6006_v25 }
 0x2c2   : > { %v6148_v63 = vpop.eup %4895 }
 0x2c3   : > { %7246 = vst [vmem:[#allocation61_spill] sm:$0xff] %v6148_v63  ;;  %v6151_v2 = vsel %vm1178_vm2, %v6148_v63, 0.0  ;;  %v1256_v63 = vand.u32 65535, %v5872_v37 }
 0x2c4   : > { %7247 = vst [vmem:[#allocation62_spill] sm:$0xff] %v6151_v2 }
 0x2dd   : > { %v6154_v48 = vpop.xlane.xlu0 %1215 }
 0x2de   : > { %vm1217_vm3 = vcmp.eq.f32.partialorder %v5803_v49, %v6154_v48 }
 0x2df   : > { %v1218_v55 = vsel %vm1217_vm3, %v1213_v28, inf  ;;  %v1241_v28 = vand.u32 65535, %v5876_v4  ;;  %v1286_v4 = vand.u32 65535, %v5924_v15  ;;  %v1303_v15 = vcvt.s32.f32 %v1301_v5 }
 0x2e0   : > { %1219 = vmin.xlane.f32.xlu0 %v1218_v55  ;;  %v1258_v55 = vcvt.s32.f32 %v1256_v63 }
 0x2e4   : > { %v6160_v51 = vpop.xlane.xlu1 %1200 }
 0x2e5   : > { %vm1202_vm4 = vcmp.eq.f32.partialorder %v5828_v58, %v6160_v51  ;;  %v1243_v58 = vcvt.s32.f32 %v1241_v28 }
 0x2e6   : > { %v1203_v2 = vsel %vm1202_vm4, %v1198_v11, inf  ;;  %v1271_v11 = vand.u32 65535, %v5900_v19 }
 0x2e7   : > { %1204 = vmin.xlane.f32.xlu1 %v1203_v2 }
 0x2e8   : > { %v6164_v33 = vpop.xlane.xlu1 %1230  ;;  %v1273_v6 = vcvt.s32.f32 %v1271_v11  ;;  %v1333_v11 = vcvt.s32.f32 %v1331_v27 }
 0x2e9   : > { %vm1232_vm5 = vcmp.eq.f32.partialorder %v5856_v18, %v6164_v33 }
 0x2ea   : > { %v1233_v49 = vsel %vm1232_vm5, %v1228_v21, inf }
 0x2eb   : > { %1234 = vmin.xlane.f32.xlu1 %v1233_v49 }
 0x2ed   : > { %v6170_v13 = vpop.xlane.xlu1 %1260  ;;  %v6172_v54 = vpop.xlane.xlu0 %1245 }
 0x2ee   : > { %vm1262_vm6 = vcmp.eq.f32.partialorder %v5883_v40, %v6170_v13  ;;  %vm1247_vm7 = vcmp.eq.f32.partialorder %v5885_v10, %v6172_v54  ;;  %v1288_v40 = vcvt.s32.f32 %v1286_v4  ;;  %v1361_v4 = vand.u32 65535, %v6050_v14 }
 0x2ef   : > { %v1263_v37 = vsel %vm1262_vm6, %v1258_v55, inf  ;;  %v1248_v18 = vsel %vm1247_vm7, %v1243_v58, inf  ;;  %v1391_v14 = vand.u32 65535, %v6094_v38  ;;  %v1421_v38 = vand.u32 65535, %v6135_v20 }
 0x2f0   : > { %1264 = vmin.xlane.f32.xlu1 %v1263_v37  ;;  %1249 = vmin.xlane.f32.xlu0 %v1248_v18 }
 0x2f1   : > { %v6180_v2 = vpop.xlane.xlu0 %1275  ;;  %v1393_v5 = vcvt.s32.f32 %v1391_v14 }
 0x2f2   : > { %vm1277_vm8 = vcmp.eq.f32.partialorder %v5908_v59, %v6180_v2  ;;  %v1316_v59 = vand.u32 65535, %v5984_v9  ;;  %v1346_v9 = vand.u32 65535, %v6028_v47  ;;  %v1376_v47 = vand.u32 65535, %v6072_v44 }
 0x2f3   : > { %v1278_v63 = vsel %vm1277_vm8, %v1273_v6, inf  ;;  %v1363_v6 = vcvt.s32.f32 %v1361_v4  ;;  %v1406_v44 = vand.u32 65535, %v6116_v50  ;;  %v1222_v50 = vcvt.f32.s32 %v6154_v48 }
 0x2f4   : > { %1279 = vmin.xlane.f32.xlu0 %v1278_v63  ;;  %v1318_v55 = vcvt.s32.f32 %v1316_v59  ;;  %v1348_v18 = vcvt.s32.f32 %v1346_v9 }
 0x2f5   : > { %v6184_v19 = vpop.xlane.xlu1 %1290  ;;  %v1223_v27 = vshll.u32 %v1222_v50, 16 }
 0x2f6   : > { %vm1292_vm9 = vcmp.eq.f32.partialorder %v5930_v41, %v6184_v19 }
 0x2f7   : > { %v1293_v10 = vsel %vm1292_vm9, %v1288_v40, inf  ;;  %v1378_v40 = vcvt.s32.f32 %v1376_v47 }
 0x2f8   : > { %1294 = vmin.xlane.f32.xlu1 %v1293_v10 }
 0x2ff   : > { %v6189_v21 = vpop.xlane.xlu0 %1305 }
 0x300   : > { %vm1307_vm10 = vcmp.eq.f32.partialorder %v5972_v61, %v6189_v21 }
 0x301   : > { %v1308_v28 = vsel %vm1307_vm10, %v1303_v15, inf }
 0x302   : > { %1309 = vmin.xlane.f32.xlu0 %v1308_v28  ;;  %v1408_v28 = vcvt.s32.f32 %v1406_v44 }
 0x307   : > { %v6194_v49 = vpop.xlane.xlu1 %1320 }
 0x308   : > { %vm1322_vm11 = vcmp.eq.f32.partialorder %v5987_v46, %v6194_v49 }
 0x309   : > { %v1323_v41 = vsel %vm1322_vm11, %v1318_v55, inf  ;;  %v1423_v55 = vcvt.s32.f32 %v1421_v38 }
 0x30a   : > { %1324 = vmin.xlane.f32.xlu1 %v1323_v41 }
 0x311   : > { %v6199_v58 = vpop.xlane.xlu0 %1335 }
 0x312   : > { %vm1337_vm12 = vcmp.eq.f32.partialorder %v6016_v16, %v6199_v58 }
 0x313   : > { %v1338_v61 = vsel %vm1337_vm12, %v1333_v11, inf }
 0x314   : > { %1339 = vmin.xlane.f32.xlu0 %v1338_v61 }
 0x31b   : > { %v6204_v37 = vpop.xlane.xlu1 %1350 }
 0x31c   : > { %vm1352_vm13 = vcmp.eq.f32.partialorder %v6038_v29, %v6204_v37 }
 0x31d   : > { %v1353_v46 = vsel %vm1352_vm13, %v1348_v18, inf  ;;  %v1237_v18 = vcvt.f32.s32 %v6164_v33  ;;  %v1252_v33 = vcvt.f32.s32 %v6172_v54 }
 0x31e   : > { %1354 = vmin.xlane.f32.xlu1 %v1353_v46 }
 0x31f   : > { %v1253_v54 = vshll.u32 %v1252_v33, 16 }
 0x322   : > { %v6209_v25 = vpop.xlane.xlu0 %1365 }
 0x323   : > { %vm1367_vm14 = vcmp.eq.f32.partialorder %v6053_v3, %v6209_v25 }
 0x324   : > { %v1368_v16 = vsel %vm1367_vm14, %v1363_v6, inf }
 0x325   : > { %1369 = vmin.xlane.f32.xlu0 %v1368_v16 }
 0x32c   : > { %v6214_v63 = vpop.xlane.xlu1 %1380 }
 0x32d   : > { %vm1382_vm15 = vcmp.eq.f32.partialorder %v6082_v60, %v6214_v63 }
 0x32e   : > { %v1383_v29 = vsel %vm1382_vm15, %v1378_v40, inf  ;;  %v1238_v40 = vshll.u32 %v1237_v18, 16 }
 0x32f   : > { %1384 = vmin.xlane.f32.xlu1 %v1383_v29  ;;  %v1267_v29 = vcvt.f32.s32 %v6170_v13 }
 0x334   : > { %v6219_v10 = vpop.xlane.xlu0 %1395 }
 0x335   : > { %vm1397_vm1 = vcmp.eq.f32.partialorder %v6097_v53, %v6219_v10 }
 0x336   : > { %v1398_v3 = vsel %vm1397_vm1, %v1393_v5, inf }
 0x337   : > { %1399 = vmin.xlane.f32.xlu0 %v1398_v3 }
 0x33e   : > { %v6224_v15 = vpop.xlane.xlu1 %1410 }
 0x33f   : > { %vm1412_vm2 = vcmp.eq.f32.partialorder %v6126_v0, %v6224_v15  ;;  %v1207_v0 = vcvt.f32.s32 %v6160_v51 }
 0x340   : > { %v1413_v60 = vsel %vm1412_vm2, %v1408_v28, inf }
 0x341   : > { %1414 = vmin.xlane.f32.xlu1 %v1413_v60  ;;  %v1208_v6 = vshll.u32 %v1207_v0, 16  ;;  %v1268_v60 = vshll.u32 %v1267_v29, 16 }
 0x348   : > { %v6229_v59 = vpop.xlane.xlu0 %1425 }
 0x349   : > { %vm1427_vm3 = vcmp.eq.f32.partialorder %v6145_v31, %v6229_v59 }
 0x34a   : > { %v1428_v53 = vsel %vm1427_vm3, %v1423_v55, inf  ;;  %v1282_v55 = vcvt.f32.s32 %v6180_v2 }
 0x34b   : > { %1429 = vmin.xlane.f32.xlu0 %v1428_v53 }
 0x36d   : > { %v1220_v41 = vpop.xlane.xlu0 %1219 }
 0x36e   : > { %v1221_v11 = vcvt.f32.s32 %v1220_v41 }
 0x370   : > { %v1224_v61 = vadd.s32 %v1223_v27, %v1221_v11 }
 0x372   : > { %vm1436_vm4 = vcmp.eq.s32.totalorder %v5793_v36, %v1224_v61  ;;  %v1772_v9 = vand.u32 4294967292, %v1224_v61  ;;  %vm1964_vm7 = vcmp.eq.s32.totalorder %v5479_v62, %v1224_v61 }
 0x373   : > { %v1452_v20 = vsel %vm1436_vm4, 2147483647, %v5793_v36 }
 0x374   : > { %v1804_v46 = vadd.f32 1e-08, %v1772_v9  ;;  %v1205_v4 = vpop.xlane.xlu1 %1204  ;;  %v6239_v31 = vsel %vm922_vm0, %v1452_v20, 2147483647  ;;  %v1297_v9 = vcvt.f32.s32 %v6184_v19 }
 0x375   : > { %v1206_v48 = vcvt.f32.s32 %v1205_v4  ;;  %v1484_v16 = vshra.s32 %v6239_v31, 16 }
 0x376   : > { %4897 = vrcp.f32 %v1804_v46 }
 0x377   : > { %v6242_v47 = vadd.s32 %v1208_v6, %v1206_v48  ;;  %v6244_v51 = vcvt.s32.f32 %v1484_v16  ;;  %v1283_v48 = vshll.u32 %v1282_v55, 16 }
 0x378   : > { %v1235_v36 = vpop.xlane.xlu1 %1234 }
 0x379   : > { %vm1435_vm5 = vcmp.eq.s32.totalorder %v5815_v1, %v6242_v47  ;;  %v1771_v14 = vand.u32 4294967292, %v6242_v47  ;;  %v1236_v5 = vcvt.f32.s32 %v1235_v36  ;;  %1487 = vmin.xlane.f32.xlu0 %v6244_v51  ;;  %vm1963_vm12 = vcmp.eq.s32.totalorder %v5503_v39, %v6242_v47 }
 0x37a   : > { %v1451_v3 = vsel %vm1435_vm5, 2147483647, %v5815_v1 }
 0x37b   : > { %v6253_v44 = vadd.s32 %v1238_v40, %v1236_v5  ;;  %v6256_v28 = vsel %vm922_vm0, %v1451_v3, 2147483647  ;;  %v1803_v13 = vadd.f32 1e-08, %v1771_v14  ;;  %v1298_v40 = vshll.u32 %v1297_v9, 16 }
 0x37c   : > { %v1469_v38 = vshra.s32 %v6256_v28, 16 }
 0x37d   : > { %vm1437_vm6 = vcmp.eq.s32.totalorder %v5834_v12, %v6253_v44  ;;  %v1773_v53 = vand.u32 4294967292, %v6253_v44  ;;  %v1265_v50 = vpop.xlane.xlu1 %1264  ;;  %v1250_v41 = vpop.xlane.xlu0 %1249  ;;  %4899 = vrcp.f32 %v1803_v13  ;;  %vm1965_vm13 = vcmp.eq.s32.totalorder %v5495_v24, %v6253_v44 }
 0x37e   : > { %v1266_v1 = vcvt.f32.s32 %v1265_v50  ;;  %v1251_v27 = vcvt.f32.s32 %v1250_v41  ;;  %v6263_v11 = vcvt.s32.f32 %v1469_v38  ;;  %v1453_v0 = vsel %vm1437_vm6, 2147483647, %v5834_v12 }
 0x37f   : > { %v1805_v20 = vadd.f32 1e-08, %v1773_v53  ;;  %v6269_v2 = vsel %vm922_vm0, %v1453_v0, 2147483647 }
 0x380   : > { %v4898_v18 = vpop.eup %4897  ;;  %v6271_v46 = vadd.s32 %v1268_v60, %v1266_v1  ;;  %v6273_v4 = vadd.s32 %v1253_v54, %v1251_v27  ;;  %1472 = vmin.xlane.f32.xlu1 %v6263_v11  ;;  %v1499_v6 = vshra.s32 %v6269_v2, 16 }
 0x381   : > { %4901 = vrcp.f32 %v1805_v20  ;;  %v1280_v12 = vpop.xlane.xlu0 %1279  ;;  %v6278_v19 = vadd.f32 %v4898_v18, %v5842_v57  ;;  %v6281_v61 = vsel %vm1964_vm7, %v4898_v18, %v5850_v34 }
 0x382   : > { %vm1439_vm8 = vcmp.eq.s32.totalorder %v5862_v30, %v6271_v46  ;;  %v1775_v16 = vand.u32 4294967292, %v6271_v46  ;;  %vm1438_vm9 = vcmp.eq.s32.totalorder %v5867_v43, %v6273_v4  ;;  %v1774_v29 = vand.u32 4294967292, %v6273_v4 }
 0x383   : > { %v1281_v36 = vcvt.f32.s32 %v1280_v12  ;;  %v6289_v33 = vcvt.s32.f32 %v1499_v6  ;;  %v1455_v14 = vsel %vm1439_vm8, 2147483647, %v5862_v30  ;;  %v1454_v34 = vsel %vm1438_vm9, 2147483647, %v5867_v43 }
 0x384   : > { %v1807_v57 = vadd.f32 1e-08, %v1775_v16  ;;  %v1806_v5 = vadd.f32 1e-08, %v1774_v29  ;;  %v6297_v13 = vsel %vm922_vm0, %v1455_v14, 2147483647  ;;  %v1312_v12 = vcvt.f32.s32 %v6189_v21 }
 0x385   : > { %v6293_v3 = vadd.s32 %v1283_v48, %v1281_v36  ;;  %1502 = vmin.xlane.f32.xlu1 %v6289_v33  ;;  %v1295_v60 = vpop.xlane.xlu1 %1294  ;;  %v6300_v38 = vsel %vm922_vm0, %v1454_v34, 2147483647  ;;  %v1529_v55 = vshra.s32 %v6297_v13, 16  ;;  %vm1967_vm14 = vcmp.eq.s32.totalorder %v5533_v26, %v6271_v46 }
 0x386   : > { %4903 = vrcp.f32 %v1807_v57  ;;  %v1296_v54 = vcvt.f32.s32 %v1295_v60  ;;  %v1514_v30 = vshra.s32 %v6300_v38, 16  ;;  %v7249_v57 = vld [vmem:[#allocation31_spill] sm:$0xff]  ;;  %v1313_v60 = vshll.u32 %v1312_v12, 16 }
 0x387   : > { %4905 = vrcp.f32 %v1806_v5  ;;  %vm1440_vm10 = vcmp.eq.s32.totalorder %v5890_v7, %v6293_v3  ;;  %v1776_v43 = vand.u32 4294967292, %v6293_v3  ;;  %v6309_v50 = vcvt.s32.f32 %v1529_v55  ;;  %v4900_v9 = vpop.eup %4899 }
 0x388   : > { %v6307_v53 = vadd.s32 %v1298_v40, %v1296_v54  ;;  %v6311_v41 = vcvt.s32.f32 %v1514_v30  ;;  %v1456_v1 = vsel %vm1440_vm10, 2147483647, %v5890_v7  ;;  %v6336_v36 = vadd.f32 %v4900_v9, %v5881_v42 }
 0x389   : > { %v1808_v27 = vadd.f32 1e-08, %v1776_v43  ;;  %v6315_v0 = vsel %vm922_vm0, %v1456_v1, 2147483647  ;;  %1532 = vmin.xlane.f32.xlu1 %v6309_v50  ;;  %v6339_v21 = vsel %vm1963_vm12, %v4900_v9, %v5896_v17  ;;  %vm1966_vm15 = vcmp.eq.s32.totalorder %v5517_v56, %v6273_v4  ;;  %v7250_v43 = vld [vmem:[#allocation32_spill] sm:$0xff] }
 0x38a   : > { %vm1441_vm11 = vcmp.eq.s32.totalorder %v5913_v23, %v6307_v53  ;;  %v1777_v20 = vand.u32 4294967292, %v6307_v53  ;;  %1517 = vmin.xlane.f32.xlu0 %v6311_v41  ;;  %v1544_v18 = vshra.s32 %v6315_v0, 16  ;;  %v1327_v46 = vcvt.f32.s32 %v6194_v49 }
 0x38b   : > { %v4902_v6 = vpop.eup %4901  ;;  %4907 = vrcp.f32 %v1808_v27  ;;  %v1457_v7 = vsel %vm1441_vm11, 2147483647, %v5913_v23  ;;  %v7248_v23 = vld [vmem:[#allocation30_spill] sm:$0xff]  ;;  %v7251_v27 = vld [vmem:[#allocation33_spill] sm:$0xff] }
 0x38c   : > { %v1809_v48 = vadd.f32 1e-08, %v1777_v20  ;;  %v6327_v16 = vcvt.s32.f32 %v1544_v18  ;;  %v6330_v40 = vsel %vm922_vm0, %v1457_v7, 2147483647  ;;  %v6343_v47 = vadd.f32 %v4902_v6, %v7248_v23  ;;  %v7253_v20 = vld [vmem:[#allocation36_spill] sm:$0xff]  ;;  %v7255_v7 = vld [vmem:[#allocation34_spill] sm:$0xff] }
 0x38d   : > { %v1559_v29 = vshra.s32 %v6330_v40, 16  ;;  %v6346_v14 = vsel %vm1965_vm13, %v4902_v6, %v7249_v57  ;;  %v7254_v6 = vld [vmem:[#allocation20_spill] sm:$0xff] }
 0x38e   : > { %4909 = vrcp.f32 %v1809_v48  ;;  %1547 = vmin.xlane.f32.xlu0 %v6327_v16  ;;  %vm1968_vm2 = vcmp.eq.s32.totalorder %v7254_v6, %v6293_v3 }
 0x38f   : > { %v1310_v34 = vpop.xlane.xlu0 %1309  ;;  %v6348_v5 = vcvt.s32.f32 %v1559_v29  ;;  %v7257_v29 = vld [vmem:[#allocation35_spill] sm:$0xff] }
 0x390   : > { %v4904_v44 = vpop.eup %4903  ;;  %v1311_v42 = vcvt.f32.s32 %v1310_v34 }
 0x391   : > { %v4906_v17 = vpop.eup %4905  ;;  %1562 = vmin.xlane.f32.xlu1 %v6348_v5  ;;  %v6356_v54 = vadd.f32 %v4904_v44, %v5928_v22  ;;  %v6359_v55 = vsel %vm1967_vm14, %v4904_v44, %v5938_v52  ;;  %v1328_v44 = vshll.u32 %v1327_v46, 16 }
 0x392   : > { %v1314_v30 = vadd.s32 %v1313_v60, %v1311_v42  ;;  %v6362_v1 = vadd.f32 %v4906_v17, %v7250_v43  ;;  %v6365_v9 = vsel %vm1966_vm15, %v4906_v17, %v7251_v27  ;;  %v7259_v60 = vld [vmem:[#allocation21_spill] sm:$0xff]  ;;  %v7262_v27 = vld [vmem:[#allocation38_spill] sm:$0xff] }
 0x393   : > { %7252 = vst [vmem:[#allocation30_spill] sm:$0xff] %v6365_v9  ;;  %vm1969_vm3 = vcmp.eq.s32.totalorder %v7259_v60, %v6307_v53  ;;  %v7260_v17 = vld [vmem:[#allocation37_spill] sm:$0xff]  ;;  %v1342_v53 = vcvt.f32.s32 %v6199_v58  ;;  %v1432_v9 = vcvt.f32.s32 %v6229_v59 }
 0x394   : > { %vm1442_vm1 = vcmp.eq.s32.totalorder %v7253_v20, %v1314_v30  ;;  %v1778_v4 = vand.u32 4294967292, %v1314_v30  ;;  %v7268_v58 = vld [vmem:[#allocation41_spill] sm:$0xff] }
 0x395   : > { %v4908_v18 = vpop.eup %4907  ;;  %v1458_v22 = vsel %vm1442_vm1, 2147483647, %v7253_v20  ;;  %v7276_v60 = vld [vmem:[#allocation45_spill] sm:$0xff]  ;;  %v1433_v59 = vshll.u32 %v1432_v9, 16 }
 0x396   : > { %v1810_v52 = vadd.f32 1e-08, %v1778_v4  ;;  %v6373_v12 = vsel %vm922_vm0, %v1458_v22, 2147483647  ;;  %v6376_v48 = vadd.f32 %v4908_v18, %v7255_v7  ;;  %v6379_v23 = vsel %vm1968_vm2, %v4908_v18, %v7257_v29  ;;  %v7264_v18 = vld [vmem:[#allocation39_spill] sm:$0xff] }
 0x397   : > { %7258 = vst [vmem:[#allocation32_spill] sm:$0xff] %v6379_v23  ;;  %v1325_v49 = vpop.xlane.xlu1 %1324  ;;  %v1574_v57 = vshra.s32 %v6373_v12, 16  ;;  %v7282_v23 = vld [vmem:[#allocation48_spill] sm:$0xff] }
 0x398   : > { %7256 = vst [vmem:[#allocation31_spill] sm:$0xff] %v6376_v48  ;;  %v4910_v34 = vpop.eup %4909  ;;  %4911 = vrcp.f32 %v1810_v52  ;;  %v1326_v3 = vcvt.f32.s32 %v1325_v49 }
 0x399   : > { %v6384_v42 = vcvt.s32.f32 %v1574_v57  ;;  %v6387_v43 = vadd.f32 %v4910_v34, %v7260_v17  ;;  %v6390_v20 = vsel %vm1969_vm3, %v4910_v34, %v7262_v27  ;;  %v7266_v27 = vld [vmem:[#allocation40_spill] sm:$0xff] }
 0x39a   : > { %7263 = vst [vmem:[#allocation36_spill] sm:$0xff] %v6390_v20  ;;  %v1329_v4 = vadd.s32 %v1328_v44, %v1326_v3  ;;  %v1343_v44 = vshll.u32 %v1342_v53, 16  ;;  %v7265_v3 = vld [vmem:[#allocation22_spill] sm:$0xff] }
 0x39b   : > { %7261 = vst [vmem:[#allocation33_spill] sm:$0xff] %v6387_v43  ;;  %1577 = vmin.xlane.f32.xlu0 %v6384_v42  ;;  %vm1970_vm5 = vcmp.eq.s32.totalorder %v7265_v3, %v1314_v30  ;;  %v7270_v20 = vld [vmem:[#allocation42_spill] sm:$0xff]  ;;  %v1357_v43 = vcvt.f32.s32 %v6204_v37 }
 0x39c   : > { %vm1443_vm4 = vcmp.eq.s32.totalorder %v7264_v18, %v1329_v4  ;;  %v1779_v22 = vand.u32 4294967292, %v1329_v4 }
 0x39d   : > { %v1459_v46 = vsel %vm1443_vm4, 2147483647, %v7264_v18  ;;  %v1358_v37 = vshll.u32 %v1357_v43, 16 }
 0x39e   : > { %v1811_v52 = vadd.f32 1e-08, %v1779_v22  ;;  %v6397_v7 = vsel %vm922_vm0, %v1459_v46, 2147483647 }
 0x39f   : > { %v1589_v29 = vshra.s32 %v6397_v7, 16 }
 0x3a0   : > { %4913 = vrcp.f32 %v1811_v52 }
 0x3a1   : > { %v1340_v49 = vpop.xlane.xlu0 %1339  ;;  %v6400_v57 = vcvt.s32.f32 %v1589_v29 }
 0x3a2   : > { %v4912_v34 = vpop.eup %4911  ;;  %v1341_v17 = vcvt.f32.s32 %v1340_v49 }
 0x3a3   : > { %1592 = vmin.xlane.f32.xlu1 %v6400_v57  ;;  %v6405_v18 = vadd.f32 %v4912_v34, %v7266_v27  ;;  %v6408_v22 = vsel %vm1970_vm5, %v4912_v34, %v7268_v58  ;;  %v7271_v27 = vld [vmem:[#allocation23_spill] sm:$0xff] }
 0x3a4   : > { %7269 = vst [vmem:[#allocation35_spill] sm:$0xff] %v6408_v22  ;;  %v1344_v46 = vadd.s32 %v1343_v44, %v1341_v17  ;;  %vm1971_vm7 = vcmp.eq.s32.totalorder %v7271_v27, %v1329_v4  ;;  %v7272_v44 = vld [vmem:[#allocation43_spill] sm:$0xff]  ;;  %v7274_v22 = vld [vmem:[#allocation44_spill] sm:$0xff] }
 0x3a5   : > { %7267 = vst [vmem:[#allocation34_spill] sm:$0xff] %v6405_v18  ;;  %v1372_v18 = vcvt.f32.s32 %v6209_v25 }
 0x3a6   : > { %vm1444_vm6 = vcmp.eq.s32.totalorder %v7270_v20, %v1344_v46  ;;  %v1780_v52 = vand.u32 4294967292, %v1344_v46 }
 0x3a7   : > { %v1460_v29 = vsel %vm1444_vm6, 2147483647, %v7270_v20 }
 0x3a8   : > { %v1812_v53 = vadd.f32 1e-08, %v1780_v52  ;;  %v6414_v30 = vsel %vm922_vm0, %v1460_v29, 2147483647 }
 0x3a9   : > { %v1604_v49 = vshra.s32 %v6414_v30, 16 }
 0x3aa   : > { %v4914_v3 = vpop.eup %4913  ;;  %4915 = vrcp.f32 %v1812_v53 }
 0x3ab   : > { %v1355_v34 = vpop.xlane.xlu1 %1354  ;;  %v6418_v58 = vcvt.s32.f32 %v1604_v49  ;;  %v6421_v17 = vadd.f32 %v4914_v3, %v7272_v44  ;;  %v6424_v20 = vsel %vm1971_vm7, %v4914_v3, %v7274_v22 }
 0x3ac   : > { %7275 = vst [vmem:[#allocation38_spill] sm:$0xff] %v6424_v20  ;;  %v1356_v52 = vcvt.f32.s32 %v1355_v34  ;;  %v7277_v34 = vld [vmem:[#allocation24_spill] sm:$0xff] }
 0x3ad   : > { %7273 = vst [vmem:[#allocation37_spill] sm:$0xff] %v6421_v17  ;;  %1607 = vmin.xlane.f32.xlu0 %v6418_v58  ;;  %v1373_v17 = vshll.u32 %v1372_v18, 16  ;;  %vm1972_vm9 = vcmp.eq.s32.totalorder %v7277_v34, %v1344_v46  ;;  %v1402_v34 = vcvt.f32.s32 %v6219_v10  ;;  %v7290_v10 = vld [vmem:[#allocation52_spill] sm:$0xff] }
 0x3ae   : > { %v1359_v29 = vadd.s32 %v1358_v37, %v1356_v52  ;;  %v7278_v52 = vld [vmem:[#allocation46_spill] sm:$0xff] }
 0x3b0   : > { %vm1445_vm8 = vcmp.eq.s32.totalorder %v7276_v60, %v1359_v29  ;;  %v1781_v4 = vand.u32 4294967292, %v1359_v29 }
 0x3b1   : > { %v1461_v53 = vsel %vm1445_vm8, 2147483647, %v7276_v60  ;;  %v7280_v60 = vld [vmem:[#allocation47_spill] sm:$0xff] }
 0x3b2   : > { %v1813_v49 = vadd.f32 1e-08, %v1781_v4  ;;  %v1370_v27 = vpop.xlane.xlu0 %1369  ;;  %v6431_v44 = vsel %vm922_vm0, %v1461_v53, 2147483647 }
 0x3b3   : > { %v1371_v3 = vcvt.f32.s32 %v1370_v27  ;;  %v1619_v43 = vshra.s32 %v6431_v44, 16  ;;  %v1387_v27 = vcvt.f32.s32 %v6214_v63 }
 0x3b4   : > { %v4916_v22 = vpop.eup %4915  ;;  %4917 = vrcp.f32 %v1813_v49 }
 0x3b5   : > { %v1374_v37 = vadd.s32 %v1373_v17, %v1371_v3  ;;  %v6435_v25 = vcvt.s32.f32 %v1619_v43  ;;  %v6438_v20 = vadd.f32 %v4916_v22, %v7278_v52  ;;  %v6441_v4 = vsel %vm1972_vm9, %v4916_v22, %v7280_v60 }
 0x3b6   : > { %7281 = vst [vmem:[#allocation40_spill] sm:$0xff] %v6441_v4  ;;  %v1388_v22 = vshll.u32 %v1387_v27, 16  ;;  %v7283_v4 = vld [vmem:[#allocation25_spill] sm:$0xff] }
 0x3b7   : > { %7279 = vst [vmem:[#allocation39_spill] sm:$0xff] %v6438_v20  ;;  %vm1446_vm10 = vcmp.eq.s32.totalorder %v7282_v23, %v1374_v37  ;;  %v1782_v53 = vand.u32 4294967292, %v1374_v37  ;;  %1622 = vmin.xlane.f32.xlu1 %v6435_v25  ;;  %vm1973_vm11 = vcmp.eq.s32.totalorder %v7283_v4, %v1359_v29  ;;  %v7284_v20 = vld [vmem:[#allocation49_spill] sm:$0xff] }
 0x3b8   : > { %v1462_v18 = vsel %vm1446_vm10, 2147483647, %v7282_v23  ;;  %v7292_v4 = vld [vmem:[#allocation53_spill] sm:$0xff] }
 0x3b9   : > { %v1814_v49 = vadd.f32 1e-08, %v1782_v53  ;;  %v6448_v46 = vsel %vm922_vm0, %v1462_v18, 2147483647  ;;  %v7286_v53 = vld [vmem:[#allocation50_spill] sm:$0xff] }
 0x3ba   : > { %v1634_v17 = vshra.s32 %v6448_v46, 16 }
 0x3bb   : > { %4919 = vrcp.f32 %v1814_v49  ;;  %v7288_v49 = vld [vmem:[#allocation51_spill] sm:$0xff] }
 0x3bc   : > { %v1385_v3 = vpop.xlane.xlu1 %1384  ;;  %v6451_v43 = vcvt.s32.f32 %v1634_v17 }
 0x3bd   : > { %v1386_v52 = vcvt.f32.s32 %v1385_v3 }
 0x3be   : > { %v4918_v60 = vpop.eup %4917  ;;  %1637 = vmin.xlane.f32.xlu0 %v6451_v43 }
 0x3bf   : > { %v1389_v23 = vadd.s32 %v1388_v22, %v1386_v52  ;;  %v6456_v63 = vadd.f32 %v4918_v60, %v7284_v20  ;;  %v6459_v18 = vsel %vm1973_vm11, %v4918_v60, %v7286_v53  ;;  %v1403_v20 = vshll.u32 %v1402_v34, 16 }
 0x3c0   : > { %7287 = vst [vmem:[#allocation42_spill] sm:$0xff] %v6459_v18 }
 0x3c1   : > { %7285 = vst [vmem:[#allocation41_spill] sm:$0xff] %v6456_v63  ;;  %vm1447_vm12 = vcmp.eq.s32.totalorder %v7288_v49, %v1389_v23  ;;  %v1783_v17 = vand.u32 4294967292, %v1389_v23  ;;  %v7289_v63 = vld [vmem:[#allocation26_spill] sm:$0xff] }
 0x3c2   : > { %v1463_v27 = vsel %vm1447_vm12, 2147483647, %v7288_v49  ;;  %vm1974_vm13 = vcmp.eq.s32.totalorder %v7289_v63, %v1374_v37  ;;  %v1417_v37 = vcvt.f32.s32 %v6224_v15  ;;  %v7297_v15 = vld [vmem:[#allocation56_spill] sm:$0xff]  ;;  %v7298_v63 = vld [vmem:[#allocation57_spill] sm:$0xff] }
 0x3c3   : > { %v1815_v3 = vadd.f32 1e-08, %v1783_v17  ;;  %v6465_v48 = vsel %vm922_vm0, %v1463_v27, 2147483647  ;;  %v7294_v27 = vld [vmem:[#allocation54_spill] sm:$0xff] }
 0x3c4   : > { %v1400_v29 = vpop.xlane.xlu0 %1399  ;;  %v1649_v22 = vshra.s32 %v6465_v48, 16 }
 0x3c5   : > { %v4920_v52 = vpop.eup %4919  ;;  %4921 = vrcp.f32 %v1815_v3  ;;  %v1401_v60 = vcvt.f32.s32 %v1400_v29 }
 0x3c6   : > { %v6469_v53 = vcvt.s32.f32 %v1649_v22  ;;  %v6472_v18 = vadd.f32 %v4920_v52, %v7290_v10  ;;  %v6475_v49 = vsel %vm1974_vm13, %v4920_v52, %v7292_v4 }
 0x3c7   : > { %7293 = vst [vmem:[#allocation44_spill] sm:$0xff] %v6475_v49  ;;  %v1404_v17 = vadd.s32 %v1403_v20, %v1401_v60  ;;  %v1418_v20 = vshll.u32 %v1417_v37, 16  ;;  %v7295_v60 = vld [vmem:[#allocation27_spill] sm:$0xff] }
 0x3c8   : > { %7291 = vst [vmem:[#allocation43_spill] sm:$0xff] %v6472_v18  ;;  %1652 = vmin.xlane.f32.xlu1 %v6469_v53  ;;  %vm1975_vm15 = vcmp.eq.s32.totalorder %v7295_v60, %v1389_v23 }
 0x3c9   : > { %vm1448_vm14 = vcmp.eq.s32.totalorder %v7294_v27, %v1404_v17  ;;  %v1784_v6 = vand.u32 4294967292, %v1404_v17  ;;  %vm1976_vm2 = vcmp.eq.s32.totalorder %v5671_v35, %v1404_v17 }
 0x3ca   : > { %v1464_v34 = vsel %vm1448_vm14, 2147483647, %v7294_v27  ;;  %v7296_v27 = vld [vmem:[#allocation55_spill] sm:$0xff] }
 0x3cb   : > { %v1816_v3 = vadd.f32 1e-08, %v1784_v6  ;;  %v6482_v29 = vsel %vm922_vm0, %v1464_v34, 2147483647 }
 0x3cc   : > { %v1664_v22 = vshra.s32 %v6482_v29, 16 }
 0x3cd   : > { %4923 = vrcp.f32 %v1816_v3 }
 0x3ce   : > { %v1415_v10 = vpop.xlane.xlu1 %1414  ;;  %v6485_v4 = vcvt.s32.f32 %v1664_v22 }
 0x3cf   : > { %v4922_v52 = vpop.eup %4921  ;;  %v1416_v49 = vcvt.f32.s32 %v1415_v10 }
 0x3d0   : > { %1667 = vmin.xlane.f32.xlu0 %v6485_v4  ;;  %v6490_v18 = vadd.f32 %v4922_v52, %v7296_v27  ;;  %v6493_v6 = vsel %vm1975_vm15, %v4922_v52, %v7297_v15 }
 0x3d1   : > { %v1419_v34 = vadd.s32 %v1418_v20, %v1416_v49  ;;  %v7300_v20 = vld [vmem:[#allocation58_spill] sm:$0xff] }
 0x3d3   : > { %vm1449_vm1 = vcmp.eq.s32.totalorder %v7298_v63, %v1419_v34  ;;  %v1785_v3 = vand.u32 4294967292, %v1419_v34  ;;  %vm1977_vm4 = vcmp.eq.s32.totalorder %v5685_v32, %v1419_v34  ;;  %v1483_v34 = vand.u32 65535, %v6239_v31 }
 0x3d4   : > { %v1465_v22 = vsel %vm1449_vm1, 2147483647, %v7298_v63  ;;  %vm2097_vm1 = vcmask 1043456  }
 0x3d5   : > { %v1817_v37 = vadd.f32 1e-08, %v1785_v3  ;;  %v6499_v23 = vsel %vm922_vm0, %v1465_v22, 2147483647 }
 0x3d6   : > { %v1679_v10 = vshra.s32 %v6499_v23, 16 }
 0x3d7   : > { %v4924_v60 = vpop.eup %4923  ;;  %4925 = vrcp.f32 %v1817_v37 }
 0x3d8   : > { %v1430_v52 = vpop.xlane.xlu0 %1429  ;;  %v6503_v27 = vcvt.s32.f32 %v1679_v10  ;;  %v6506_v49 = vadd.f32 %v4924_v60, %v6119_v8  ;;  %v6509_v63 = vsel %vm1976_vm2, %v4924_v60, %v7300_v20  ;;  %v7302_v60 = vld [vmem:[#allocation59_spill] sm:$0xff]  ;;  %v7303_v20 = vld [vmem:[#allocation60_spill] sm:$0xff] }
 0x3d9   : > { %7301 = vst [vmem:[#allocation46_spill] sm:$0xff] %v6509_v63  ;;  %v1431_v15 = vcvt.f32.s32 %v1430_v52  ;;  %v7306_v63 = vld [vmem:[#allocation62_spill] sm:$0xff] }
 0x3da   : > { %7299 = vst [vmem:[#allocation45_spill] sm:$0xff] %v6506_v49  ;;  %1682 = vmin.xlane.f32.xlu1 %v6503_v27 }
 0x3db   : > { %v1434_v3 = vadd.s32 %v1433_v59, %v1431_v15  ;;  %v7304_v15 = vld [vmem:[#allocation29_spill] sm:$0xff] }
 0x3dd   : > { %vm1450_vm3 = vcmp.eq.s32.totalorder %v6131_v45, %v1434_v3  ;;  %v1786_v22 = vand.u32 4294967292, %v1434_v3  ;;  %vm1978_vm5 = vcmp.eq.s32.totalorder %v7304_v15, %v1434_v3 }
 0x3de   : > { %v1466_v17 = vsel %vm1450_vm3, 2147483647, %v6131_v45 }
 0x3df   : > { %v1818_v37 = vadd.f32 1e-08, %v1786_v22  ;;  %v6515_v10 = vsel %vm922_vm0, %v1466_v17, 2147483647  ;;  %v7305_v22 = vld [vmem:[#allocation61_spill] sm:$0xff] }
 0x3e0   : > { %v1694_v8 = vshra.s32 %v6515_v10, 16 }
 0x3e1   : > { %v4926_v49 = vpop.eup %4925  ;;  %4927 = vrcp.f32 %v1818_v37 }
 0x3e2   : > { %v6519_v9 = vcvt.s32.f32 %v1694_v8  ;;  %v6522_v52 = vadd.f32 %v4926_v49, %v7302_v60  ;;  %v6525_v59 = vsel %vm1977_vm4, %v4926_v49, %v7303_v20  ;;  %v1485_v8 = vcvt.s32.f32 %v1483_v34 }
 0x3e3   : > { %v1468_v60 = vand.u32 65535, %v6256_v28  ;;  %v1513_v28 = vand.u32 65535, %v6300_v38  ;;  %v1558_v38 = vand.u32 65535, %v6330_v40 }
 0x3e4   : > { %1697 = vmin.xlane.f32.xlu0 %v6519_v9 }
 0x3e5   : > { %v1470_v3 = vcvt.s32.f32 %v1468_v60  ;;  %v1543_v60 = vand.u32 65535, %v6315_v0 }
 0x3eb   : > { %v4928_v45 = vpop.eup %4927 }
 0x3ec   : > { %v6530_v17 = vadd.f32 %v4928_v45, %v7305_v22  ;;  %v6533_v35 = vsel %vm1978_vm5, %v4928_v45, %v7306_v63  ;;  %v1498_v63 = vand.u32 65535, %v6269_v2  ;;  %v1515_v2 = vcvt.s32.f32 %v1513_v28 }
 0x3ed   : > { %v1588_v28 = vand.u32 65535, %v6397_v7  ;;  %v491_v7 = vld [vmem:[%s464_s29] sm:$0xff] }
 0x3ee   : > { %v1500_v22 = vcvt.s32.f32 %v1498_v63  ;;  %v1545_v63 = vcvt.s32.f32 %v1543_v60 }
 0x406   : > { %v6536_v37 = vpop.xlane.xlu0 %1487 }
 0x407   : > { %vm1489_vm6 = vcmp.eq.f32.partialorder %v6244_v51, %v6536_v37  ;;  %v1528_v51 = vand.u32 65535, %v6297_v13 }
 0x408   : > { %v1490_v49 = vsel %vm1489_vm6, %v1485_v8, inf }
 0x409   : > { %1491 = vmin.xlane.f32.xlu0 %v1490_v49 }
 0x40d   : > { %v6541_v20 = vpop.xlane.xlu1 %1472 }
 0x40e   : > { %vm1474_vm7 = vcmp.eq.f32.partialorder %v6263_v11, %v6541_v20  ;;  %v1530_v11 = vcvt.s32.f32 %v1528_v51 }
 0x40f   : > { %v1475_v45 = vsel %vm1474_vm7, %v1470_v3, inf }
 0x410   : > { %1476 = vmin.xlane.f32.xlu1 %v1475_v45 }
 0x412   : > { %v6546_v31 = vpop.xlane.xlu1 %1502 }
 0x413   : > { %vm1504_vm8 = vcmp.eq.f32.partialorder %v6289_v33, %v6546_v31 }
 0x414   : > { %v1505_v34 = vsel %vm1504_vm8, %v1500_v22, inf  ;;  %v1573_v22 = vand.u32 65535, %v6373_v12  ;;  %v1603_v12 = vand.u32 65535, %v6414_v30 }
 0x415   : > { %1506 = vmin.xlane.f32.xlu1 %v1505_v34 }
 0x416   : > { %v6552_v8 = vpop.xlane.xlu1 %1532  ;;  %v1575_v40 = vcvt.s32.f32 %v1573_v22  ;;  %v1605_v60 = vcvt.s32.f32 %v1603_v12 }
 0x417   : > { %v6554_v49 = vpop.xlane.xlu0 %1517  ;;  %vm1534_vm9 = vcmp.eq.f32.partialorder %v6309_v50, %v6552_v8  ;;  %v1560_v50 = vcvt.s32.f32 %v1558_v38 }
 0x418   : > { %vm1519_vm10 = vcmp.eq.f32.partialorder %v6311_v41, %v6554_v49  ;;  %v1535_v33 = vsel %vm1534_vm9, %v1530_v11, inf  ;;  %v1590_v11 = vcvt.s32.f32 %v1588_v28 }
 0x419   : > { %v1520_v13 = vsel %vm1519_vm10, %v1515_v2, inf  ;;  %1536 = vmin.xlane.f32.xlu1 %v1535_v33  ;;  %v2043_v33 = vunpack.c.l.bf16 %v491_v7 }
 0x41a   : > { %1521 = vmin.xlane.f32.xlu0 %v1520_v13  ;;  %v1618_v13 = vand.u32 65535, %v6431_v44  ;;  %v1633_v44 = vand.u32 65535, %v6448_v46  ;;  %v1663_v46 = vand.u32 65535, %v6482_v29  ;;  %v1693_v29 = vand.u32 65535, %v6515_v10 }
 0x41b   : > { %v6562_v3 = vpop.xlane.xlu0 %1547  ;;  %v2047_v38 = vcombine.high %v2043_v33, %v2043_v33 }
 0x41c   : > { %vm1549_vm11 = vcmp.eq.f32.partialorder %v6327_v16, %v6562_v3  ;;  %v1635_v22 = vcvt.s32.f32 %v1633_v44  ;;  %v1665_v12 = vcvt.s32.f32 %v1663_v46 }
 0x41d   : > { %v1550_v45 = vsel %vm1549_vm11, %v1545_v63, inf  ;;  %4244 = vmatprep.subr.msk.mxu0 %vm2097_vm1, %v2047_v38 }
 0x41e   : > { %1551 = vmin.xlane.f32.xlu0 %v1550_v45  ;;  %v6566_v0 = vpop.xlane.xlu1 %1562  ;;  %4245 = vmatpush1.msk.msra.mxu0 %vm2097_vm1, %v2043_v33  ;;  %v5173_v45 = vmov 0.0   ;;  %v1695_v33 = vcvt.s32.f32 %v1693_v29 }
 0x41f   : > { %vm1564_vm12 = vcmp.eq.f32.partialorder %v6348_v5, %v6566_v0  ;;  %2170 = vmatprep.mubr.f32.mxu0 %v5173_v45  ;;  %2331 = vmatprep.mubr.f32.mxu1 %v5173_v45 }
 0x420   : > { %v1565_v41 = vsel %vm1564_vm12, %v1560_v50, inf }
 0x421   : > { %1566 = vmin.xlane.f32.xlu1 %v1565_v41 }
 0x428   : > { %v6571_v51 = vpop.xlane.xlu0 %1577 }
 0x429   : > { %vm1579_vm13 = vcmp.eq.f32.partialorder %v6384_v42, %v6571_v51 }
 0x42a   : > { %v1580_v16 = vsel %vm1579_vm13, %v1575_v40, inf }
 0x42b   : > { %1581 = vmin.xlane.f32.xlu0 %v1580_v16  ;;  %v1648_v16 = vand.u32 65535, %v6465_v48  ;;  %v1678_v48 = vand.u32 65535, %v6499_v23  ;;  %v1494_v23 = vcvt.f32.s32 %v6536_v37  ;;  %v1539_v37 = vcvt.f32.s32 %v6552_v8 }
 0x430   : > { %v6576_v34 = vpop.xlane.xlu1 %1592 }
 0x431   : > { %vm1594_vm14 = vcmp.eq.f32.partialorder %v6400_v57, %v6576_v34  ;;  %v2044_v57 = vunpack.c.h.bf16 %v491_v7 }
 0x432   : > { %v1595_v5 = vsel %vm1594_vm14, %v1590_v11, inf }
 0x433   : > { %1596 = vmin.xlane.f32.xlu1 %v1595_v5  ;;  %v2048_v30 = vcombine.high %v2044_v57, %v2044_v57 }
 0x435   : > { %4262 = vmatprep.subr.msk.mxu1 %vm2097_vm1, %v2048_v30 }
 0x436   : > { %4263 = vmatpush1.msk.msra.mxu1 %vm2097_vm1, %v2044_v57 }
 0x43a   : > { %v6581_v2 = vpop.xlane.xlu0 %1607 }
 0x43b   : > { %vm1609_vm15 = vcmp.eq.f32.partialorder %v6418_v58, %v6581_v2  ;;  %v1620_v58 = vcvt.s32.f32 %v1618_v13  ;;  %v1495_v13 = vshll.u32 %v1494_v23, 16 }
 0x43c   : > { %v1610_v42 = vsel %vm1609_vm15, %v1605_v60, inf }
 0x43d   : > { %1611 = vmin.xlane.f32.xlu0 %v1610_v42  ;;  %v1680_v42 = vcvt.s32.f32 %v1678_v48  ;;  %v4659_v48 = vld [vmem:[#allocation5 + $0x4] ss:$8 sps:$4 sm:$0xff]  }
 0x43e   : > { %3278 = vmatprep.subr.bf16.mxu0 %v4659_v48 }
 0x444   : > { %v6590_v63 = vpop.xlane.xlu1 %1622 }
 0x445   : > { %vm1624_vm2 = vcmp.eq.f32.partialorder %v6435_v25, %v6590_v63  ;;  %v1650_v25 = vcvt.s32.f32 %v1648_v16 }
 0x446   : > { %v1625_v50 = vsel %vm1624_vm2, %v1620_v58, inf }
 0x447   : > { %1626 = vmin.xlane.f32.xlu1 %v1625_v50 }
 0x44b   : > { %v6597_v41 = vpop.xlane.xlu0 %1637 }
 0x44c   : > { %vm1639_vm3 = vcmp.eq.f32.partialorder %v6451_v43, %v6597_v41 }
 0x44d   : > { %v1640_v40 = vsel %vm1639_vm3, %v1635_v22, inf }
 0x44e   : > { %1641 = vmin.xlane.f32.xlu0 %v1640_v40  ;;  %v1509_v40 = vcvt.f32.s32 %v6546_v31 }
 0x455   : > { %v6602_v28 = vpop.xlane.xlu1 %1652 }
 0x456   : > { %vm1654_vm4 = vcmp.eq.f32.partialorder %v6469_v53, %v6602_v28 }
 0x457   : > { %v1655_v11 = vsel %vm1654_vm4, %v1650_v25, inf }
 0x458   : > { %1656 = vmin.xlane.f32.xlu1 %v1655_v11  ;;  %v1510_v11 = vshll.u32 %v1509_v40, 16 }
 0x45d   : > { %v6607_v5 = vpop.xlane.xlu0 %1667 }
 0x45e   : > { %vm1669_vm5 = vcmp.eq.f32.partialorder %v6485_v4, %v6607_v5 }
 0x45f   : > { %v1670_v43 = vsel %vm1669_vm5, %v1665_v12, inf  ;;  %v1524_v12 = vcvt.f32.s32 %v6554_v49 }
 0x460   : > { %1671 = vmin.xlane.f32.xlu0 %v1670_v43 }
 0x461   : > { %v1525_v31 = vshll.u32 %v1524_v12, 16 }
 0x467   : > { %v6612_v60 = vpop.xlane.xlu1 %1682 }
 0x468   : > { %vm1684_vm6 = vcmp.eq.f32.partialorder %v6503_v27, %v6612_v60  ;;  %v1479_v27 = vcvt.f32.s32 %v6541_v20 }
 0x469   : > { %v1685_v53 = vsel %vm1684_vm6, %v1680_v42, inf }
 0x46a   : > { %1686 = vmin.xlane.f32.xlu1 %v1685_v53  ;;  %v1480_v10 = vshll.u32 %v1479_v27, 16 }
 0x471   : > { %v6617_v7 = vpop.xlane.xlu0 %1697 }
 0x472   : > { %vm1699_vm7 = vcmp.eq.f32.partialorder %v6519_v9, %v6617_v7 }
 0x473   : > { %v1700_v4 = vsel %vm1699_vm7, %v1695_v33, inf  ;;  %v1540_v33 = vshll.u32 %v1539_v37, 16 }
 0x474   : > { %1701 = vmin.xlane.f32.xlu0 %v1700_v4 }
 0x496   : > { %v1492_v57 = vpop.xlane.xlu0 %1491 }
 0x497   : > { %v1493_v38 = vcvt.f32.s32 %v1492_v57 }
 0x499   : > { %v1496_v30 = vadd.s32 %v1495_v13, %v1493_v38  ;;  %v1554_v13 = vcvt.f32.s32 %v6562_v3 }
 0x49b   : > { %v1836_v58 = vand.u32 4294967292, %v1496_v30  ;;  %vm1996_vm8 = vcmp.eq.s32.totalorder %v5479_v62, %v1496_v30  ;;  %v1555_v40 = vshll.u32 %v1554_v13, 16 }
 0x49d   : > { %v1868_v50 = vadd.f32 1e-08, %v1836_v58  ;;  %v1477_v44 = vpop.xlane.xlu1 %1476 }
 0x49e   : > { %v1478_v22 = vcvt.f32.s32 %v1477_v44  ;;  %v1569_v44 = vcvt.f32.s32 %v6566_v0 }
 0x49f   : > { %4929 = vrcp.f32 %v1868_v50 }
 0x4a0   : > { %v1481_v16 = vadd.s32 %v1480_v10, %v1478_v22 }
 0x4a2   : > { %v1835_v9 = vand.u32 4294967292, %v1481_v16  ;;  %v1507_v25 = vpop.xlane.xlu1 %1506  ;;  %vm1995_vm9 = vcmp.eq.s32.totalorder %v5503_v39, %v1481_v16 }
 0x4a3   : > { %v1508_v46 = vcvt.f32.s32 %v1507_v25 }
 0x4a4   : > { %v1867_v43 = vadd.f32 1e-08, %v1835_v9 }
 0x4a5   : > { %v1511_v20 = vadd.s32 %v1510_v11, %v1508_v46 }
 0x4a6   : > { %4931 = vrcp.f32 %v1867_v43  ;;  %v1537_v53 = vpop.xlane.xlu1 %1536 }
 0x4a7   : > { %v1837_v42 = vand.u32 4294967292, %v1511_v20  ;;  %v1522_v29 = vpop.xlane.xlu0 %1521  ;;  %v1538_v4 = vcvt.f32.s32 %v1537_v53  ;;  %v1584_v53 = vcvt.f32.s32 %v6571_v51  ;;  %vm1997_vm10 = vcmp.eq.s32.totalorder %v5495_v24, %v1511_v20  ;;  %v7307_v20 = vld [vmem:[#allocation30_spill] sm:$0xff] }
 0x4a8   : > { %v1523_v23 = vcvt.f32.s32 %v1522_v29 }
 0x4a9   : > { %v4930_v57 = vpop.eup %4929  ;;  %v1869_v8 = vadd.f32 1e-08, %v1837_v42  ;;  %v1541_v27 = vadd.s32 %v1540_v33, %v1538_v4 }
 0x4aa   : > { %v1916_v49 = vadd.f32 %v4930_v57, %v6278_v19  ;;  %v2012_v38 = vsel %vm1996_vm8, %v4930_v57, %v6281_v61  ;;  %v1526_v58 = vadd.s32 %v1525_v31, %v1523_v23  ;;  %v1570_v19 = vshll.u32 %v1569_v44, 16 }
 0x4ab   : > { %4933 = vrcp.f32 %v1869_v8  ;;  %v1552_v50 = vpop.xlane.xlu0 %1551  ;;  %v1839_v10 = vand.u32 4294967292, %v1541_v27  ;;  %v1585_v31 = vshll.u32 %v1584_v53, 16  ;;  %vm1999_vm11 = vcmp.eq.s32.totalorder %v5533_v26, %v1541_v27  ;;  %v4657_v27 = vld [vmem:[#allocation5] ss:$8 sps:$4 sm:$0xff]  }
 0x4ac   : > { %4935 = vrcp.f32 %v1916_v49  ;;  %v1838_v22 = vand.u32 4294967292, %v1526_v58  ;;  %v1553_v9 = vcvt.f32.s32 %v1552_v50  ;;  %vm1998_vm12 = vcmp.eq.s32.totalorder %v5517_v56, %v1526_v58  ;;  %v7308_v50 = vld [vmem:[#allocation20_spill] sm:$0xff]  ;;  %v7309_v58 = vld [vmem:[#allocation31_spill] sm:$0xff] }
 0x4ad   : > { %v1871_v25 = vadd.f32 1e-08, %v1839_v10  ;;  %v1599_v49 = vcvt.f32.s32 %v6576_v34  ;;  %v4662_v56 = vld [vmem:[#allocation5 + $0x14] ss:$8 sps:$4 sm:$0xff]  }
 0x4ae   : > { %v1870_v3 = vadd.f32 1e-08, %v1838_v22  ;;  %v1567_v11 = vpop.xlane.xlu1 %1566  ;;  %v1556_v62 = vadd.s32 %v1555_v40, %v1553_v9  ;;  %v7310_v10 = vld [vmem:[#allocation32_spill] sm:$0xff] }
 0x4af   : > { %v1568_v30 = vcvt.f32.s32 %v1567_v11  ;;  %4937 = vrcp.f32 %v1871_v25  ;;  %v1600_v22 = vshll.u32 %v1599_v49, 16  ;;  %v4660_v25 = vld [vmem:[#allocation5 + $0x10] ss:$8 sps:$4 sm:$0xff]  }
 0x4b0   : > { %v4932_v46 = vpop.eup %4931  ;;  %4939 = vrcp.f32 %v1870_v3  ;;  %v1840_v0 = vand.u32 4294967292, %v1556_v62  ;;  %vm2000_vm13 = vcmp.eq.s32.totalorder %v7308_v50, %v1556_v62  ;;  %v7311_v11 = vld [vmem:[#allocation21_spill] sm:$0xff] }
 0x4b1   : > { %v1915_v61 = vadd.f32 %v4932_v46, %v6336_v36  ;;  %v2011_v37 = vsel %vm1995_vm9, %v4932_v46, %v6339_v21  ;;  %v1571_v12 = vadd.s32 %v1570_v19, %v1568_v30  ;;  %v4665_v46 = vld [vmem:[#allocation5 + $0x24] ss:$8 sps:$4 sm:$0xff]   ;;  %v7312_v19 = vld [vmem:[#allocation33_spill] sm:$0xff] }
 0x4b2   : > { %v1872_v43 = vadd.f32 1e-08, %v1840_v0 }
 0x4b3   : > { %4941 = vrcp.f32 %v1915_v61  ;;  %v1841_v48 = vand.u32 4294967292, %v1571_v12  ;;  %vm2001_vm14 = vcmp.eq.s32.totalorder %v7311_v11, %v1571_v12  ;;  %v4663_v12 = vld [vmem:[#allocation5 + $0x20] ss:$8 sps:$4 sm:$0xff]  }
 0x4b4   : > { %4943 = vrcp.f32 %v1872_v43 }
 0x4b5   : > { %v4934_v42 = vpop.eup %4933  ;;  %v1873_v36 = vadd.f32 1e-08, %v1841_v48 }
 0x4b6   : > { %v4936_v29 = vpop.eup %4935  ;;  %v1917_v39 = vadd.f32 %v4934_v42, %v6343_v47  ;;  %v2013_v16 = vsel %vm1997_vm10, %v4934_v42, %v6346_v14  ;;  %v1614_v42 = vcvt.f32.s32 %v6581_v2 }
 0x4b7   : > { %v2028_v33 = vmul.f32 %v4936_v29, %v2012_v38  ;;  %v4668_v29 = vld [vmem:[#allocation5 + $0x34] ss:$8 sps:$4 sm:$0xff]  }
 0x4b8   : > { %4945 = vrcp.f32 %v1917_v39  ;;  %v1582_v21 = vpop.xlane.xlu0 %1581  ;;  %v1615_v2 = vshll.u32 %v1614_v42, 16 }
 0x4b9   : > { %4947 = vrcp.f32 %v1873_v36  ;;  %v1583_v4 = vcvt.f32.s32 %v1582_v21  ;;  %v4938_v23 = vpop.eup %4937  ;;  %v4666_v21 = vld [vmem:[#allocation5 + $0x30] ss:$8 sps:$4 sm:$0xff]  }
 0x4ba   : > { %v4940_v57 = vpop.eup %4939  ;;  %v1919_v51 = vadd.f32 %v4938_v23, %v6356_v54  ;;  %v2015_v24 = vsel %vm1999_vm11, %v4938_v23, %v6359_v55 }
 0x4bb   : > { %v6642_v47 = vadd.s32 %v1585_v31, %v1583_v4  ;;  %v1918_v14 = vadd.f32 %v4940_v57, %v6362_v1  ;;  %v2014_v13 = vsel %vm1998_vm12, %v4940_v57, %v7307_v20  ;;  %v7314_v4 = vld [vmem:[#allocation22_spill] sm:$0xff]  ;;  %v7316_v20 = vld [vmem:[#allocation35_spill] sm:$0xff] }
 0x4bc   : > { %4949 = vrcp.f32 %v1919_v51  ;;  %v4671_v57 = vld [vmem:[#allocation5 + $0x44] ss:$8 sps:$4 sm:$0xff]  }
 0x4bd   : > { %v4942_v8 = vpop.eup %4941  ;;  %v1842_v38 = vand.u32 4294967292, %v6642_v47  ;;  %4951 = vrcp.f32 %v1918_v14  ;;  %vm2002_vm15 = vcmp.eq.s32.totalorder %v7314_v4, %v6642_v47  ;;  %v7315_v14 = vld [vmem:[#allocation34_spill] sm:$0xff] }
 0x4be   : > { %v2027_v26 = vmul.f32 %v4942_v8, %v2011_v37  ;;  %v4944_v54 = vpop.eup %4943  ;;  %v7313_v37 = vld [vmem:[#allocation36_spill] sm:$0xff]  ;;  %v4669_v47 = vld [vmem:[#allocation5 + $0x40] ss:$8 sps:$4 sm:$0xff]  }
 0x4bf   : > { %v1874_v55 = vadd.f32 1e-08, %v1842_v38  ;;  %v1920_v44 = vadd.f32 %v4944_v54, %v7309_v58  ;;  %v2016_v1 = vsel %vm2000_vm13, %v4944_v54, %v7310_v10  ;;  %v1629_v54 = vcvt.f32.s32 %v6590_v63  ;;  %v4677_v10 = vld [vmem:[#allocation5 + $0x64] ss:$8 sps:$4 sm:$0xff]  }
 0x4c0   : > { %4246 = vmatmul.mubr.msk.f32.vlgmr.msra.gmra.mrb[0].mxu0 %vm922_vm0, %v2027_v26  ;;  %4264 = vmatmul.mubr.msk.f32.vlgmr.msra.gmra.mrb[0].mxu1 %vm922_vm0, %v2027_v26  ;;  %v1597_v34 = vpop.xlane.xlu1 %1596  ;;  %v4674_v26 = vld [vmem:[#allocation5 + $0x54] ss:$8 sps:$4 sm:$0xff]  }
 0x4c1   : > { %4953 = vrcp.f32 %v1874_v55  ;;  %v1598_v40 = vcvt.f32.s32 %v1597_v34  ;;  %2176 = vmatprep.mubr.f32.mxu0 %v5173_v45  ;;  %2337 = vmatprep.mubr.f32.mxu1 %v5173_v45 }
 0x4c2   : > { %v4946_v9 = vpop.eup %4945  ;;  %4955 = vrcp.f32 %v1920_v44  ;;  %3279 = vmatpush1.bf16.msra.mxu0 %v4657_v27  ;;  %v7317_v44 = vld [vmem:[#allocation23_spill] sm:$0xff] }
 0x4c3   : > { %v4948_v3 = vpop.eup %4947  ;;  %v6656_v62 = vadd.s32 %v1600_v22, %v1598_v40  ;;  %v2029_v30 = vmul.f32 %v4946_v9, %v2013_v16  ;;  %3280 = vmatprep.subr.bf16.mxu0 %v4662_v56  ;;  %v4672_v56 = vld [vmem:[#allocation5 + $0x50] ss:$8 sps:$4 sm:$0xff]   ;;  %v7319_v22 = vld [vmem:[#allocation38_spill] sm:$0xff]  ;;  %v1630_v9 = vshll.u32 %v1629_v54, 16 }
 0x4c4   : > { %v1921_v61 = vadd.f32 %v4948_v3, %v7312_v19  ;;  %v2017_v0 = vsel %vm2001_vm14, %v4948_v3, %v7313_v37  ;;  %4247 = vmatmul.mubr.msk.f32.gmra.mrb[2].mxu0 %vm922_vm0, %v2028_v33  ;;  %4265 = vmatmul.mubr.msk.f32.gmra.mrb[2].mxu1 %vm922_vm0, %v2028_v33  ;;  %v4675_v3 = vld [vmem:[#allocation5 + $0x60] ss:$8 sps:$4 sm:$0xff]   ;;  %v4678_v37 = vld [vmem:[#allocation5 + $0x70] ss:$8 sps:$4 sm:$0xff]  }
 0x4c5   : > { %v1843_v43 = vand.u32 4294967292, %v6656_v62  ;;  %2182 = vmatprep.mubr.f32.mxu0 %v5173_v45  ;;  %2343 = vmatprep.mubr.f32.mxu1 %v5173_v45  ;;  %vm2003_vm1 = vcmp.eq.s32.totalorder %v7317_v44, %v6656_v62  ;;  %v4680_v62 = vld [vmem:[#allocation5 + $0x74] ss:$8 sps:$4 sm:$0xff]   ;;  %v7325_v54 = vld [vmem:[#allocation42_spill] sm:$0xff] }
 0x4c6   : > { %4957 = vrcp.f32 %v1921_v61  ;;  %3281 = vmatpush1.bf16.msra.mxu0 %v4660_v25  ;;  %v4950_v48 = vpop.eup %4949 }
 0x4c7   : > { %v1875_v53 = vadd.f32 1e-08, %v1843_v43  ;;  %3282 = vmatprep.subr.bf16.mxu0 %v4665_v46  ;;  %v4952_v39 = vpop.eup %4951  ;;  %v2031_v16 = vmul.f32 %v4950_v48, %v2015_v24  ;;  %v1644_v46 = vcvt.f32.s32 %v6597_v41 }
 0x4c8   : > { %4248 = vmatmul.mubr.msk.f32.gmra.mrb[4].mxu0 %vm922_vm0, %v2029_v30  ;;  %4266 = vmatmul.mubr.msk.f32.gmra.mrb[4].mxu1 %vm922_vm0, %v2029_v30  ;;  %v2030_v36 = vmul.f32 %v4952_v39, %v2014_v13 }
 0x4c9   : > { %4959 = vrcp.f32 %v1875_v53  ;;  %2188 = vmatprep.mubr.f32.mxu0 %v5173_v45  ;;  %2349 = vmatprep.mubr.f32.mxu1 %v5173_v45  ;;  %v1645_v48 = vshll.u32 %v1644_v46, 16  ;;  %v7320_v53 = vld [vmem:[#allocation24_spill] sm:$0xff]  ;;  %v4693_v46 = vld [vmem:[#allocation5 + $0xc0] ss:$8 sps:$4 sm:$0xff]  }
 0x4ca   : > { %v1612_v33 = vpop.xlane.xlu0 %1611  ;;  %3283 = vmatpush1.bf16.msra.mxu0 %v4663_v12  ;;  %v4683_v12 = vld [vmem:[#allocation5 + $0x84] ss:$8 sps:$4 sm:$0xff]  }
 0x4cb   : > { %v4954_v31 = vpop.eup %4953  ;;  %v1613_v23 = vcvt.f32.s32 %v1612_v33  ;;  %3284 = vmatprep.subr.bf16.mxu0 %v4668_v29  ;;  %v7321_v29 = vld [vmem:[#allocation39_spill] sm:$0xff] }
 0x4cc   : > { %v4956_v51 = vpop.eup %4955  ;;  %v1922_v24 = vadd.f32 %v4954_v31, %v7315_v14  ;;  %v2018_v8 = vsel %vm2002_vm15, %v4954_v31, %v7316_v20  ;;  %4249 = vmatmul.mubr.msk.f32.gmra.mrb[6].mxu0 %vm922_vm0, %v2030_v36  ;;  %4267 = vmatmul.mubr.msk.f32.gmra.mrb[6].mxu1 %vm922_vm0, %v2030_v36  ;;  %v4684_v14 = vld [vmem:[#allocation5 + $0x90] ss:$8 sps:$4 sm:$0xff]  }
 0x4cd   : > { %v6676_v13 = vadd.s32 %v1615_v2, %v1613_v23  ;;  %2194 = vmatprep.mubr.f32.mxu0 %v5173_v45  ;;  %2355 = vmatprep.mubr.f32.mxu1 %v5173_v45  ;;  %v2032_v49 = vmul.f32 %v4956_v51, %v2016_v1  ;;  %v7318_v1 = vld [vmem:[#allocation37_spill] sm:$0xff] }
 0x4ce   : > { %4961 = vrcp.f32 %v1922_v24  ;;  %3285 = vmatpush1.bf16.msra.mxu0 %v4666_v21  ;;  %v4681_v21 = vld [vmem:[#allocation5 + $0x80] ss:$8 sps:$4 sm:$0xff]   ;;  %v4686_v23 = vld [vmem:[#allocation5 + $0x94] ss:$8 sps:$4 sm:$0xff]   ;;  %v4689_v24 = vld [vmem:[#allocation5 + $0xa4] ss:$8 sps:$4 sm:$0xff]  }
 0x4cf   : > { %v1844_v38 = vand.u32 4294967292, %v6676_v13  ;;  %3286 = vmatprep.subr.bf16.mxu0 %v4671_v57  ;;  %vm2004_vm2 = vcmp.eq.s32.totalorder %v7320_v53, %v6676_v13  ;;  %v1659_v57 = vcvt.f32.s32 %v6602_v28 }
 0x4d0   : > { %v4958_v27 = vpop.eup %4957  ;;  %4250 = vmatmul.mubr.msk.f32.gmra.mrb[8].mxu0 %vm922_vm0, %v2031_v16  ;;  %4268 = vmatmul.mubr.msk.f32.gmra.mrb[8].mxu1 %vm922_vm0, %v2031_v16  ;;  %v7322_v16 = vld [vmem:[#allocation40_spill] sm:$0xff] }
 0x4d1   : > { %v1876_v50 = vadd.f32 1e-08, %v1844_v38  ;;  %2200 = vmatprep.mubr.f32.mxu0 %v5173_v45  ;;  %2361 = vmatprep.mubr.f32.mxu1 %v5173_v45  ;;  %v2033_v55 = vmul.f32 %v4958_v27, %v2017_v0  ;;  %v4692_v38 = vld [vmem:[#allocation5 + $0xb4] ss:$8 sps:$4 sm:$0xff]  }
 0x4d2   : > { %3287 = vmatpush1.bf16.msra.mxu0 %v4669_v47  ;;  %v7323_v47 = vld [vmem:[#allocation25_spill] sm:$0xff] }
 0x4d3   : > { %v4960_v58 = vpop.eup %4959  ;;  %4963 = vrcp.f32 %v1876_v50  ;;  %3288 = vmatprep.subr.bf16.mxu0 %v4674_v26  ;;  %v7324_v26 = vld [vmem:[#allocation41_spill] sm:$0xff] }
 0x4d4   : > { %v1923_v34 = vadd.f32 %v4960_v58, %v7318_v1  ;;  %v2019_v40 = vsel %vm2003_vm1, %v4960_v58, %v7319_v22  ;;  %v1627_v63 = vpop.xlane.xlu1 %1626  ;;  %4251 = vmatmul.mubr.msk.f32.gmra.mrb[10].mxu0 %vm922_vm0, %v2032_v49  ;;  %4269 = vmatmul.mubr.msk.f32.gmra.mrb[10].mxu1 %vm922_vm0, %v2032_v49  ;;  %v4687_v49 = vld [vmem:[#allocation5 + $0xa0] ss:$8 sps:$4 sm:$0xff]   ;;  %v1674_v58 = vcvt.f32.s32 %v6607_v5  ;;  %v4690_v1 = vld [vmem:[#allocation5 + $0xb0] ss:$8 sps:$4 sm:$0xff]   ;;  %v4695_v22 = vld [vmem:[#allocation5 + $0xc4] ss:$8 sps:$4 sm:$0xff]  }
 0x4d5   : > { %v1628_v25 = vcvt.f32.s32 %v1627_v63  ;;  %2206 = vmatprep.mubr.f32.mxu0 %v5173_v45  ;;  %2367 = vmatprep.mubr.f32.mxu1 %v5173_v45  ;;  %v7327_v5 = vld [vmem:[#allocation43_spill] sm:$0xff] }
 0x4d6   : > { %4965 = vrcp.f32 %v1923_v34  ;;  %3289 = vmatpush1.bf16.msra.mxu0 %v4672_v56 }
 0x4d7   : > { %v1631_v11 = vadd.s32 %v1630_v9, %v1628_v25  ;;  %3290 = vmatprep.subr.bf16.mxu0 %v4677_v10  ;;  %v1675_v9 = vshll.u32 %v1674_v58, 16  ;;  %v7326_v25 = vld [vmem:[#allocation26_spill] sm:$0xff] }
 0x4d8   : > { %v4962_v30 = vpop.eup %4961  ;;  %4252 = vmatmul.mubr.msk.f32.gmra.mrb[12].mxu0 %vm922_vm0, %v2033_v55  ;;  %4270 = vmatmul.mubr.msk.f32.gmra.mrb[12].mxu1 %vm922_vm0, %v2033_v55 }
 0x4d9   : > { %v1845_v19 = vand.u32 4294967292, %v1631_v11  ;;  %2212 = vmatprep.mubr.f32.mxu0 %v5173_v45  ;;  %2373 = vmatprep.mubr.f32.mxu1 %v5173_v45  ;;  %v2034_v61 = vmul.f32 %v4962_v30, %v2018_v8  ;;  %v1660_v8 = vshll.u32 %v1659_v57, 16  ;;  %vm2005_vm3 = vcmp.eq.s32.totalorder %v7323_v47, %v1631_v11  ;;  %v7330_v57 = vld [vmem:[#allocation28_spill] sm:$0xff] }
 0x4da   : > { %3291 = vmatpush1.bf16.msra.mxu0 %v4675_v3 }
 0x4db   : > { %v1877_v0 = vadd.f32 1e-08, %v1845_v19  ;;  %v1642_v43 = vpop.xlane.xlu0 %1641  ;;  %3292 = vmatprep.subr.bf16.mxu0 %v4680_v62  ;;  %v7328_v62 = vld [vmem:[#allocation44_spill] sm:$0xff] }
 0x4dc   : > { %v1643_v42 = vcvt.f32.s32 %v1642_v43  ;;  %4253 = vmatmul.mubr.msk.f32.gmra.mrb[14].mxu0 %vm922_vm0, %v2034_v61  ;;  %4271 = vmatmul.mubr.msk.f32.gmra.mrb[14].mxu1 %vm922_vm0, %v2034_v61  ;;  %v4698_v61 = vld [vmem:[#allocation5 + $0xd4] ss:$8 sps:$4 sm:$0xff]   ;;  %v1689_v43 = vcvt.f32.s32 %v6612_v60 }
 0x4dd   : > { %v4964_v41 = vpop.eup %4963  ;;  %4967 = vrcp.f32 %v1877_v0  ;;  %2218 = vmatprep.mubr.f32.mxu0 %v5173_v45  ;;  %2379 = vmatprep.mubr.f32.mxu1 %v5173_v45 }
 0x4de   : > { %v1924_v39 = vadd.f32 %v4964_v41, %v7321_v29  ;;  %v2020_v36 = vsel %vm2004_vm2, %v4964_v41, %v7322_v16  ;;  %v1646_v33 = vadd.s32 %v1645_v48, %v1643_v42  ;;  %3293 = vmatpush1.bf16.msra.mxu0 %v4678_v37  ;;  %v4696_v42 = vld [vmem:[#allocation5 + $0xd0] ss:$8 sps:$4 sm:$0xff]   ;;  %v1690_v29 = vshll.u32 %v1689_v43, 16  ;;  %v4723_v43 = vld [vmem:[#allocation2 + $0x4] ss:$8 sps:$4 sm:$0xff]  }
 0x4df   : > { %3294 = vmatprep.subr.bf16.mxu0 %v4683_v12  ;;  %2845 = vmatprep.subr.bf16.mxu1 %v4723_v43 }
 0x4e0   : > { %v4966_v31 = vpop.eup %4965  ;;  %4969 = vrcp.f32 %v1924_v39  ;;  %v1846_v2 = vand.u32 4294967292, %v1646_v33  ;;  %vm2006_vm4 = vcmp.eq.s32.totalorder %v7326_v25, %v1646_v33  ;;  %v7329_v39 = vld [vmem:[#allocation27_spill] sm:$0xff] }
 0x4e1   : > { %v2035_v4 = vmul.f32 %v4966_v31, %v2019_v40 }
 0x4e2   : > { %v1878_v51 = vadd.f32 1e-08, %v1846_v2  ;;  %3295 = vmatpush1.bf16.msra.mxu0 %v4681_v21 }
 0x4e3   : > { %4254 = vmatmul.mubr.msk.f32.gmra.mrb[16].mxu0 %vm922_vm0, %v2035_v4  ;;  %4272 = vmatmul.mubr.msk.f32.gmra.mrb[16].mxu1 %vm922_vm0, %v2035_v4  ;;  %v1704_v4 = vcvt.f32.s32 %v6617_v7 }
 0x4e4   : > { %4971 = vrcp.f32 %v1878_v51  ;;  %2224 = vmatprep.mubr.f32.mxu0 %v5173_v45  ;;  %2385 = vmatprep.mubr.f32.mxu1 %v5173_v45 }
 0x4e5   : > { %v1657_v20 = vpop.xlane.xlu1 %1656  ;;  %3296 = vmatprep.subr.bf16.mxu0 %v4686_v23 }
 0x4e6   : > { %v1658_v13 = vcvt.f32.s32 %v1657_v20  ;;  %3297 = vmatpush1.bf16.msra.mxu0 %v4684_v14  ;;  %v7332_v14 = vld [vmem:[#allocation46_spill] sm:$0xff] }
 0x4e7   : > { %v4968_v28 = vpop.eup %4967  ;;  %3298 = vmatprep.subr.bf16.mxu0 %v4689_v24 }
 0x4e8   : > { %v1925_v27 = vadd.f32 %v4968_v28, %v7324_v26  ;;  %v2021_v50 = vsel %vm2005_vm3, %v4968_v28, %v7325_v54  ;;  %v1661_v55 = vadd.s32 %v1660_v8, %v1658_v13  ;;  %v1705_v8 = vshll.u32 %v1704_v4, 16  ;;  %v4765_v4 = vld [vmem:[#allocation2 + $0x74] ss:$8 sps:$4 sm:$0xff]  }
 0x4ea   : > { %v4970_v56 = vpop.eup %4969  ;;  %4973 = vrcp.f32 %v1925_v27  ;;  %v1847_v44 = vand.u32 4294967292, %v1661_v55  ;;  %3299 = vmatpush1.bf16.msra.mxu0 %v4687_v49  ;;  %vm2007_vm5 = vcmp.eq.s32.totalorder %v7329_v39, %v1661_v55  ;;  %v4741_v39 = vld [vmem:[#allocation2 + $0x34] ss:$8 sps:$4 sm:$0xff]  }
 0x4eb   : > { %v2036_v10 = vmul.f32 %v4970_v56, %v2020_v36  ;;  %3300 = vmatprep.subr.bf16.mxu0 %v4692_v38 }
 0x4ec   : > { %v1879_v34 = vadd.f32 1e-08, %v1847_v44 }
 0x4ed   : > { %4255 = vmatmul.mubr.msk.f32.gmra.mrb[18].mxu0 %vm922_vm0, %v2036_v10  ;;  %4273 = vmatmul.mubr.msk.f32.gmra.mrb[18].mxu1 %vm922_vm0, %v2036_v10  ;;  %v1672_v40 = vpop.xlane.xlu0 %1671 }
 0x4ee   : > { %v4972_v63 = vpop.eup %4971  ;;  %4975 = vrcp.f32 %v1879_v34  ;;  %v1673_v3 = vcvt.f32.s32 %v1672_v40  ;;  %2230 = vmatprep.mubr.f32.mxu0 %v5173_v45  ;;  %2391 = vmatprep.mubr.f32.mxu1 %v5173_v45  ;;  %v4704_v34 = vld [vmem:[#allocation5 + $0xf4] ss:$8 sps:$4 sm:$0xff]  }
 0x4ef   : > { %v1926_v11 = vadd.f32 %v4972_v63, %v7327_v5  ;;  %v2022_v30 = vsel %vm2006_vm4, %v4972_v63, %v7328_v62  ;;  %3301 = vmatpush1.bf16.msra.mxu0 %v4690_v1  ;;  %v4702_v1 = vld [vmem:[#allocation5 + $0xf0] ss:$8 sps:$4 sm:$0xff]   ;;  %v4713_v5 = vld [vmem:[%s5400_s21 + $0x60] sm:$0xff]   ;;  %v4715_v62 = vld [vmem:[%s5400_s21 + $0x68] sm:$0xff]  }
 0x4f0   : > { %v1676_v19 = vadd.s32 %v1675_v9, %v1673_v3  ;;  %3302 = vmatprep.subr.bf16.mxu0 %v4695_v22  ;;  %v4705_v22 = vld [vmem:[%s5400_s21 + $0x40] sm:$0xff]   ;;  %v4709_v63 = vld [vmem:[%s5400_s21 + $0x50] sm:$0xff]   ;;  %v4712_v3 = vld [vmem:[%s5400_s21 + $0x18] sm:$0xff]  }
 0x4f1   : > { %4977 = vrcp.f32 %v1926_v11  ;;  %2669 = vxpose.xlu1.c.b16.start [1/8] %v4705_v22, 128  ;;  %v4710_v9 = vld [vmem:[%s5400_s21 + $0x10] sm:$0xff]   ;;  %v4714_v11 = vld [vmem:[%s5400_s21 + $0x20] sm:$0xff]  }
 0x4f2   : > { %v1848_v37 = vand.u32 4294967292, %v1676_v19  ;;  %vm2008_vm6 = vcmp.eq.s32.totalorder %v7330_v57, %v1676_v19  ;;  %v4718_v19 = vld [vmem:[%s5400_s21 + $0x30] sm:$0xff]   ;;  %v4769_v57 = vld [vmem:[#allocation2 + $0x80] ss:$8 sps:$4 sm:$0xff]  }
 0x4f3   : > { %3303 = vmatpush1.bf16.msra.mxu0 %v4693_v46  ;;  %v4717_v46 = vld [vmem:[%s5400_s21 + $0x70] sm:$0xff]  }
 0x4f4   : > { %v4974_v0 = vpop.eup %4973  ;;  %v1880_v12 = vadd.f32 1e-08, %v1848_v37  ;;  %3304 = vmatprep.subr.bf16.mxu0 %v4698_v61  ;;  %v4719_v61 = vld [vmem:[%s5400_s21 + $0x78] sm:$0xff]  }
 0x4f5   : > { %v2037_v48 = vmul.f32 %v4974_v0, %v2021_v50  ;;  %v4720_v37 = vld [vmem:[%s5400_s21 + $0x38] sm:$0xff]   ;;  %v4721_v0 = vld [vmem:[#allocation2] ss:$8 sps:$4 sm:$0xff]  }
 0x4f6   : > { %4979 = vrcp.f32 %v1880_v12  ;;  %v7333_v12 = vmov 2   ;;  %2846 = vmatpush1.bf16.msra.mxu1 %v4721_v0 }
 0x4f7   : > { %v1687_v41 = vpop.xlane.xlu1 %1686  ;;  %4256 = vmatmul.mubr.msk.f32.gmra.mrb[20].mxu0 %vm922_vm0, %v2037_v48  ;;  %4274 = vmatmul.mubr.msk.f32.gmra.mrb[20].mxu1 %vm922_vm0, %v2037_v48  ;;  %v4726_v48 = vld [vmem:[#allocation5 + $0x104] ss:$8 sps:$4 sm:$0xff]  }
 0x4f8   : > { %v4976_v53 = vpop.eup %4975  ;;  %v1688_v16 = vcvt.f32.s32 %v1687_v41  ;;  %2236 = vmatprep.mubr.f32.mxu0 %v5173_v45  ;;  %2397 = vmatprep.mubr.f32.mxu1 %v5173_v45  ;;  %v4727_v41 = vld [vmem:[#allocation2 + $0x10] ss:$8 sps:$4 sm:$0xff]  }
 0x4f9   : > { %v1927_v60 = vadd.f32 %v4976_v53, %v6490_v18  ;;  %v2023_v36 = vsel %vm2007_vm5, %v4976_v53, %v6493_v6  ;;  %3305 = vmatpush1.bf16.msra.mxu0 %v4696_v42  ;;  %v7331_v6 = vld [vmem:[#allocation45_spill] sm:$0xff]  ;;  %v4735_v53 = vld [vmem:[#allocation2 + $0x24] ss:$8 sps:$4 sm:$0xff]  }
 0x4fa   : > { %v1691_v33 = vadd.s32 %v1690_v29, %v1688_v16  ;;  %v4729_v42 = vld [vmem:[#allocation2 + $0x14] ss:$8 sps:$4 sm:$0xff]   ;;  %v4733_v29 = vld [vmem:[#allocation2 + $0x20] ss:$8 sps:$4 sm:$0xff]   ;;  %v4739_v16 = vld [vmem:[#allocation2 + $0x30] ss:$8 sps:$4 sm:$0xff]  }
 0x4fb   : > { %v4978_v21 = vpop.eup %4977  ;;  %4981 = vrcp.f32 %v1927_v60  ;;  %2847 = vmatprep.subr.bf16.mxu1 %v4729_v42  ;;  %v4745_v60 = vld [vmem:[#allocation2 + $0x40] ss:$8 sps:$4 sm:$0xff]  }
 0x4fc   : > { %v1849_v31 = vand.u32 4294967292, %v1691_v33  ;;  %v2038_v2 = vmul.f32 %v4978_v21, %v2022_v30  ;;  %vm2009_vm7 = vcmp.eq.s32.totalorder %v5685_v32, %v1691_v33  ;;  %v4699_v32 = vld [vmem:[#allocation5 + $0xe0] ss:$8 sps:$4 sm:$0xff]   ;;  %2848 = vmatpush1.bf16.msra.mxu1 %v4727_v41  ;;  %v4753_v33 = vld [vmem:[#allocation2 + $0x54] ss:$8 sps:$4 sm:$0xff]  }
 0x4fd   : > { %v4716_v30 = vld [vmem:[%s5400_s21 + $0x28] sm:$0xff]   ;;  %2849 = vmatprep.subr.bf16.mxu1 %v4735_v53  ;;  %v4751_v21 = vld [vmem:[#allocation2 + $0x50] ss:$8 sps:$4 sm:$0xff]  }
 0x4fe   : > { %v1881_v23 = vadd.f32 1e-08, %v1849_v31  ;;  %4257 = vmatmul.mubr.msk.f32.gmra.mrb[22].mxu0 %vm922_vm0, %v2038_v2  ;;  %4275 = vmatmul.mubr.msk.f32.gmra.mrb[22].mxu1 %vm922_vm0, %v2038_v2  ;;  %v4759_v31 = vld [vmem:[#allocation2 + $0x64] ss:$8 sps:$4 sm:$0xff]   ;;  %v4757_v2 = vld [vmem:[#allocation2 + $0x60] ss:$8 sps:$4 sm:$0xff]  }
 0x4ff   : > { %2242 = vmatprep.mubr.f32.mxu0 %v5173_v45  ;;  %2403 = vmatprep.mubr.f32.mxu1 %v5173_v45 }
 0x500   : > { %v4980_v18 = vpop.eup %4979  ;;  %4983 = vrcp.f32 %v1881_v23  ;;  %2850 = vmatpush1.bf16.msra.mxu1 %v4733_v29  ;;  %v4763_v23 = vld [vmem:[#allocation2 + $0x70] ss:$8 sps:$4 sm:$0xff]   ;;  %v4736_v29 = vld [vmem:[#allocation5 + $0x120] ss:$8 sps:$4 sm:$0xff]  }
 0x501   : > { %v1928_v51 = vadd.f32 %v4980_v18, %v7331_v6  ;;  %v2024_v24 = vsel %vm2008_vm6, %v4980_v18, %v7332_v14  ;;  %v1702_v20 = vpop.xlane.xlu0 %1701  ;;  %2851 = vmatprep.subr.bf16.mxu1 %v4741_v39  ;;  %v4771_v18 = vld [vmem:[#allocation2 + $0x84] ss:$8 sps:$4 sm:$0xff]   ;;  %v4775_v6 = vld [vmem:[#allocation2 + $0x90] ss:$8 sps:$4 sm:$0xff]   ;;  %v4744_v39 = vld [vmem:[#allocation5 + $0x134] ss:$8 sps:$4 sm:$0xff]  }
 0x502   : > { %v1703_v7 = vcvt.f32.s32 %v1702_v20  ;;  %v4783_v14 = vld [vmem:[#allocation2 + $0xa4] ss:$8 sps:$4 sm:$0xff]   ;;  %v4787_v20 = vld [vmem:[#allocation2 + $0xb0] ss:$8 sps:$4 sm:$0xff]  }
 0x503   : > { %4985 = vrcp.f32 %v1928_v51  ;;  %v4777_v51 = vld [vmem:[#allocation2 + $0x94] ss:$8 sps:$4 sm:$0xff]  }
 0x504   : > { %v1706_v13 = vadd.s32 %v1705_v8, %v1703_v7  ;;  %2852 = vmatpush1.bf16.msra.mxu1 %v4739_v16  ;;  %v4789_v8 = vld [vmem:[#allocation2 + $0xb4] ss:$8 sps:$4 sm:$0xff]   ;;  %v4795_v7 = vld [vmem:[#allocation2 + $0xc4] ss:$8 sps:$4 sm:$0xff]  }
 0x505   : > { %v4982_v49 = vpop.eup %4981 }
 0x506   : > { %v1850_v28 = vand.u32 4294967292, %v1706_v13  ;;  %v2039_v47 = vmul.f32 %v4982_v49, %v2023_v36  ;;  %vm2010_vm8 = vcmp.eq.s32.totalorder %v7304_v15, %v1706_v13  ;;  %v4706_v15 = vld [vmem:[%s5400_s21] sm:$0xff]   ;;  %v4801_v49 = vld [vmem:[#allocation2 + $0xd4] ss:$8 sps:$4 sm:$0xff]  }
 0x507   : > { %2653 = vxpose.xlu0.c.b16.start [1/8] %v4706_v15, 128  ;;  %v4747_v36 = vld [vmem:[#allocation2 + $0x44] ss:$8 sps:$4 sm:$0xff]   ;;  %v4793_v13 = vld [vmem:[#allocation2 + $0xc0] ss:$8 sps:$4 sm:$0xff]  }
 0x508   : > { %v1882_v38 = vadd.f32 1e-08, %v1850_v28  ;;  %4258 = vmatmul.mubr.msk.f32.gmra.mrb[24].mxu0 %vm922_vm0, %v2039_v47  ;;  %4276 = vmatmul.mubr.msk.f32.gmra.mrb[24].mxu1 %vm922_vm0, %v2039_v47  ;;  %v4799_v28 = vld [vmem:[#allocation2 + $0xd0] ss:$8 sps:$4 sm:$0xff]   ;;  %v4805_v47 = vld [vmem:[#allocation2 + $0xe0] ss:$8 sps:$4 sm:$0xff]  }
 0x509   : > { %2248 = vmatprep.mubr.f32.mxu0 %v5173_v45  ;;  %2409 = vmatprep.mubr.f32.mxu1 %v5173_v45 }
 0x50a   : > { %v4984_v26 = vpop.eup %4983  ;;  %4987 = vrcp.f32 %v1882_v38  ;;  %2853 = vmatprep.subr.bf16.mxu1 %v4747_v36  ;;  %v4807_v38 = vld [vmem:[#allocation2 + $0xe4] ss:$8 sps:$4 sm:$0xff]  }
 0x50b   : > { %v1929_v27 = vadd.f32 %v4984_v26, %v6522_v52  ;;  %v2025_v54 = vsel %vm2009_vm7, %v4984_v26, %v6525_v59  ;;  %v4701_v52 = vld [vmem:[#allocation5 + $0xe4] ss:$8 sps:$4 sm:$0xff]   ;;  %2854 = vmatpush1.bf16.msra.mxu1 %v4745_v60  ;;  %v4813_v26 = vld [vmem:[#allocation2 + $0xf4] ss:$8 sps:$4 sm:$0xff]  }
 0x50c   : > { %3306 = vmatprep.subr.bf16.mxu0 %v4701_v52  ;;  %2855 = vmatprep.subr.bf16.mxu1 %v4753_v33 }
 0x50d   : > { %v4986_v50 = vpop.eup %4985  ;;  %4989 = vrcp.f32 %v1929_v27  ;;  %3307 = vmatpush1.bf16.msra.mxu0 %v4699_v32  ;;  %v4811_v27 = vld [vmem:[#allocation2 + $0xf0] ss:$8 sps:$4 sm:$0xff]  }
 0x50e   : > { %v2040_v55 = vmul.f32 %v4986_v50, %v2024_v24  ;;  %3308 = vmatprep.subr.bf16.mxu0 %v4704_v34  ;;  %v4781_v24 = vld [vmem:[#allocation2 + $0xa0] ss:$8 sps:$4 sm:$0xff]  }
 0x50f   : > { %2856 = vmatpush1.bf16.msra.mxu1 %v4751_v21 }
 0x510   : > { %4259 = vmatmul.mubr.msk.f32.gmra.mrb[26].mxu0 %vm922_vm0, %v2040_v55  ;;  %4277 = vmatmul.mubr.msk.f32.gmra.mrb[26].mxu1 %vm922_vm0, %v2040_v55 }
 0x511   : > { %2254 = vmatprep.mubr.f32.mxu0 %v5173_v45  ;;  %2415 = vmatprep.mubr.f32.mxu1 %v5173_v45 }
 0x512   : > { %3309 = vmatpush1.bf16.msra.mxu0 %v4702_v1  ;;  %2857 = vmatprep.subr.bf16.mxu1 %v4759_v31  ;;  %v4742_v31 = vld [vmem:[#allocation5 + $0x130] ss:$8 sps:$4 sm:$0xff]  }
 0x513   : > { %3391 = vmatprep.subr.bf16.mxu0 %v4726_v48  ;;  %2858 = vmatpush1.bf16.msra.mxu1 %v4757_v2 }
 0x514   : > { %v4988_v56 = vpop.eup %4987  ;;  %2859 = vmatprep.subr.bf16.mxu1 %v4765_v4  ;;  %v4750_v4 = vld [vmem:[#allocation5 + $0x144] ss:$8 sps:$4 sm:$0xff]  }
 0x515   : > { %v1930_v59 = vadd.f32 %v4988_v56, %v6530_v17  ;;  %v2026_v58 = vsel %vm2010_vm8, %v4988_v56, %v6533_v35  ;;  %v4707_v35 = vld [vmem:[%s5400_s21 + $0x48] sm:$0xff]  }
 0x516   : > { %v4708_v17 = vld [vmem:[%s5400_s21 + $0x8] sm:$0xff]   ;;  %2670 = vxpose.xlu1.c.b16.cont [2/8] %v4707_v35, 128 }
 0x517   : > { %v4990_v44 = vpop.eup %4989  ;;  %4991 = vrcp.f32 %v1930_v59  ;;  %2654 = vxpose.xlu0.c.b16.cont [2/8] %v4708_v17, 128  ;;  %2860 = vmatpush1.bf16.msra.mxu1 %v4763_v23 }
 0x518   : > { %v2041_v10 = vmul.f32 %v4990_v44, %v2025_v54  ;;  %2861 = vmatprep.subr.bf16.mxu1 %v4771_v18 }
 0x51a   : > { %4260 = vmatmul.mubr.msk.f32.gmra.mrb[28].mxu0 %vm922_vm0, %v2041_v10  ;;  %4278 = vmatmul.mubr.msk.f32.gmra.mrb[28].mxu1 %vm922_vm0, %v2041_v10 }
 0x51b   : > { %2260 = vmatprep.mubr.f32.mxu0 %v5173_v45  ;;  %2421 = vmatprep.mubr.f32.mxu1 %v5173_v45  ;;  %v4711_v45 = vld [vmem:[%s5400_s21 + $0x58] sm:$0xff]  }
 0x51c   : > { %2671 = vxpose.xlu1.c.b16.cont [3/8] %v4709_v63, 128  ;;  %2655 = vxpose.xlu0.c.b16.cont [3/8] %v4710_v9, 128 }
 0x51d   : > { %2862 = vmatpush1.bf16.msra.mxu1 %v4769_v57 }
 0x51e   : > { %2863 = vmatprep.subr.bf16.mxu1 %v4777_v51 }
 0x520   : > { %2672 = vxpose.xlu1.c.b16.cont [4/8] %v4711_v45, 128  ;;  %2656 = vxpose.xlu0.c.b16.cont [4/8] %v4712_v3, 128  ;;  %v4732_v45 = vld [vmem:[#allocation5 + $0x114] ss:$8 sps:$4 sm:$0xff]  }
 0x521   : > { %v4992_v40 = vpop.eup %4991  ;;  %2864 = vmatpush1.bf16.msra.mxu1 %v4775_v6 }
 0x522   : > { %v2042_v25 = vmul.f32 %v4992_v40, %v2026_v58  ;;  %2865 = vmatprep.subr.bf16.mxu1 %v4783_v14 }
 0x524   : > { %4261 = vmatmul.mubr.msk.f32.gmra.mrb[30].mxu0 %vm922_vm0, %v2042_v25  ;;  %4279 = vmatmul.mubr.msk.f32.gmra.mrb[30].mxu1 %vm922_vm0, %v2042_v25  ;;  %v4724_v25 = vld [vmem:[#allocation5 + $0x100] ss:$8 sps:$4 sm:$0xff]  }
 0x525   : > { %2673 = vxpose.xlu1.c.b16.cont [5/8] %v4713_v5, 128  ;;  %2657 = vxpose.xlu0.c.b16.cont [5/8] %v4714_v11, 128 }
 0x526   : > { %2866 = vmatpush1.bf16.msra.mxu1 %v4781_v24 }
 0x527   : > { %2867 = vmatprep.subr.bf16.mxu1 %v4789_v8  ;;  %v4748_v8 = vld [vmem:[#allocation5 + $0x140] ss:$8 sps:$4 sm:$0xff]  }
 0x529   : > { %2674 = vxpose.xlu1.c.b16.cont [6/8] %v4715_v62, 128  ;;  %2658 = vxpose.xlu0.c.b16.cont [6/8] %v4716_v30, 128 }
 0x52a   : > { %2868 = vmatpush1.bf16.msra.mxu1 %v4787_v20 }
 0x52b   : > { %2869 = vmatprep.subr.bf16.mxu1 %v4795_v7  ;;  %v4756_v7 = vld [vmem:[#allocation5 + $0x154] ss:$8 sps:$4 sm:$0xff]  }
 0x52d   : > { %2675 = vxpose.xlu1.c.b16.cont [7/8] %v4717_v46, 128  ;;  %2659 = vxpose.xlu0.c.b16.cont [7/8] %v4718_v19, 128  ;;  %v4730_v46 = vld [vmem:[#allocation5 + $0x110] ss:$8 sps:$4 sm:$0xff]  }
 0x52e   : > { %2870 = vmatpush1.bf16.msra.mxu1 %v4793_v13 }
 0x52f   : > { %2871 = vmatprep.subr.bf16.mxu1 %v4801_v49 }
 0x531   : > { %2676 = vxpose.xlu1.c.b16.end [8/8] %v4719_v61, 128  ;;  %2660 = vxpose.xlu0.c.b16.end [8/8] %v4720_v37, 128  ;;  %v4738_v61 = vld [vmem:[#allocation5 + $0x124] ss:$8 sps:$4 sm:$0xff]  }
 0x532   : > { %2872 = vmatpush1.bf16.msra.mxu1 %v4799_v28 }
 0x533   : > { %2873 = vmatprep.subr.bf16.mxu1 %v4807_v38 }
 0x536   : > { %2874 = vmatpush1.bf16.msra.mxu1 %v4805_v47 }
 0x537   : > { %2875 = vmatprep.subr.bf16.mxu1 %v4813_v26  ;;  %v4754_v26 = vld [vmem:[#allocation5 + $0x150] ss:$8 sps:$4 sm:$0xff]  }
 0x53a   : > { %4656 = vset.pattern.permute.xlu0 %v7333_v12  ;;  %2876 = vmatpush1.bf16.msra.mxu1 %v4811_v27 }
 0x57b   : > { %v2677_v54 = vpop.trf.xlu1  ;;  %v2661_v50 = vpop.trf.xlu0 }
 0x57c   : > { %2877 = vmatprep.mubr.bf16.mxu1 %v2677_v54  ;;  %v4762_v54 = vld [vmem:[#allocation5 + $0x164] ss:$8 sps:$4 sm:$0xff]  }
 0x57d   : > { %2878 = vmatmul.mubr.bf16.vlgmr.msra.gmra.mrb[32].mxu1 %v2661_v50 }
 0x57f   : > { %v2678_v55 = vpop.trf.xlu1  ;;  %v2662_v56 = vpop.trf.xlu0 }
 0x580   : > { %2887 = vmatprep.mubr.bf16.mxu1 %v2678_v55 }
 0x583   : > { %v2679_v32 = vpop.trf.xlu1  ;;  %v2663_v52 = vpop.trf.xlu0 }
 0x585   : > { %2888 = vmatmul.mubr.bf16.gmra.mrb[36].mxu1 %v2662_v56 }
 0x586   : > { %2897 = vmatprep.mubr.bf16.mxu1 %v2679_v32 }
 0x587   : > { %v2680_v1 = vpop.trf.xlu1  ;;  %v2664_v3 = vpop.trf.xlu0 }
 0x58b   : > { %v2681_v19 = vpop.trf.xlu1  ;;  %v2665_v16 = vpop.trf.xlu0 }
 0x58d   : > { %2898 = vmatmul.mubr.bf16.gmra.mrb[40].mxu1 %v2663_v52 }
 0x58e   : > { %2907 = vmatprep.mubr.bf16.mxu1 %v2680_v1 }
 0x58f   : > { %v2682_v2 = vpop.trf.xlu1  ;;  %v2666_v13 = vpop.trf.xlu0 }
 0x593   : > { %v2172_v59 = vpop.f32.mrb[0].mxu0  ;;  %v6776_v58 = vpop.f32.mrb[0].mxu1 }
 0x594   : > { %v2174_v44 = vpop.f32.mrb[1].mxu0  ;;  %v6778_v10 = vpop.f32.mrb[1].mxu1 }
 0x595   : > { %2908 = vmatmul.mubr.bf16.gmra.mrb[44].mxu1 %v2664_v3  ;;  %v2683_v27 = vpop.trf.xlu1 }
 0x596   : > { %2917 = vmatprep.mubr.bf16.mxu1 %v2681_v19  ;;  %v4772_v19 = vld [vmem:[#allocation5 + $0x180] ss:$8 sps:$4 sm:$0xff]  }
 0x597   : > { %v2178_v34 = vpop.f32.mrb[2].mxu0  ;;  %v6780_v22 = vpop.f32.mrb[2].mxu1 }
 0x598   : > { %v2525_v15 = vpack.c.bf16 %v2178_v34, %v2172_v59  ;;  %v2527_v35 = vpack.c.bf16 %v6780_v22, %v6776_v58  ;;  %v2180_v17 = vpop.f32.mrb[3].mxu0  ;;  %v6784_v40 = vpop.f32.mrb[3].mxu1  ;;  %v4760_v34 = vld [vmem:[#allocation5 + $0x160] ss:$8 sps:$4 sm:$0xff]  }
 0x599   : > { %v2526_v63 = vpack.c.bf16 %v2180_v17, %v2174_v44  ;;  %v2528_v9 = vpack.c.bf16 %v6784_v40, %v6778_v10  ;;  %v2667_v17 = vpop.trf.xlu0  ;;  %v4858_v40 = vld [vmem:[#allocation7 + $0xd4] ss:$8 sps:$4 sm:$0xff]  }
 0x59b   : > { %v2184_v5 = vpop.f32.mrb[4].mxu0  ;;  %v6788_v11 = vpop.f32.mrb[4].mxu1  ;;  %3310 = vmatprep.mubr.bf16.mxu0 %v2526_v63  ;;  %v4766_v63 = vld [vmem:[#allocation5 + $0x170] ss:$8 sps:$4 sm:$0xff]  }
 0x59c   : > { %v2186_v62 = vpop.f32.mrb[5].mxu0  ;;  %v6790_v30 = vpop.f32.mrb[5].mxu1  ;;  %3311 = vmatmul.mubr.bf16.vlgmr.msra.gmra.mrb[32].mxu0 %v2525_v15  ;;  %v4768_v15 = vld [vmem:[#allocation5 + $0x174] ss:$8 sps:$4 sm:$0xff]  }
 0x59d   : > { %3392 = vmatpush1.bf16.msra.mxu0 %v4724_v25  ;;  %2918 = vmatmul.mubr.bf16.gmra.mrb[48].mxu1 %v2665_v16  ;;  %v2684_v25 = vpop.trf.xlu1  ;;  %v4820_v16 = vld [vmem:[#allocation7 + $0x10] ss:$8 sps:$4 sm:$0xff]  }
 0x59e   : > { %3393 = vmatprep.subr.bf16.mxu0 %v4732_v45  ;;  %2927 = vmatprep.mubr.bf16.mxu1 %v2682_v2 }
 0x59f   : > { %v2190_v37 = vpop.f32.mrb[6].mxu0  ;;  %v6792_v0 = vpop.f32.mrb[6].mxu1 }
 0x5a0   : > { %v2529_v43 = vpack.c.bf16 %v2190_v37, %v2184_v5  ;;  %v2531_v12 = vpack.c.bf16 %v6792_v0, %v6788_v11  ;;  %v2192_v48 = vpop.f32.mrb[7].mxu0  ;;  %v6796_v42 = vpop.f32.mrb[7].mxu1  ;;  %v4774_v5 = vld [vmem:[#allocation5 + $0x184] ss:$8 sps:$4 sm:$0xff]  }
 0x5a1   : > { %v2530_v41 = vpack.c.bf16 %v2192_v48, %v2186_v62  ;;  %v2532_v53 = vpack.c.bf16 %v6796_v42, %v6790_v30  ;;  %3394 = vmatpush1.bf16.msra.mxu0 %v4730_v46  ;;  %v2668_v37 = vpop.trf.xlu0  ;;  %v4819_v48 = vld [vmem:[#allocation7 + $0x4] ss:$8 sps:$4 sm:$0xff]   ;;  %v4859_v30 = vld [vmem:[#allocation7 + $0xe0] ss:$8 sps:$4 sm:$0xff]  }
 0x5a2   : > { %3395 = vmatprep.subr.bf16.mxu0 %v4738_v61  ;;  %v4780_v61 = vld [vmem:[#allocation5 + $0x194] ss:$8 sps:$4 sm:$0xff]   ;;  %3799 = vmatprep.subr.bf16.mxu1 %v4819_v48  ;;  %v4861_v11 = vld [vmem:[#allocation7 + $0xe4] ss:$8 sps:$4 sm:$0xff]  }
 0x5a3   : > { %v2196_v60 = vpop.f32.mrb[8].mxu0  ;;  %v6800_v36 = vpop.f32.mrb[8].mxu1  ;;  %3320 = vmatprep.mubr.bf16.mxu0 %v2530_v41  ;;  %v4778_v41 = vld [vmem:[#allocation5 + $0x190] ss:$8 sps:$4 sm:$0xff]  }
 0x5a4   : > { %v2198_v33 = vpop.f32.mrb[9].mxu0  ;;  %v6802_v21 = vpop.f32.mrb[9].mxu1  ;;  %3321 = vmatmul.mubr.bf16.gmra.mrb[36].mxu0 %v2529_v43  ;;  %v4817_v43 = vld [vmem:[#allocation7] ss:$8 sps:$4 sm:$0xff]  }
 0x5a5   : > { %3396 = vmatpush1.bf16.msra.mxu0 %v4736_v29  ;;  %2928 = vmatmul.mubr.bf16.gmra.mrb[52].mxu1 %v2666_v13  ;;  %v4822_v29 = vld [vmem:[#allocation7 + $0x14] ss:$8 sps:$4 sm:$0xff]   ;;  %v4823_v13 = vld [vmem:[#allocation7 + $0x20] ss:$8 sps:$4 sm:$0xff]  }
 0x5a6   : > { %3397 = vmatprep.subr.bf16.mxu0 %v4744_v39  ;;  %2937 = vmatprep.mubr.bf16.mxu1 %v2683_v27  ;;  %v4786_v39 = vld [vmem:[#allocation5 + $0x1a4] ss:$8 sps:$4 sm:$0xff]   ;;  %v4826_v27 = vld [vmem:[#allocation7 + $0x30] ss:$8 sps:$4 sm:$0xff]  }
 0x5a7   : > { %v2202_v23 = vpop.f32.mrb[10].mxu0  ;;  %v6804_v18 = vpop.f32.mrb[10].mxu1  ;;  %3800 = vmatpush1.bf16.msra.mxu1 %v4817_v43 }
 0x5a8   : > { %v2533_v57 = vpack.c.bf16 %v2202_v23, %v2196_v60  ;;  %v2535_v6 = vpack.c.bf16 %v6804_v18, %v6800_v36  ;;  %v2204_v51 = vpop.f32.mrb[11].mxu0  ;;  %v6808_v14 = vpop.f32.mrb[11].mxu1  ;;  %3801 = vmatprep.subr.bf16.mxu1 %v4822_v29  ;;  %v4864_v36 = vld [vmem:[#allocation7 + $0xf4] ss:$8 sps:$4 sm:$0xff]  }
 0x5a9   : > { %v2534_v24 = vpack.c.bf16 %v2204_v51, %v2198_v33  ;;  %v2536_v20 = vpack.c.bf16 %v6808_v14, %v6802_v21  ;;  %3398 = vmatpush1.bf16.msra.mxu0 %v4742_v31  ;;  %v4825_v31 = vld [vmem:[#allocation7 + $0x24] ss:$8 sps:$4 sm:$0xff]   ;;  %v4862_v21 = vld [vmem:[#allocation7 + $0xf0] ss:$8 sps:$4 sm:$0xff]  }
 0x5aa   : > { %3399 = vmatprep.subr.bf16.mxu0 %v4750_v4 }
 0x5ab   : > { %v2208_v49 = vpop.f32.mrb[12].mxu0  ;;  %v6812_v28 = vpop.f32.mrb[12].mxu1  ;;  %3330 = vmatprep.mubr.bf16.mxu0 %v2534_v24  ;;  %3802 = vmatpush1.bf16.msra.mxu1 %v4820_v16  ;;  %v4808_v16 = vld [vmem:[#allocation5 + $0x1e0] ss:$8 sps:$4 sm:$0xff]  }
 0x5ac   : > { %v2210_v47 = vpop.f32.mrb[13].mxu0  ;;  %v6814_v38 = vpop.f32.mrb[13].mxu1  ;;  %3331 = vmatmul.mubr.bf16.gmra.mrb[40].mxu0 %v2533_v57  ;;  %3803 = vmatprep.subr.bf16.mxu1 %v4825_v31  ;;  %v4816_v31 = vld [vmem:[#allocation5 + $0x1f4] ss:$8 sps:$4 sm:$0xff]  }
 0x5ad   : > { %3400 = vmatpush1.bf16.msra.mxu0 %v4748_v8  ;;  %2938 = vmatmul.mubr.bf16.gmra.mrb[56].mxu1 %v2667_v17  ;;  %v4784_v8 = vld [vmem:[#allocation5 + $0x1a0] ss:$8 sps:$4 sm:$0xff]  }
 0x5ae   : > { %3401 = vmatprep.subr.bf16.mxu0 %v4756_v7  ;;  %2947 = vmatprep.mubr.bf16.mxu1 %v2684_v25  ;;  %v4792_v7 = vld [vmem:[#allocation5 + $0x1b4] ss:$8 sps:$4 sm:$0xff]   ;;  %v4829_v17 = vld [vmem:[#allocation7 + $0x40] ss:$8 sps:$4 sm:$0xff]   ;;  %v4802_v25 = vld [vmem:[#allocation5 + $0x1d0] ss:$8 sps:$4 sm:$0xff]  }
 0x5af   : > { %v2214_v50 = vpop.f32.mrb[14].mxu0  ;;  %v6816_v55 = vpop.f32.mrb[14].mxu1  ;;  %3804 = vmatpush1.bf16.msra.mxu1 %v4823_v13 }
 0x5b0   : > { %v2537_v56 = vpack.c.bf16 %v2214_v50, %v2208_v49  ;;  %v2539_v32 = vpack.c.bf16 %v6816_v55, %v6812_v28  ;;  %v2216_v52 = vpop.f32.mrb[15].mxu0  ;;  %v6820_v59 = vpop.f32.mrb[15].mxu1  ;;  %v4828_v49 = vld [vmem:[#allocation7 + $0x34] ss:$8 sps:$4 sm:$0xff]  }
 0x5b1   : > { %v2538_v44 = vpack.c.bf16 %v2216_v52, %v2210_v47  ;;  %v2540_v1 = vpack.c.bf16 %v6820_v59, %v6814_v38  ;;  %3402 = vmatpush1.bf16.msra.mxu0 %v4754_v26  ;;  %v4790_v47 = vld [vmem:[#allocation5 + $0x1b0] ss:$8 sps:$4 sm:$0xff]   ;;  %v4798_v26 = vld [vmem:[#allocation5 + $0x1c4] ss:$8 sps:$4 sm:$0xff]   ;;  %3805 = vmatprep.subr.bf16.mxu1 %v4828_v49  ;;  %v4796_v52 = vld [vmem:[#allocation5 + $0x1c0] ss:$8 sps:$4 sm:$0xff]  }
 0x5b2   : > { %3403 = vmatprep.subr.bf16.mxu0 %v4762_v54  ;;  %v4831_v54 = vld [vmem:[#allocation7 + $0x44] ss:$8 sps:$4 sm:$0xff]   ;;  %v4841_v49 = vld [vmem:[#allocation7 + $0x80] ss:$8 sps:$4 sm:$0xff]  }
 0x5b3   : > { %3340 = vmatprep.mubr.bf16.mxu0 %v2538_v44  ;;  %3806 = vmatpush1.bf16.msra.mxu1 %v4826_v27  ;;  %v4846_v27 = vld [vmem:[#allocation7 + $0x94] ss:$8 sps:$4 sm:$0xff]  }
 0x5b4   : > { %3341 = vmatmul.mubr.bf16.gmra.mrb[44].mxu0 %v2537_v56  ;;  %3807 = vmatprep.subr.bf16.mxu1 %v4831_v54  ;;  %v4844_v54 = vld [vmem:[#allocation7 + $0x90] ss:$8 sps:$4 sm:$0xff]  }
 0x5b5   : > { %3404 = vmatpush1.bf16.msra.mxu0 %v4760_v34  ;;  %2948 = vmatmul.mubr.bf16.gmra.mrb[60].mxu1 %v2668_v37 }
 0x5b6   : > { %v2220_v45 = vpop.f32.mrb[16].mxu0  ;;  %v6824_v3 = vpop.f32.mrb[16].mxu1  ;;  %3405 = vmatprep.subr.bf16.mxu0 %v4768_v15  ;;  %v4804_v15 = vld [vmem:[#allocation5 + $0x1d4] ss:$8 sps:$4 sm:$0xff]  }
 0x5b7   : > { %v2222_v62 = vpop.f32.mrb[17].mxu0  ;;  %v6826_v46 = vpop.f32.mrb[17].mxu1  ;;  %3808 = vmatpush1.bf16.msra.mxu1 %v4829_v17 }
 0x5b9   : > { %3406 = vmatpush1.bf16.msra.mxu0 %v4766_v63  ;;  %v4834_v63 = vld [vmem:[#allocation7 + $0x54] ss:$8 sps:$4 sm:$0xff]  }
 0x5ba   : > { %3407 = vmatprep.subr.bf16.mxu0 %v4774_v5  ;;  %v4832_v5 = vld [vmem:[#allocation7 + $0x50] ss:$8 sps:$4 sm:$0xff]   ;;  %3809 = vmatprep.subr.bf16.mxu1 %v4834_v63 }
 0x5bb   : > { %3810 = vmatpush1.bf16.msra.mxu1 %v4832_v5  ;;  %v4852_v5 = vld [vmem:[#allocation7 + $0xb4] ss:$8 sps:$4 sm:$0xff]  }
 0x5bd   : > { %3408 = vmatpush1.bf16.msra.mxu0 %v4772_v19 }
 0x5be   : > { %3409 = vmatprep.subr.bf16.mxu0 %v4780_v61 }
 0x5c0   : > { %v2226_v60 = vpop.f32.mrb[18].mxu0  ;;  %v6828_v33 = vpop.f32.mrb[18].mxu1 }
 0x5c1   : > { %v2541_v2 = vpack.c.bf16 %v2226_v60, %v2220_v45  ;;  %v2543_v4 = vpack.c.bf16 %v6828_v33, %v6824_v3  ;;  %v2228_v23 = vpop.f32.mrb[19].mxu0  ;;  %v6832_v57 = vpop.f32.mrb[19].mxu1  ;;  %3410 = vmatpush1.bf16.msra.mxu0 %v4778_v41  ;;  %v4810_v45 = vld [vmem:[#allocation5 + $0x1e4] ss:$8 sps:$4 sm:$0xff]   ;;  %v4835_v60 = vld [vmem:[#allocation7 + $0x60] ss:$8 sps:$4 sm:$0xff]  }
 0x5c2   : > { %v2542_v51 = vpack.c.bf16 %v2228_v23, %v2222_v62  ;;  %v2544_v24 = vpack.c.bf16 %v6832_v57, %v6826_v46  ;;  %3411 = vmatprep.subr.bf16.mxu0 %v4786_v39  ;;  %v4837_v62 = vld [vmem:[#allocation7 + $0x64] ss:$8 sps:$4 sm:$0xff]   ;;  %v4814_v23 = vld [vmem:[#allocation5 + $0x1f0] ss:$8 sps:$4 sm:$0xff]  }
 0x5c3   : > { %3811 = vmatprep.subr.bf16.mxu1 %v4837_v62 }
 0x5c4   : > { %3350 = vmatprep.mubr.bf16.mxu0 %v2542_v51  ;;  %3812 = vmatpush1.bf16.msra.mxu1 %v4835_v60  ;;  %v4838_v51 = vld [vmem:[#allocation7 + $0x70] ss:$8 sps:$4 sm:$0xff]  }
 0x5c5   : > { %3351 = vmatmul.mubr.bf16.gmra.mrb[48].mxu0 %v2541_v2  ;;  %v4840_v2 = vld [vmem:[#allocation7 + $0x74] ss:$8 sps:$4 sm:$0xff]  }
 0x5c6   : > { %3412 = vmatpush1.bf16.msra.mxu0 %v4784_v8  ;;  %3813 = vmatprep.subr.bf16.mxu1 %v4840_v2  ;;  %v4843_v8 = vld [vmem:[#allocation7 + $0x84] ss:$8 sps:$4 sm:$0xff]  }
 0x5c7   : > { %3413 = vmatprep.subr.bf16.mxu0 %v4792_v7 }
 0x5c8   : > { %3814 = vmatpush1.bf16.msra.mxu1 %v4838_v51 }
 0x5c9   : > { %3815 = vmatprep.subr.bf16.mxu1 %v4843_v8 }
 0x5ca   : > { %v2232_v50 = vpop.f32.mrb[20].mxu0  ;;  %v6836_v56 = vpop.f32.mrb[20].mxu1  ;;  %3414 = vmatpush1.bf16.msra.mxu0 %v4790_v47 }
 0x5cb   : > { %v2234_v44 = vpop.f32.mrb[21].mxu0  ;;  %v6838_v34 = vpop.f32.mrb[21].mxu1  ;;  %3415 = vmatprep.subr.bf16.mxu0 %v4798_v26 }
 0x5cc   : > { %3816 = vmatpush1.bf16.msra.mxu1 %v4841_v49 }
 0x5cd   : > { %3817 = vmatprep.subr.bf16.mxu1 %v4846_v27 }
 0x5ce   : > { %3416 = vmatpush1.bf16.msra.mxu0 %v4796_v52 }
 0x5cf   : > { %3417 = vmatprep.subr.bf16.mxu0 %v4804_v15  ;;  %v4847_v15 = vld [vmem:[#allocation7 + $0xa0] ss:$8 sps:$4 sm:$0xff]  }
 0x5d0   : > { %3818 = vmatpush1.bf16.msra.mxu1 %v4844_v54 }
 0x5d1   : > { %v2238_v19 = vpop.f32.mrb[22].mxu0  ;;  %v6840_v61 = vpop.f32.mrb[22].mxu1 }
 0x5d2   : > { %v2545_v37 = vpack.c.bf16 %v2238_v19, %v2232_v50  ;;  %v2547_v43 = vpack.c.bf16 %v6840_v61, %v6836_v56  ;;  %v2240_v48 = vpop.f32.mrb[23].mxu0  ;;  %v6844_v41 = vpop.f32.mrb[23].mxu1  ;;  %3418 = vmatpush1.bf16.msra.mxu0 %v4802_v25  ;;  %v4849_v50 = vld [vmem:[#allocation7 + $0xa4] ss:$8 sps:$4 sm:$0xff]  }
 0x5d3   : > { %v2546_v29 = vpack.c.bf16 %v2240_v48, %v2234_v44  ;;  %v2548_v39 = vpack.c.bf16 %v6844_v41, %v6838_v34  ;;  %3419 = vmatprep.subr.bf16.mxu0 %v4810_v45  ;;  %3819 = vmatprep.subr.bf16.mxu1 %v4849_v50  ;;  %v4855_v48 = vld [vmem:[#allocation7 + $0xc4] ss:$8 sps:$4 sm:$0xff]   ;;  %v2524_v50 = vld [vmem:[%s7122_s6] sm:$0x3] }
 0x5d4   : > { %3820 = vmatpush1.bf16.msra.mxu1 %v4847_v15 }
 0x5d5   : > { %3360 = vmatprep.mubr.bf16.mxu0 %v2546_v29  ;;  %3821 = vmatprep.subr.bf16.mxu1 %v4852_v5  ;;  %v4853_v29 = vld [vmem:[#allocation7 + $0xc0] ss:$8 sps:$4 sm:$0xff]  }
 0x5d6   : > { %3361 = vmatmul.mubr.bf16.gmra.mrb[52].mxu0 %v2545_v37  ;;  %v4850_v37 = vld [vmem:[#allocation7 + $0xb0] ss:$8 sps:$4 sm:$0xff]  }
 0x5d7   : > { %3420 = vmatpush1.bf16.msra.mxu0 %v4808_v16 }
 0x5d8   : > { %3421 = vmatprep.subr.bf16.mxu0 %v4816_v31  ;;  %3822 = vmatpush1.bf16.msra.mxu1 %v4850_v37 }
 0x5d9   : > { %3823 = vmatprep.subr.bf16.mxu1 %v4855_v48 }
 0x5db   : > { %v2244_v7 = vpop.f32.mrb[24].mxu0  ;;  %v2405_v13 = vpop.f32.mrb[24].mxu1  ;;  %3422 = vmatpush1.bf16.msra.mxu0 %v4814_v23 }
 0x5dc   : > { %v2246_v47 = vpop.f32.mrb[25].mxu0  ;;  %v2407_v26 = vpop.f32.mrb[25].mxu1  ;;  %3824 = vmatpush1.bf16.msra.mxu1 %v4853_v29 }
 0x5dd   : > { %3825 = vmatprep.subr.bf16.mxu1 %v4858_v40 }
 0x5e3   : > { %v2250_v52 = vpop.f32.mrb[26].mxu0  ;;  %v2411_v44 = vpop.f32.mrb[26].mxu1 }
 0x5e4   : > { %v2549_v17 = vpack.c.bf16 %v2250_v52, %v2244_v7  ;;  %v2551_v63 = vpack.c.bf16 %v2411_v44, %v2405_v13  ;;  %v2252_v25 = vpop.f32.mrb[27].mxu0  ;;  %v2413_v45 = vpop.f32.mrb[27].mxu1  ;;  %v7334_v52 = vld [vmem:[#allocation19_spill] sm:$0xff] }
 0x5e5   : > { %v2550_v62 = vpack.c.bf16 %v2252_v25, %v2246_v47  ;;  %v2552_v19 = vpack.c.bf16 %v2413_v45, %v2407_v26  ;;  %v6936_v44 = vrot.slane %v2524_v50, %v7334_v52 }
 0x5e7   : > { %3370 = vmatprep.mubr.bf16.mxu0 %v2550_v62 }
 0x5e8   : > { %3371 = vmatmul.mubr.bf16.gmra.mrb[56].mxu0 %v2549_v17  ;;  %v7335_v17 = vld [vmem:[#allocation18_spill] sm:$0xff] }
 0x5ed   : > { %v2256_v16 = vpop.f32.mrb[28].mxu0  ;;  %v2417_v60 = vpop.f32.mrb[28].mxu1 }
 0x5ee   : > { %v2258_v31 = vpop.f32.mrb[29].mxu0  ;;  %v2419_v2 = vpop.f32.mrb[29].mxu1 }
 0x5f7   : > { %v2262_v23 = vpop.f32.mrb[30].mxu0  ;;  %v2423_v51 = vpop.f32.mrb[30].mxu1 }
 0x5f8   : > { %v2553_v8 = vpack.c.bf16 %v2262_v23, %v2256_v16  ;;  %v2555_v7 = vpack.c.bf16 %v2423_v51, %v2417_v60  ;;  %v2264_v13 = vpop.f32.mrb[31].mxu0  ;;  %v2425_v49 = vpop.f32.mrb[31].mxu1 }
 0x5f9   : > { %v2554_v47 = vpack.c.bf16 %v2264_v13, %v2258_v31  ;;  %v2556_v26 = vpack.c.bf16 %v2425_v49, %v2419_v2 }
 0x5fb   : > { %3380 = vmatprep.mubr.bf16.mxu0 %v2554_v47 }
 0x5fc   : > { %3381 = vmatmul.mubr.bf16.gmra.mrb[60].mxu0 %v2553_v8 }
 0x5fd   : > { %3423 = vmatprep.mubr.bf16.mxu0 %v2528_v9  ;;  %v4856_v9 = vld [vmem:[#allocation7 + $0xd0] ss:$8 sps:$4 sm:$0xff]  }
 0x5fe   : > { %3826 = vmatpush1.bf16.msra.mxu1 %v4856_v9 }
 0x5ff   : > { %3827 = vmatprep.subr.bf16.mxu1 %v4861_v11 }
 0x602   : > { %3828 = vmatpush1.bf16.msra.mxu1 %v4859_v30 }
 0x603   : > { %3829 = vmatprep.subr.bf16.mxu1 %v4864_v36 }
 0x604   : > { %3424 = vmatmul.mubr.bf16.vlgmr.msra.gmra.mrb[32].mxu0 %v2527_v35 }
 0x605   : > { %3433 = vmatprep.mubr.bf16.mxu0 %v2532_v53 }
 0x606   : > { %3830 = vmatpush1.bf16.msra.mxu1 %v4862_v21 }
 0x60c   : > { %3434 = vmatmul.mubr.bf16.gmra.mrb[36].mxu0 %v2531_v12 }
 0x60d   : > { %3443 = vmatprep.mubr.bf16.mxu0 %v2536_v20 }
 0x614   : > { %3444 = vmatmul.mubr.bf16.gmra.mrb[40].mxu0 %v2535_v6 }
 0x615   : > { %3453 = vmatprep.mubr.bf16.mxu0 %v2540_v1 }
 0x61c   : > { %3454 = vmatmul.mubr.bf16.gmra.mrb[44].mxu0 %v2539_v32 }
 0x61d   : > { %3463 = vmatprep.mubr.bf16.mxu0 %v2544_v24 }
 0x624   : > { %3464 = vmatmul.mubr.bf16.gmra.mrb[48].mxu0 %v2543_v4 }
 0x625   : > { %3473 = vmatprep.mubr.bf16.mxu0 %v2548_v39 }
 0x62c   : > { %3474 = vmatmul.mubr.bf16.gmra.mrb[52].mxu0 %v2547_v43 }
 0x62d   : > { %3483 = vmatprep.mubr.bf16.mxu0 %v2552_v19 }
 0x634   : > { %3484 = vmatmul.mubr.bf16.gmra.mrb[56].mxu0 %v2551_v63  ;;  %v6939_v63 = vrot.slane %v2524_v50, %v7335_v17 }
 0x635   : > { %3493 = vmatprep.mubr.bf16.mxu0 %v2556_v26 }
 0x63c   : > { %3494 = vmatmul.mubr.bf16.gmra.mrb[60].mxu0 %v2555_v7 }
 0x650   : > { %v2879_v58 = vpop.f32.mrb[32].mxu1 }
 0x651   : > { %v2881_v10 = vpop.f32.mrb[33].mxu1 }
 0x652   : > { %v2883_v22 = vpop.f32.mrb[34].mxu1 }
 0x653   : > { %v2885_v35 = vpop.f32.mrb[35].mxu1 }
 0x658   : > { %v2889_v0 = vpop.f32.mrb[36].mxu1 }
 0x659   : > { %v2891_v12 = vpop.f32.mrb[37].mxu1 }
 0x65a   : > { %v2893_v42 = vpop.f32.mrb[38].mxu1 }
 0x65b   : > { %v2895_v53 = vpop.f32.mrb[39].mxu1 }
 0x660   : > { %v6884_v18 = vpop.f32.mrb[40].mxu1 }
 0x661   : > { %v6886_v6 = vpop.f32.mrb[41].mxu1 }
 0x662   : > { %v6888_v14 = vpop.f32.mrb[42].mxu1 }
 0x663   : > { %v6890_v20 = vpop.f32.mrb[43].mxu1 }
 0x668   : > { %v6892_v28 = vpop.f32.mrb[44].mxu1 }
 0x669   : > { %v6894_v38 = vpop.f32.mrb[45].mxu1 }
 0x66a   : > { %v6896_v55 = vpop.f32.mrb[46].mxu1 }
 0x66b   : > { %v6898_v32 = vpop.f32.mrb[47].mxu1 }
 0x670   : > { %v6900_v59 = vpop.f32.mrb[48].mxu1 }
 0x671   : > { %v6902_v1 = vpop.f32.mrb[49].mxu1 }
 0x672   : > { %v6904_v3 = vpop.f32.mrb[50].mxu1 }
 0x673   : > { %v6906_v46 = vpop.f32.mrb[51].mxu1 }
 0x678   : > { %v6908_v33 = vpop.f32.mrb[52].mxu1 }
 0x679   : > { %v6910_v4 = vpop.f32.mrb[53].mxu1 }
 0x67a   : > { %v6912_v57 = vpop.f32.mrb[54].mxu1 }
 0x67b   : > { %v6914_v24 = vpop.f32.mrb[55].mxu1 }
 0x680   : > { %v6916_v56 = vpop.f32.mrb[56].mxu1 }
 0x681   : > { %v6918_v34 = vpop.f32.mrb[57].mxu1 }
 0x682   : > { %v6920_v61 = vpop.f32.mrb[58].mxu1 }
 0x683   : > { %v6922_v43 = vpop.f32.mrb[59].mxu1 }
 0x688   : > { %v6924_v41 = vpop.f32.mrb[60].mxu1 }
 0x689   : > { %v6926_v39 = vpop.f32.mrb[61].mxu1 }
 0x68a   : > { %v6928_v27 = vpop.f32.mrb[62].mxu1 }
 0x68b   : > { %v6930_v54 = vpop.f32.mrb[63].mxu1 }
 0x6d7   : > { %v3425_v15 = vpop.f32.mrb[32].mxu0 }
 0x6d8   : > { %v4465_v25 = vadd.f32 %v3425_v15, %v2879_v58  ;;  %v3427_v45 = vpop.f32.mrb[33].mxu0 }
 0x6d9   : > { %v4466_v5 = vadd.f32 %v3427_v45, %v2881_v10  ;;  %v3429_v62 = vpop.f32.mrb[34].mxu0 }
 0x6da   : > { %v3515_v19 = vadd.f32 %v4465_v25, %v6936_v44  ;;  %v4467_v37 = vadd.f32 %v3429_v62, %v2883_v22  ;;  %v3431_v48 = vpop.f32.mrb[35].mxu0 }
 0x6db   : > { %v3516_v29 = vadd.f32 %v4466_v5, %v6939_v63  ;;  %v4468_v16 = vadd.f32 %v3431_v48, %v2885_v35 }
 0x6dc   : > { %v3517_v60 = vadd.f32 %v4467_v37, %v6936_v44  ;;  %v3547_v2 = vmax.f32 %v3515_v19, 0.0 }
 0x6dd   : > { %v3518_v31 = vadd.f32 %v4468_v16, %v6939_v63  ;;  %v3548_v51 = vmax.f32 %v3516_v29, 0.0 }
 0x6de   : > { %v3549_v23 = vmax.f32 %v3517_v60, 0.0 }
 0x6df   : > { %v3550_v8 = vmax.f32 %v3518_v31, 0.0  ;;  %v3435_v7 = vpop.f32.mrb[36].mxu0 }
 0x6e0   : > { %v3579_v13 = vpack.c.bf16 %v3549_v23, %v3547_v2  ;;  %v4469_v49 = vadd.f32 %v3435_v7, %v2889_v0  ;;  %v3437_v47 = vpop.f32.mrb[37].mxu0 }
 0x6e1   : > { %v4470_v26 = vadd.f32 %v3437_v47, %v2891_v12  ;;  %v3439_v58 = vpop.f32.mrb[38].mxu0  ;;  %v3580_v10 = vpack.c.bf16 %v3550_v8, %v3548_v51 }
 0x6e2   : > { %v3519_v22 = vadd.f32 %v4469_v49, %v6936_v44  ;;  %v4471_v40 = vadd.f32 %v3439_v58, %v2893_v42  ;;  %v3441_v9 = vpop.f32.mrb[39].mxu0 }
 0x6e3   : > { %v3520_v35 = vadd.f32 %v4470_v26, %v6939_v63  ;;  %v4472_v11 = vadd.f32 %v3441_v9, %v2895_v53  ;;  %3831 = vmatprep.mubr.bf16.mxu1 %v3580_v10 }
 0x6e4   : > { %v3521_v30 = vadd.f32 %v4471_v40, %v6936_v44  ;;  %3832 = vmatmul.mubr.bf16.vlgmr.msra.gmra.mrb[64].mxu1 %v3579_v13  ;;  %v3551_v21 = vmax.f32 %v3519_v22, 0.0 }
 0x6e5   : > { %v3522_v36 = vadd.f32 %v4472_v11, %v6939_v63  ;;  %v3552_v0 = vmax.f32 %v3520_v35, 0.0 }
 0x6e6   : > { %v3553_v50 = vmax.f32 %v3521_v30, 0.0 }
 0x6e7   : > { %v3554_v15 = vmax.f32 %v3522_v36, 0.0  ;;  %v3445_v12 = vpop.f32.mrb[40].mxu0 }
 0x6e8   : > { %v4473_v25 = vadd.f32 %v3445_v12, %v6884_v18  ;;  %v3447_v45 = vpop.f32.mrb[41].mxu0  ;;  %v3581_v5 = vpack.c.bf16 %v3553_v50, %v3551_v21 }
 0x6e9   : > { %v4474_v42 = vadd.f32 %v3447_v45, %v6886_v6  ;;  %v3449_v62 = vpop.f32.mrb[42].mxu0  ;;  %v3582_v19 = vpack.c.bf16 %v3554_v15, %v3552_v0 }
 0x6ea   : > { %v3523_v53 = vadd.f32 %v4473_v25, %v6936_v44  ;;  %v4475_v37 = vadd.f32 %v3449_v62, %v6888_v14  ;;  %v3451_v48 = vpop.f32.mrb[43].mxu0 }
 0x6eb   : > { %v3524_v29 = vadd.f32 %v4474_v42, %v6939_v63  ;;  %v4476_v16 = vadd.f32 %v3451_v48, %v6890_v20  ;;  %3841 = vmatprep.mubr.bf16.mxu1 %v3582_v19 }
 0x6ec   : > { %v3525_v60 = vadd.f32 %v4475_v37, %v6936_v44  ;;  %3842 = vmatmul.mubr.bf16.gmra.mrb[68].mxu1 %v3581_v5  ;;  %v3555_v31 = vmax.f32 %v3523_v53, 0.0 }
 0x6ed   : > { %v3526_v18 = vadd.f32 %v4476_v16, %v6939_v63  ;;  %v3556_v6 = vmax.f32 %v3524_v29, 0.0 }
 0x6ee   : > { %v3557_v2 = vmax.f32 %v3525_v60, 0.0 }
 0x6ef   : > { %v3558_v23 = vmax.f32 %v3526_v18, 0.0  ;;  %v3455_v51 = vpop.f32.mrb[44].mxu0 }
 0x6f0   : > { %v4477_v8 = vadd.f32 %v3455_v51, %v6892_v28  ;;  %v3457_v7 = vpop.f32.mrb[45].mxu0  ;;  %v3583_v14 = vpack.c.bf16 %v3557_v2, %v3555_v31 }
 0x6f1   : > { %v4478_v13 = vadd.f32 %v3457_v7, %v6894_v38  ;;  %v3459_v49 = vpop.f32.mrb[46].mxu0  ;;  %v3584_v47 = vpack.c.bf16 %v3558_v23, %v3556_v6 }
 0x6f2   : > { %v3527_v20 = vadd.f32 %v4477_v8, %v6936_v44  ;;  %v4479_v26 = vadd.f32 %v3459_v49, %v6896_v55  ;;  %v3461_v58 = vpop.f32.mrb[47].mxu0 }
 0x6f3   : > { %v3528_v10 = vadd.f32 %v4478_v13, %v6939_v63  ;;  %v4480_v22 = vadd.f32 %v3461_v58, %v6898_v32  ;;  %3851 = vmatprep.mubr.bf16.mxu1 %v3584_v47 }
 0x6f4   : > { %v3529_v40 = vadd.f32 %v4479_v26, %v6936_v44  ;;  %3852 = vmatmul.mubr.bf16.gmra.mrb[72].mxu1 %v3583_v14  ;;  %v3559_v9 = vmax.f32 %v3527_v20, 0.0 }
 0x6f5   : > { %v3530_v28 = vadd.f32 %v4480_v22, %v6939_v63  ;;  %v3560_v38 = vmax.f32 %v3528_v10, 0.0 }
 0x6f6   : > { %v3561_v35 = vmax.f32 %v3529_v40, 0.0 }
 0x6f7   : > { %v3562_v11 = vmax.f32 %v3530_v28, 0.0  ;;  %v3465_v30 = vpop.f32.mrb[48].mxu0 }
 0x6f8   : > { %v4481_v36 = vadd.f32 %v3465_v30, %v6900_v59  ;;  %v3467_v21 = vpop.f32.mrb[49].mxu0  ;;  %v3585_v55 = vpack.c.bf16 %v3561_v35, %v3559_v9 }
 0x6f9   : > { %v4482_v50 = vadd.f32 %v3467_v21, %v6902_v1  ;;  %v3469_v0 = vpop.f32.mrb[50].mxu0  ;;  %v3586_v15 = vpack.c.bf16 %v3562_v11, %v3560_v38 }
 0x6fa   : > { %v3531_v32 = vadd.f32 %v4481_v36, %v6936_v44  ;;  %v4483_v12 = vadd.f32 %v3469_v0, %v6904_v3  ;;  %v3471_v25 = vpop.f32.mrb[51].mxu0 }
 0x6fb   : > { %v3532_v45 = vadd.f32 %v4482_v50, %v6939_v63  ;;  %v4484_v5 = vadd.f32 %v3471_v25, %v6906_v46  ;;  %3861 = vmatprep.mubr.bf16.mxu1 %v3586_v15 }
 0x6fc   : > { %v3533_v42 = vadd.f32 %v4483_v12, %v6936_v44  ;;  %3862 = vmatmul.mubr.bf16.gmra.mrb[76].mxu1 %v3585_v55  ;;  %v3563_v62 = vmax.f32 %v3531_v32, 0.0 }
 0x6fd   : > { %v3534_v59 = vadd.f32 %v4484_v5, %v6939_v63  ;;  %v3564_v1 = vmax.f32 %v3532_v45, 0.0 }
 0x6fe   : > { %v3565_v19 = vmax.f32 %v3533_v42, 0.0 }
 0x6ff   : > { %v3566_v53 = vmax.f32 %v3534_v59, 0.0  ;;  %v3475_v37 = vpop.f32.mrb[52].mxu0 }
 0x700   : > { %v4485_v48 = vadd.f32 %v3475_v37, %v6908_v33  ;;  %v3477_v29 = vpop.f32.mrb[53].mxu0  ;;  %v3587_v3 = vpack.c.bf16 %v3565_v19, %v3563_v62 }
 0x701   : > { %v4486_v16 = vadd.f32 %v3477_v29, %v6910_v4  ;;  %v3479_v60 = vpop.f32.mrb[54].mxu0  ;;  %v3588_v18 = vpack.c.bf16 %v3566_v53, %v3564_v1 }
 0x702   : > { %v3535_v46 = vadd.f32 %v4485_v48, %v6936_v44  ;;  %v4487_v31 = vadd.f32 %v3479_v60, %v6912_v57  ;;  %v3481_v2 = vpop.f32.mrb[55].mxu0 }
 0x703   : > { %v3536_v6 = vadd.f32 %v4486_v16, %v6939_v63  ;;  %v4488_v23 = vadd.f32 %v3481_v2, %v6914_v24  ;;  %3871 = vmatprep.mubr.bf16.mxu1 %v3588_v18 }
 0x704   : > { %v3537_v51 = vadd.f32 %v4487_v31, %v6936_v44  ;;  %3872 = vmatmul.mubr.bf16.gmra.mrb[80].mxu1 %v3587_v3  ;;  %v3567_v8 = vmax.f32 %v3535_v46, 0.0 }
 0x705   : > { %v3538_v33 = vadd.f32 %v4488_v23, %v6939_v63  ;;  %v3568_v4 = vmax.f32 %v3536_v6, 0.0 }
 0x706   : > { %v3569_v7 = vmax.f32 %v3537_v51, 0.0 }
 0x707   : > { %v3570_v14 = vmax.f32 %v3538_v33, 0.0  ;;  %v3485_v13 = vpop.f32.mrb[56].mxu0 }
 0x708   : > { %v4489_v49 = vadd.f32 %v3485_v13, %v6916_v56  ;;  %v3487_v47 = vpop.f32.mrb[57].mxu0  ;;  %v3589_v57 = vpack.c.bf16 %v3569_v7, %v3567_v8 }
 0x709   : > { %v4490_v20 = vadd.f32 %v3487_v47, %v6918_v34  ;;  %v3489_v26 = vpop.f32.mrb[58].mxu0  ;;  %v3590_v58 = vpack.c.bf16 %v3570_v14, %v3568_v4 }
 0x70a   : > { %v3539_v24 = vadd.f32 %v4489_v49, %v6936_v44  ;;  %v4491_v10 = vadd.f32 %v3489_v26, %v6920_v61  ;;  %v3491_v22 = vpop.f32.mrb[59].mxu0 }
 0x70b   : > { %v3540_v40 = vadd.f32 %v4490_v20, %v6939_v63  ;;  %v4492_v28 = vadd.f32 %v3491_v22, %v6922_v43  ;;  %3881 = vmatprep.mubr.bf16.mxu1 %v3590_v58 }
 0x70c   : > { %v3541_v9 = vadd.f32 %v4491_v10, %v6936_v44  ;;  %3882 = vmatmul.mubr.bf16.gmra.mrb[84].mxu1 %v3589_v57  ;;  %v3571_v35 = vmax.f32 %v3539_v24, 0.0 }
 0x70d   : > { %v3542_v56 = vadd.f32 %v4492_v28, %v6939_v63  ;;  %v3572_v34 = vmax.f32 %v3540_v40, 0.0 }
 0x70e   : > { %v3573_v38 = vmax.f32 %v3541_v9, 0.0 }
 0x70f   : > { %v3574_v11 = vmax.f32 %v3542_v56, 0.0  ;;  %v3495_v30 = vpop.f32.mrb[60].mxu0 }
 0x710   : > { %v4493_v36 = vadd.f32 %v3495_v30, %v6924_v41  ;;  %v3497_v21 = vpop.f32.mrb[61].mxu0  ;;  %v3591_v61 = vpack.c.bf16 %v3573_v38, %v3571_v35 }
 0x711   : > { %v4494_v55 = vadd.f32 %v3497_v21, %v6926_v39  ;;  %v3499_v50 = vpop.f32.mrb[62].mxu0  ;;  %v3592_v0 = vpack.c.bf16 %v3574_v11, %v3572_v34 }
 0x712   : > { %v3543_v43 = vadd.f32 %v4493_v36, %v6936_v44  ;;  %v4495_v15 = vadd.f32 %v3499_v50, %v6928_v27  ;;  %v3501_v32 = vpop.f32.mrb[63].mxu0  ;;  %v3627_v27 = vld [vmem:[%s7124_s8] sm:$0x3] }
 0x713   : > { %v3544_v12 = vadd.f32 %v4494_v55, %v6939_v63  ;;  %v4496_v25 = vadd.f32 %v3501_v32, %v6930_v54  ;;  %3891 = vmatprep.mubr.bf16.mxu1 %v3592_v0  ;;  %v7001_v54 = vrot.slane %v3627_v27, %v7334_v52 }
 0x714   : > { %v3545_v45 = vadd.f32 %v4495_v15, %v6936_v44  ;;  %3892 = vmatmul.mubr.bf16.gmra.mrb[88].mxu1 %v3591_v61  ;;  %v3575_v39 = vmax.f32 %v3543_v43, 0.0  ;;  %v7004_v44 = vrot.slane %v3627_v27, %v7335_v17 }
 0x715   : > { %v3546_v41 = vadd.f32 %v4496_v25, %v6939_v63  ;;  %v3576_v42 = vmax.f32 %v3544_v12, 0.0 }
 0x716   : > { %v3577_v5 = vmax.f32 %v3545_v45, 0.0 }
 0x717   : > { %v3578_v59 = vmax.f32 %v3546_v41, 0.0 }
 0x718   : > { %v3593_v62 = vpack.c.bf16 %v3577_v5, %v3575_v39 }
 0x719   : > { %v3594_v19 = vpack.c.bf16 %v3578_v59, %v3576_v42 }
 0x71b   : > { %3901 = vmatprep.mubr.bf16.mxu1 %v3594_v19 }
 0x71c   : > { %3902 = vmatmul.mubr.bf16.gmra.mrb[92].mxu1 %v3593_v62 }
 0x7b7   : > { %v3833_v63 = vpop.f32.mrb[64].mxu1 }
 0x7b8   : > { %v3834_v1 = vadd.f32 %v3833_v63, %v7001_v54  ;;  %v3835_v53 = vpop.f32.mrb[65].mxu1 }
 0x7b9   : > { %v3836_v37 = vadd.f32 %v3835_v53, %v7004_v44  ;;  %v3837_v48 = vpop.f32.mrb[66].mxu1 }
 0x7ba   : > { %v3912_v29 = vmax.f32 %v3834_v1, 0.0  ;;  %v3838_v3 = vadd.f32 %v3837_v48, %v7001_v54  ;;  %v3839_v16 = vpop.f32.mrb[67].mxu1 }
 0x7bb   : > { %v3913_v60 = vmax.f32 %v3836_v37, 0.0  ;;  %v3840_v52 = vadd.f32 %v3839_v16, %v7004_v44 }
 0x7bc   : > { %v3914_v18 = vmax.f32 %v3838_v3, 0.0 }
 0x7bd   : > { %v4448_v17 = vpack.c.bf16 %v3913_v60, %v3912_v29  ;;  %v3915_v46 = vmax.f32 %v3840_v52, 0.0 }
 0x7bf   : > { %4040 = vst [vmem:[%s7013_s16] sm:$0xff] %v4448_v17  ;;  %v4449_v31 = vpack.c.bf16 %v3915_v46, %v3914_v18  ;;  %v3843_v2 = vpop.f32.mrb[68].mxu1 }
 0x7c0   : > { %v3844_v6 = vadd.f32 %v3843_v2, %v7001_v54  ;;  %v3845_v23 = vpop.f32.mrb[69].mxu1 }
 0x7c1   : > { %4041 = vst [vmem:[%s7013_s16 + $0x8] sm:$0xff] %v4449_v31  ;;  %v3846_v51 = vadd.f32 %v3845_v23, %v7004_v44  ;;  %v3847_v33 = vpop.f32.mrb[70].mxu1 }
 0x7c2   : > { %v3916_v8 = vmax.f32 %v3844_v6, 0.0  ;;  %v3848_v7 = vadd.f32 %v3847_v33, %v7001_v54  ;;  %v3849_v4 = vpop.f32.mrb[71].mxu1 }
 0x7c3   : > { %v3917_v14 = vmax.f32 %v3846_v51, 0.0  ;;  %v3850_v13 = vadd.f32 %v3849_v4, %v7004_v44 }
 0x7c4   : > { %v3918_v49 = vmax.f32 %v3848_v7, 0.0 }
 0x7c5   : > { %v4450_v47 = vpack.c.bf16 %v3917_v14, %v3916_v8  ;;  %v3919_v57 = vmax.f32 %v3850_v13, 0.0 }
 0x7c7   : > { %4042 = vst [vmem:[%s7013_s16 + $0x10] sm:$0xff] %v4450_v47  ;;  %v4451_v20 = vpack.c.bf16 %v3919_v57, %v3918_v49  ;;  %v3853_v26 = vpop.f32.mrb[72].mxu1 }
 0x7c8   : > { %v3854_v58 = vadd.f32 %v3853_v26, %v7001_v54  ;;  %v3855_v24 = vpop.f32.mrb[73].mxu1 }
 0x7c9   : > { %4043 = vst [vmem:[%s7013_s16 + $0x18] sm:$0xff] %v4451_v20  ;;  %v3856_v10 = vadd.f32 %v3855_v24, %v7004_v44  ;;  %v3857_v22 = vpop.f32.mrb[74].mxu1 }
 0x7ca   : > { %v3920_v40 = vmax.f32 %v3854_v58, 0.0  ;;  %v3858_v28 = vadd.f32 %v3857_v22, %v7001_v54  ;;  %v3859_v9 = vpop.f32.mrb[75].mxu1 }
 0x7cb   : > { %v3921_v56 = vmax.f32 %v3856_v10, 0.0  ;;  %v3860_v35 = vadd.f32 %v3859_v9, %v7004_v44 }
 0x7cc   : > { %v3922_v38 = vmax.f32 %v3858_v28, 0.0 }
 0x7cd   : > { %v4452_v34 = vpack.c.bf16 %v3921_v56, %v3920_v40  ;;  %v3923_v11 = vmax.f32 %v3860_v35, 0.0 }
 0x7cf   : > { %4044 = vst [vmem:[%s7013_s16 + $0x20] sm:$0xff] %v4452_v34  ;;  %v4453_v30 = vpack.c.bf16 %v3923_v11, %v3922_v38  ;;  %v3863_v36 = vpop.f32.mrb[76].mxu1 }
 0x7d0   : > { %v3864_v21 = vadd.f32 %v3863_v36, %v7001_v54  ;;  %v3865_v61 = vpop.f32.mrb[77].mxu1 }
 0x7d1   : > { %4045 = vst [vmem:[%s7013_s16 + $0x28] sm:$0xff] %v4453_v30  ;;  %v3866_v55 = vadd.f32 %v3865_v61, %v7004_v44  ;;  %v3867_v50 = vpop.f32.mrb[78].mxu1 }
 0x7d2   : > { %v3924_v0 = vmax.f32 %v3864_v21, 0.0  ;;  %v3868_v43 = vadd.f32 %v3867_v50, %v7001_v54  ;;  %v3869_v15 = vpop.f32.mrb[79].mxu1 }
 0x7d3   : > { %v3925_v32 = vmax.f32 %v3866_v55, 0.0  ;;  %v3870_v12 = vadd.f32 %v3869_v15, %v7004_v44 }
 0x7d4   : > { %v3926_v25 = vmax.f32 %v3868_v43, 0.0 }
 0x7d5   : > { %v4454_v45 = vpack.c.bf16 %v3925_v32, %v3924_v0  ;;  %v3927_v41 = vmax.f32 %v3870_v12, 0.0 }
 0x7d7   : > { %4046 = vst [vmem:[%s7013_s16 + $0x30] sm:$0xff] %v4454_v45  ;;  %v4455_v39 = vpack.c.bf16 %v3927_v41, %v3926_v25  ;;  %v3873_v5 = vpop.f32.mrb[80].mxu1 }
 0x7d8   : > { %v3874_v42 = vadd.f32 %v3873_v5, %v7001_v54  ;;  %v3875_v59 = vpop.f32.mrb[81].mxu1 }
 0x7d9   : > { %4047 = vst [vmem:[%s7013_s16 + $0x38] sm:$0xff] %v4455_v39  ;;  %v3876_v62 = vadd.f32 %v3875_v59, %v7004_v44  ;;  %v3877_v19 = vpop.f32.mrb[82].mxu1 }
 0x7da   : > { %v3928_v27 = vmax.f32 %v3874_v42, 0.0  ;;  %v3878_v63 = vadd.f32 %v3877_v19, %v7001_v54  ;;  %v3879_v1 = vpop.f32.mrb[83].mxu1 }
 0x7db   : > { %v3929_v53 = vmax.f32 %v3876_v62, 0.0  ;;  %v3880_v37 = vadd.f32 %v3879_v1, %v7004_v44 }
 0x7dc   : > { %v3930_v48 = vmax.f32 %v3878_v63, 0.0 }
 0x7dd   : > { %v4456_v29 = vpack.c.bf16 %v3929_v53, %v3928_v27  ;;  %v3931_v3 = vmax.f32 %v3880_v37, 0.0 }
 0x7df   : > { %4048 = vst [vmem:[%s7013_s16 + $0x40] sm:$0xff] %v4456_v29  ;;  %v4457_v16 = vpack.c.bf16 %v3931_v3, %v3930_v48  ;;  %v3883_v60 = vpop.f32.mrb[84].mxu1 }
 0x7e0   : > { %v3884_v52 = vadd.f32 %v3883_v60, %v7001_v54  ;;  %v3885_v18 = vpop.f32.mrb[85].mxu1 }
 0x7e1   : > { %4049 = vst [vmem:[%s7013_s16 + $0x48] sm:$0xff] %v4457_v16  ;;  %v3886_v17 = vadd.f32 %v3885_v18, %v7004_v44  ;;  %v3887_v46 = vpop.f32.mrb[86].mxu1 }
 0x7e2   : > { %v3932_v31 = vmax.f32 %v3884_v52, 0.0  ;;  %v3888_v2 = vadd.f32 %v3887_v46, %v7001_v54  ;;  %v3889_v6 = vpop.f32.mrb[87].mxu1 }
 0x7e3   : > { %v3933_v23 = vmax.f32 %v3886_v17, 0.0  ;;  %v3890_v51 = vadd.f32 %v3889_v6, %v7004_v44 }
 0x7e4   : > { %v3934_v33 = vmax.f32 %v3888_v2, 0.0 }
 0x7e5   : > { %v4458_v8 = vpack.c.bf16 %v3933_v23, %v3932_v31  ;;  %v3935_v7 = vmax.f32 %v3890_v51, 0.0 }
 0x7e7   : > { %4050 = vst [vmem:[%s7013_s16 + $0x50] sm:$0xff] %v4458_v8  ;;  %v4459_v4 = vpack.c.bf16 %v3935_v7, %v3934_v33  ;;  %v3893_v14 = vpop.f32.mrb[88].mxu1 }
 0x7e8   : > { %v3894_v13 = vadd.f32 %v3893_v14, %v7001_v54  ;;  %v3895_v49 = vpop.f32.mrb[89].mxu1 }
 0x7e9   : > { %4051 = vst [vmem:[%s7013_s16 + $0x58] sm:$0xff] %v4459_v4  ;;  %v3896_v47 = vadd.f32 %v3895_v49, %v7004_v44  ;;  %v3897_v57 = vpop.f32.mrb[90].mxu1 }
 0x7ea   : > { %v3936_v20 = vmax.f32 %v3894_v13, 0.0  ;;  %v3898_v26 = vadd.f32 %v3897_v57, %v7001_v54  ;;  %v3899_v58 = vpop.f32.mrb[91].mxu1 }
 0x7eb   : > { %v3937_v24 = vmax.f32 %v3896_v47, 0.0  ;;  %v3900_v10 = vadd.f32 %v3899_v58, %v7004_v44 }
 0x7ec   : > { %v3938_v22 = vmax.f32 %v3898_v26, 0.0 }
 0x7ed   : > { %v4460_v40 = vpack.c.bf16 %v3937_v24, %v3936_v20  ;;  %v3939_v28 = vmax.f32 %v3900_v10, 0.0 }
 0x7ef   : > { %4052 = vst [vmem:[%s7013_s16 + $0x60] sm:$0xff] %v4460_v40  ;;  %v4461_v9 = vpack.c.bf16 %v3939_v28, %v3938_v22  ;;  %v3903_v56 = vpop.f32.mrb[92].mxu1 }
 0x7f0   : > { %v3904_v35 = vadd.f32 %v3903_v56, %v7001_v54  ;;  %v3905_v38 = vpop.f32.mrb[93].mxu1 }
 0x7f1   : > { %4053 = vst [vmem:[%s7013_s16 + $0x68] sm:$0xff] %v4461_v9  ;;  %v3906_v34 = vadd.f32 %v3905_v38, %v7004_v44  ;;  %v3907_v11 = vpop.f32.mrb[94].mxu1 }
 0x7f2   : > { %v3940_v30 = vmax.f32 %v3904_v35, 0.0  ;;  %v3908_v36 = vadd.f32 %v3907_v11, %v7001_v54  ;;  %v3909_v21 = vpop.f32.mrb[95].mxu1 }
 0x7f3   : > { %v3941_v61 = vmax.f32 %v3906_v34, 0.0  ;;  %v3910_v55 = vadd.f32 %v3909_v21, %v7004_v44 }
 0x7f4   : > { %v3942_v50 = vmax.f32 %v3908_v36, 0.0 }
 0x7f5   : > { %v4462_v0 = vpack.c.bf16 %v3941_v61, %v3940_v30  ;;  %v3943_v43 = vmax.f32 %v3910_v55, 0.0 }
 0x7f7   : > { %4054 = vst [vmem:[%s7013_s16 + $0x70] sm:$0xff] %v4462_v0  ;;  %v4463_v54 = vpack.c.bf16 %v3943_v43, %v3942_v50 }
 0x7f9   : > { %4055 = vst [vmem:[%s7013_s16 + $0x78] sm:$0xff] %v4463_v54 }
 0x7fa   : > { %5090 = shalt.err (!%p5087_p6)
}
 0x7fb   : > { %s5091_s13 = scalar_lea.hbm %s7062_s22, 2048  ;;  %s5095_s30 = scalar_lea.hbm %s7125_s9, 4096 }
 0x7fc   : > { %p5092_p7 = scmp.ne.s32.totalorder %s7062_s22, %s5091_s13  ;;  %p5096_p4 = scmp.lt.u32.totalorder %s7062_s22, %s7125_s9 }
 0x7fd   : > { %p5097_p1 = scmp.lt.u32.totalorder %s5095_s30, %s5091_s13  ;;  %p5099_p13 = scmp.lt.u32.totalorder %s5091_s13, %s7062_s22 }
 0x7fe   : > { %p5093_p9 = pnand %p5092_p7, %p7336_p10 }
 0x7ff   : > { %p5098_p8 = por %p5097_p1, %p5096_p4 }
 0x800   : > { %p5094_p12 = pneg %p5093_p9 }
 0x801   : > { %p5100_p11 = por %p5099_p13, %p5098_p8 }
 0x803   : > { %p5101_p0 = pnand %p5100_p11, %p5094_p12 }
 0x805   : > { %5104 = shalt.err (!%p5101_p0)
}
 0x806   : > { %s5175_s25 = smov 128   ;;  %s5176_s17 = smov 8  }
 0x807   : > { %4541 = dma.vmem_to_hbm [thread:$0]  (%p7336_p10), %s7064_s11, 2048, %s7062_s22, %s7070_s18, %s5175_s25, %s5175_s25, %s5176_s17  }
 0x808 PF: > { %s7337_s16 = sld [smem:[#allocation12_spill]]  ;;  %s7338_s24 = sld [smem:[#allocation16_spill]] }
 0x809   : > { %p4563_p2 = scmp.ge.s32.totalorder %s5163_s14, 2 }
 0x80e   : > { %s4088_s21 = sand.u32 1, %s7337_s16   ;;  %p7339_p3 = scmp.ne.s32.totalorder %s7338_s24, 0 }
 0x80f   : > { %s4089_s26 = scalar_lea.sflag [#allocation4], %s4088_s21 }
 0x810   : > { %p4554_p5 = pnand %p4563_p2, %p7339_p3 }
 0x812   : > { %5138 = dma.done.wait (!%p4554_p5), %s4089_s26, 2048  }
 0x813   : > { %5140 = vsyncadd (!%p4554_p5), %s4089_s26, 4294965248  ;;  %s24_s14 = sadd.s32 1, %s5163_s14   ;;  %s7340_s12 = sld [smem:[#allocation13_spill]] }
 0x814   : > { %p21_p6 = scmp.ge.s32.totalorder %s24_s14, 4   ;;  %s7341_s11 = sld [smem:[#allocation17_spill]] }
 0x815   : > { %s7342_s15 = sld [smem:[#allocation14_spill]]  ;;  %s7343_s13 = sld [smem:[#allocation15_spill]] }
 0x816   : > { %s7344_s30 = smov %s5147_s10  ;;  %23 = sbr.rel (!%p21_p6) target bundleno = 8 (0x8), region = 113 }
 0x819   : > { %s7345_s10 = smov %s7340_s12 }
 0x81b   : > { %s7346_s12 = smov %s7342_s15 }
 0x81d   :  { %4094 = vsyncpa [#allocation3], 1 }
 0x81e   :  { %4096 = vsyncpa [#allocation3 + $0x1], 1 }
 0x81f   :  { %4097 = vsyncpa [#allocation6], 1 }
 0x820   :  { %4098 = vsyncpa [#allocation4], 1 }
 0x821   :  { %4100 = vsyncpa [#allocation4 + $0x1], 1 }

</bundles_post_ra>
